<compile_context>
chip_gen: v6e
topology: v6e:2x2x1
jax: 0.10.0
libtpu: 0.0.40
codegen_flags: <defaults>
</compile_context>

<pallas_src>
import numpy as np

import jax
import jax.numpy as jnp
from jax.experimental import pallas as pl
from jax.experimental.pallas import tpu as pltpu

# ----------------------------- configuration --------------------------------
B = 2                     # batch
CIN = 4                   # input channels
IMG = 16                  # image height == width
C0 = 16                   # stem output channels
EXP = 4                   # bottleneck expansion (as in resnet50)
BLOCKS = [                # scaled-down stages: one bottleneck block per stage
    dict(cin=C0, width=16, stride=1),   # out channels 64,  spatial 4x4 -> 4x4
    dict(cin=64, width=32, stride=2),   # out channels 128, spatial 4x4 -> 2x2
]
FEAT = BLOCKS[-1]["width"] * EXP        # 128 (lane-dense final feature dim)
BN_EPS = 1e-5

H_STEM = IMG // 2                       # 8 : conv7x7 stride 2 pad 3
H_POOL = (H_STEM + 2 - 3) // 2 + 1      # 4 : maxpool 3x3 stride 2 pad 1


# ------------------- constant spatial tap / selection matrices ---------------
def _tap_matrices(hi, wi, k, stride, pad, batch):
    """0/1 matrices S_t (t = ky*k+kx) with S_t @ X == tap-shifted/subsampled X.

    X rows are ordered (b, y, x); out-of-bounds taps give all-zero rows.
    Returns (k*k, batch*ho*wo, batch*hi*wi), ho, wo.
    """
    ho = (hi + 2 * pad - k) // stride + 1
    wo = (wi + 2 * pad - k) // stride + 1
    m = np.zeros((k * k, batch * ho * wo, batch * hi * wi), np.float32)
    for b in range(batch):
        for oy in range(ho):
            for ox in range(wo):
                r = b * ho * wo + oy * wo + ox
                for ky in range(k):
                    for kx in range(k):
                        iy = oy * stride - pad + ky
                        ix = ox * stride - pad + kx
                        if 0 <= iy < hi and 0 <= ix < wi:
                            m[ky * k + kx, r, b * hi * wi + iy * wi + ix] = 1.0
    return m, ho, wo


def _build_geometry():
    geos = []
    h = H_POOL
    for cfg in BLOCKS:
        s = cfg["stride"]
        s3, ho, _ = _tap_matrices(h, h, 3, s, 1, B)      # 3x3 conv taps
        if s > 1:
            sd = _tap_matrices(h, h, 1, s, 0, B)[0][0]   # 1x1 shortcut subsample
        else:
            sd = None                                    # identity -> skipped
        geos.append((s3, sd))
        h = ho
    hw = h * h
    pool = np.zeros((B, B * hw), np.float32)             # global avg pool (1/HW folded)
    for b in range(B):
        pool[b, b * hw:(b + 1) * hw] = 1.0 / hw
    return geos, pool


MP_TAPS = _tap_matrices(H_STEM, H_STEM, 3, 2, 1, B)[0]   # (9, B*16, B*64)
GEOS, POOL_MAT = _build_geometry()


# ------------------------------- Pallas kernel -------------------------------
def resnet_kernel(*refs):
    f32 = jnp.float32
    x_ref, w_stem_ref, b_stem_ref, mp_ref = refs[:4]
    block_refs = refs[4:-2]
    pool_ref = refs[-2]
    out_ref = refs[-1]

    # stem: conv7x7 (im2col matmul, BN scale pre-folded) + bias + ReLU
    #                                                           -> (B*64, C0)
    x = jnp.maximum(
        jnp.dot(x_ref[...], w_stem_ref[...], preferred_element_type=f32)
        + b_stem_ref[...], 0.0)

    # maxpool 3x3 s2 p1: max over the 9 tap-selected copies.
    # Zero rows from out-of-bounds taps are harmless because x >= 0 post-ReLU
    # (equivalent to PyTorch's -inf padding).                   -> (B*16, C0)
    m = jnp.dot(mp_ref[0], x, preferred_element_type=f32)
    for t in range(1, 9):
        m = jnp.maximum(m, jnp.dot(mp_ref[t], x, preferred_element_type=f32))
    x = m

    # bottleneck blocks (static Python loop; arg layout depends on stride)
    idx = 0
    for cfg in BLOCKS:
        w1, b1, s3m, w2, b2, w3, b3 = block_refs[idx:idx + 7]
        idx += 7
        if cfg["stride"] > 1:
            sdm = block_refs[idx]
            idx += 1
        else:
            sdm = None
        wd, bd = block_refs[idx:idx + 2]
        idx += 2

        # 1x1 reduce conv (BN scale folded) + bias + ReLU
        h = jnp.maximum(
            jnp.dot(x, w1[...], preferred_element_type=f32) + b1[...], 0.0)

        # 3x3 conv: stride folded into the tap matrices, BN scale folded into
        # the per-tap weight matrices. acc = sum_t (S_t @ h) @ W_t
        acc = jnp.dot(jnp.dot(s3m[0], h, preferred_element_type=f32), w2[0],
                      preferred_element_type=f32)
        for t in range(1, 9):
            acc = acc + jnp.dot(
                jnp.dot(s3m[t], h, preferred_element_type=f32), w2[t],
                preferred_element_type=f32)
        h = jnp.maximum(acc + b2[...], 0.0)

        # 1x1 expand conv (BN scale folded) + bias
        h = jnp.dot(h, w3[...], preferred_element_type=f32) + b3[...]

        # 1x1 downsample shortcut; spatial subsample matmul only when stride>1
        xs = x if sdm is None else jnp.dot(sdm[...], x,
                                           preferred_element_type=f32)
        shortcut = jnp.dot(xs, wd[...], preferred_element_type=f32) + bd[...]

        x = jnp.maximum(h + shortcut, 0.0)

    # global average pool over each image's spatial positions -> (B, FEAT)
    out_ref[...] = jnp.dot(pool_ref[...], x, preferred_element_type=f32)


# ------------------------------ JAX glue / wrapper ----------------------------
def fold_bn(bn):
    s = bn["gamma"] / jnp.sqrt(bn["var"] + BN_EPS)
    b = bn["beta"] - bn["mean"] * s
    return s, b


def _stem_im2col(x_nchw):
    """(B, CIN, 16, 16) -> (B*64, CIN*49); patch inner order (c, ky, kx)."""
    xp = jnp.pad(x_nchw, ((0, 0), (0, 0), (3, 3), (3, 3)))
    taps = []
    for ky in range(7):
        for kx in range(7):
            taps.append(xp[:, :, ky:ky + 2 * H_STEM:2, kx:kx + 2 * H_STEM:2])
    t = jnp.stack(taps, axis=2)                        # (B, C, 49, 8, 8)
    t = t.transpose(0, 3, 4, 1, 2)                     # (B, 8, 8, C, 49)
    return t.reshape(B * H_STEM * H_STEM, CIN * 49)


def _kernel_args(params, x_nchw):
    s_stem, b_stem = fold_bn(params["bn_stem"])
    w_stem = params["w_stem"].reshape(C0, -1).T * s_stem[None, :]
    args = [
        _stem_im2col(x_nchw),
        w_stem,                                        # (CIN*49, C0), scale folded
        b_stem[None, :],
        jnp.asarray(MP_TAPS),
    ]
    for cfg, bp, (s3_np, sd_np) in zip(BLOCKS, params["blocks"], GEOS):
        w = bp["w2"].shape[0]
        s1, b1 = fold_bn(bp["bn1"])
        s2, b2 = fold_bn(bp["bn2"])
        s3, b3 = fold_bn(bp["bn3"])
        sd, bd = fold_bn(bp["bnd"])
        # per-tap (in, out) weight matrices with BN scale folded into columns
        w2 = jnp.transpose(bp["w2"], (2, 3, 1, 0)).reshape(9, w, w) \
            * s2[None, None, :]
        args += [
            bp["w1"][:, :, 0, 0].T * s1[None, :], b1[None, :],
            jnp.asarray(s3_np), w2, b2[None, :],
            bp["w3"][:, :, 0, 0].T * s3[None, :], b3[None, :],
        ]
        if cfg["stride"] > 1:
            args.append(jnp.asarray(sd_np))
        args += [bp["wd"][:, :, 0, 0].T * sd[None, :], bd[None, :]]
    args.append(jnp.asarray(POOL_MAT))
    return args


def _full_spec(shape):
    nd = len(shape)
    return pl.BlockSpec(shape, lambda i, _nd=nd: (0,) * _nd)


def image_encoder_resnet(params, x_nchw):
    args = _kernel_args(params, x_nchw)
    in_specs = [_full_spec(a.shape) for a in args]
    out = pl.pallas_call(
        resnet_kernel,
        out_shape=jax.ShapeDtypeStruct((B, FEAT), jnp.float32),
        grid_spec=pltpu.PrefetchScalarGridSpec(
            num_scalar_prefetch=0,
            grid=(1,),                                  # single step: batch folded
            in_specs=in_specs,
            out_specs=pl.BlockSpec((B, FEAT), lambda i: (0, 0)),
        ),
        compiler_params=pltpu.CompilerParams(
            dimension_semantics=("arbitrary",)),
    )(*args)
    return out                                          # (B, FEAT)


# -------------------------- deterministic parameter init ----------------------
def init_params(key):
    keys = iter(jax.random.split(key, 64))

    def conv_w(shape):
        fan_in = shape[1] * shape[2] * shape[3]
        return jax.random.normal(next(keys), shape, jnp.float32) * (2.0 / fan_in) ** 0.5

    def bn_p(c):
        return dict(
            gamma=1.0 + 0.1 * jax.random.normal(next(keys), (c,), jnp.float32),
            beta=0.1 * jax.random.normal(next(keys), (c,), jnp.float32),
            mean=0.1 * jax.random.normal(next(keys), (c,), jnp.float32),
            var=jax.random.uniform(next(keys), (c,), jnp.float32, 0.5, 1.5),
        )

    params = dict(w_stem=conv_w((C0, CIN, 7, 7)), bn_stem=bn_p(C0), blocks=[])
    for cfg in BLOCKS:
        ci, w = cfg["cin"], cfg["width"]
        co = w * EXP
        params["blocks"].append(dict(
            w1=conv_w((w, ci, 1, 1)), bn1=bn_p(w),
            w2=conv_w((w, w, 3, 3)), bn2=bn_p(w),
            w3=conv_w((co, w, 1, 1)), bn3=bn_p(co),
            wd=conv_w((co, ci, 1, 1)), bnd=bn_p(co),
        ))
    return params


# ------------------------------ pure-JAX reference ---------------------------
def _conv(x, w, stride, pad):
    return jax.lax.conv_general_dilated(
        x, w, window_strides=(stride, stride),
        padding=[(pad, pad), (pad, pad)],
        dimension_numbers=("NCHW", "OIHW", "NCHW"),
        precision=jax.lax.Precision.HIGHEST)


def reference(params, x):
    def bn_apply(y, bn):
        s, b = fold_bn(bn)
        return y * s[None, :, None, None] + b[None, :, None, None]

    y = jnp.maximum(bn_apply(_conv(x, params["w_stem"], 2, 3), params["bn_stem"]), 0.0)
    y = jax.lax.reduce_window(
        y, -jnp.inf, jax.lax.max,
        window_dimensions=(1, 1, 3, 3), window_strides=(1, 1, 2, 2),
        padding=((0, 0), (0, 0), (1, 1), (1, 1)))
    for cfg, bp in zip(BLOCKS, params["blocks"]):
        s = cfg["stride"]
        h = jnp.maximum(bn_apply(_conv(y, bp["w1"], 1, 0), bp["bn1"]), 0.0)
        h = jnp.maximum(bn_apply(_conv(h, bp["w2"], s, 1), bp["bn2"]), 0.0)
        h = bn_apply(_conv(h, bp["w3"], 1, 0), bp["bn3"])
        sc = bn_apply(_conv(y, bp["wd"], s, 0), bp["bnd"])
        y = jnp.maximum(h + sc, 0.0)
    # adaptive_avg_pool2d((1,1)) + flatten
    return jnp.mean(y, axis=(2, 3))                     # (B, FEAT)


# ------------------------------------ main ------------------------------------
if __name__ == "__main__":
    key = jax.random.PRNGKey(0)
    kx, kp = jax.random.split(key)
    x = jax.random.normal(kx, (B, CIN, IMG, IMG), jnp.float32)   # NCHW like PyTorch
    params = init_params(kp)

    out = image_encoder_resnet(params, x)
    out = jax.block_until_ready(out)

    ref = reference(params, x)
    assert out.shape == (B, FEAT), out.shape
    err = jnp.max(jnp.abs(out - ref))
    assert jnp.allclose(out, ref, atol=1e-3, rtol=1e-3), f"max abs err {err}"
    print("KERNEL_OK")
</pallas_src>

<mosaic_0001>
module attributes {stable_mosaic.version = 11 : i64} {
  func.func @resnet_kernel(%arg0: i32, %arg1: memref<128x196xf32, #tpu.memory_space<vmem>>, %arg2: memref<196x16xf32, #tpu.memory_space<vmem>>, %arg3: memref<1x16xf32, #tpu.memory_space<vmem>>, %arg4: memref<9x32x128xf32, #tpu.memory_space<vmem>>, %arg5: memref<16x16xf32, #tpu.memory_space<vmem>>, %arg6: memref<1x16xf32, #tpu.memory_space<vmem>>, %arg7: memref<9x32x32xf32, #tpu.memory_space<vmem>>, %arg8: memref<9x16x16xf32, #tpu.memory_space<vmem>>, %arg9: memref<1x16xf32, #tpu.memory_space<vmem>>, %arg10: memref<16x64xf32, #tpu.memory_space<vmem>>, %arg11: memref<1x64xf32, #tpu.memory_space<vmem>>, %arg12: memref<16x64xf32, #tpu.memory_space<vmem>>, %arg13: memref<1x64xf32, #tpu.memory_space<vmem>>, %arg14: memref<64x32xf32, #tpu.memory_space<vmem>>, %arg15: memref<1x32xf32, #tpu.memory_space<vmem>>, %arg16: memref<9x8x32xf32, #tpu.memory_space<vmem>>, %arg17: memref<9x32x32xf32, #tpu.memory_space<vmem>>, %arg18: memref<1x32xf32, #tpu.memory_space<vmem>>, %arg19: memref<32x128xf32, #tpu.memory_space<vmem>>, %arg20: memref<1x128xf32, #tpu.memory_space<vmem>>, %arg21: memref<8x32xf32, #tpu.memory_space<vmem>>, %arg22: memref<64x128xf32, #tpu.memory_space<vmem>>, %arg23: memref<1x128xf32, #tpu.memory_space<vmem>>, %arg24: memref<2x8xf32, #tpu.memory_space<vmem>>, %arg25: memref<2x128xf32, #tpu.memory_space<vmem>>) attributes {dimension_semantics = [#tpu.dimension_semantics<arbitrary>], iteration_bounds = array<i64: 1>, scalar_prefetch = 0 : i64, scratch_operands = 0 : i64, tpu.core_type = #tpu.core_type<tc>, window_params = [{pipeline_mode = #tpu.pipeline_mode<synchronous>, transform_indices = @transform_0, window_bounds = array<i64: 128, 196>}, {pipeline_mode = #tpu.pipeline_mode<synchronous>, transform_indices = @transform_1, window_bounds = array<i64: 196, 16>}, {pipeline_mode = #tpu.pipeline_mode<synchronous>, transform_indices = @transform_2, window_bounds = array<i64: 1, 16>}, {pipeline_mode = #tpu.pipeline_mode<synchronous>, transform_indices = @transform_3, window_bounds = array<i64: 9, 32, 128>}, {pipeline_mode = #tpu.pipeline_mode<synchronous>, transform_indices = @transform_4, window_bounds = array<i64: 16, 16>}, {pipeline_mode = #tpu.pipeline_mode<synchronous>, transform_indices = @transform_5, window_bounds = array<i64: 1, 16>}, {pipeline_mode = #tpu.pipeline_mode<synchronous>, transform_indices = @transform_6, window_bounds = array<i64: 9, 32, 32>}, {pipeline_mode = #tpu.pipeline_mode<synchronous>, transform_indices = @transform_7, window_bounds = array<i64: 9, 16, 16>}, {pipeline_mode = #tpu.pipeline_mode<synchronous>, transform_indices = @transform_8, window_bounds = array<i64: 1, 16>}, {pipeline_mode = #tpu.pipeline_mode<synchronous>, transform_indices = @transform_9, window_bounds = array<i64: 16, 64>}, {pipeline_mode = #tpu.pipeline_mode<synchronous>, transform_indices = @transform_10, window_bounds = array<i64: 1, 64>}, {pipeline_mode = #tpu.pipeline_mode<synchronous>, transform_indices = @transform_11, window_bounds = array<i64: 16, 64>}, {pipeline_mode = #tpu.pipeline_mode<synchronous>, transform_indices = @transform_12, window_bounds = array<i64: 1, 64>}, {pipeline_mode = #tpu.pipeline_mode<synchronous>, transform_indices = @transform_13, window_bounds = array<i64: 64, 32>}, {pipeline_mode = #tpu.pipeline_mode<synchronous>, transform_indices = @transform_14, window_bounds = array<i64: 1, 32>}, {pipeline_mode = #tpu.pipeline_mode<synchronous>, transform_indices = @transform_15, window_bounds = array<i64: 9, 8, 32>}, {pipeline_mode = #tpu.pipeline_mode<synchronous>, transform_indices = @transform_16, window_bounds = array<i64: 9, 32, 32>}, {pipeline_mode = #tpu.pipeline_mode<synchronous>, transform_indices = @transform_17, window_bounds = array<i64: 1, 32>}, {pipeline_mode = #tpu.pipeline_mode<synchronous>, transform_indices = @transform_18, window_bounds = array<i64: 32, 128>}, {pipeline_mode = #tpu.pipeline_mode<synchronous>, transform_indices = @transform_19, window_bounds = array<i64: 1, 128>}, {pipeline_mode = #tpu.pipeline_mode<synchronous>, transform_indices = @transform_20, window_bounds = array<i64: 8, 32>}, {pipeline_mode = #tpu.pipeline_mode<synchronous>, transform_indices = @transform_21, window_bounds = array<i64: 64, 128>}, {pipeline_mode = #tpu.pipeline_mode<synchronous>, transform_indices = @transform_22, window_bounds = array<i64: 1, 128>}, {pipeline_mode = #tpu.pipeline_mode<synchronous>, transform_indices = @transform_23, window_bounds = array<i64: 2, 8>}, {pipeline_mode = #tpu.pipeline_mode<synchronous>, transform_indices = @transform_24, window_bounds = array<i64: 2, 128>}]} {
    %c0 = arith.constant 0 : index
    %c0_0 = arith.constant 0 : index
    %0 = vector.load %arg1[%c0, %c0_0] : memref<128x196xf32, #tpu.memory_space<vmem>>, vector<128x196xf32>
    %c0_1 = arith.constant 0 : index
    %c0_2 = arith.constant 0 : index
    %1 = vector.load %arg2[%c0_1, %c0_2] : memref<196x16xf32, #tpu.memory_space<vmem>>, vector<196x16xf32>
    %cst = arith.constant dense<0.000000e+00> : vector<128x16xf32>
    %2 = tpu.matmul %0, %1, %cst {dimension_numbers = #tpu.dot_dimension_numbers<[1], [0], [0], [1], [0, 0, 1, 1], [], []>} : vector<128x196xf32>, vector<196x16xf32>, vector<128x16xf32> -> vector<128x16xf32>
    %c0_3 = arith.constant 0 : index
    %c0_4 = arith.constant 0 : index
    %3 = vector.load %arg3[%c0_3, %c0_4] : memref<1x16xf32, #tpu.memory_space<vmem>>, vector<1x16xf32>
    %4 = vector.broadcast %3 : vector<1x16xf32> to vector<128x16xf32>
    %5 = arith.addf %2, %4 : vector<128x16xf32>
    %cst_5 = arith.constant 0.000000e+00 : f32
    %6 = vector.broadcast %cst_5 : f32 to vector<128x16xf32>
    %7 = arith.maximumf %5, %6 : vector<128x16xf32>
    %c0_6 = arith.constant 0 : index
    %c0_7 = arith.constant 0 : index
    %c0_8 = arith.constant 0 : index
    %8 = vector.load %arg4[%c0_6, %c0_7, %c0_8] : memref<9x32x128xf32, #tpu.memory_space<vmem>>, vector<1x32x128xf32>
    %9 = vector.shape_cast %8 : vector<1x32x128xf32> to vector<32x128xf32>
    %cst_9 = arith.constant dense<0.000000e+00> : vector<32x16xf32>
    %10 = tpu.matmul %9, %7, %cst_9 {dimension_numbers = #tpu.dot_dimension_numbers<[1], [0], [0], [1], [0, 0, 1, 1], [], []>} : vector<32x128xf32>, vector<128x16xf32>, vector<32x16xf32> -> vector<32x16xf32>
    %c1 = arith.constant 1 : index
    %c0_10 = arith.constant 0 : index
    %c0_11 = arith.constant 0 : index
    %11 = vector.load %arg4[%c1, %c0_10, %c0_11] : memref<9x32x128xf32, #tpu.memory_space<vmem>>, vector<1x32x128xf32>
    %12 = vector.shape_cast %11 : vector<1x32x128xf32> to vector<32x128xf32>
    %cst_12 = arith.constant dense<0.000000e+00> : vector<32x16xf32>
    %13 = tpu.matmul %12, %7, %cst_12 {dimension_numbers = #tpu.dot_dimension_numbers<[1], [0], [0], [1], [0, 0, 1, 1], [], []>} : vector<32x128xf32>, vector<128x16xf32>, vector<32x16xf32> -> vector<32x16xf32>
    %14 = arith.maximumf %10, %13 : vector<32x16xf32>
    %c2 = arith.constant 2 : index
    %c0_13 = arith.constant 0 : index
    %c0_14 = arith.constant 0 : index
    %15 = vector.load %arg4[%c2, %c0_13, %c0_14] : memref<9x32x128xf32, #tpu.memory_space<vmem>>, vector<1x32x128xf32>
    %16 = vector.shape_cast %15 : vector<1x32x128xf32> to vector<32x128xf32>
    %cst_15 = arith.constant dense<0.000000e+00> : vector<32x16xf32>
    %17 = tpu.matmul %16, %7, %cst_15 {dimension_numbers = #tpu.dot_dimension_numbers<[1], [0], [0], [1], [0, 0, 1, 1], [], []>} : vector<32x128xf32>, vector<128x16xf32>, vector<32x16xf32> -> vector<32x16xf32>
    %18 = arith.maximumf %14, %17 : vector<32x16xf32>
    %c3 = arith.constant 3 : index
    %c0_16 = arith.constant 0 : index
    %c0_17 = arith.constant 0 : index
    %19 = vector.load %arg4[%c3, %c0_16, %c0_17] : memref<9x32x128xf32, #tpu.memory_space<vmem>>, vector<1x32x128xf32>
    %20 = vector.shape_cast %19 : vector<1x32x128xf32> to vector<32x128xf32>
    %cst_18 = arith.constant dense<0.000000e+00> : vector<32x16xf32>
    %21 = tpu.matmul %20, %7, %cst_18 {dimension_numbers = #tpu.dot_dimension_numbers<[1], [0], [0], [1], [0, 0, 1, 1], [], []>} : vector<32x128xf32>, vector<128x16xf32>, vector<32x16xf32> -> vector<32x16xf32>
    %22 = arith.maximumf %18, %21 : vector<32x16xf32>
    %c4 = arith.constant 4 : index
    %c0_19 = arith.constant 0 : index
    %c0_20 = arith.constant 0 : index
    %23 = vector.load %arg4[%c4, %c0_19, %c0_20] : memref<9x32x128xf32, #tpu.memory_space<vmem>>, vector<1x32x128xf32>
    %24 = vector.shape_cast %23 : vector<1x32x128xf32> to vector<32x128xf32>
    %cst_21 = arith.constant dense<0.000000e+00> : vector<32x16xf32>
    %25 = tpu.matmul %24, %7, %cst_21 {dimension_numbers = #tpu.dot_dimension_numbers<[1], [0], [0], [1], [0, 0, 1, 1], [], []>} : vector<32x128xf32>, vector<128x16xf32>, vector<32x16xf32> -> vector<32x16xf32>
    %26 = arith.maximumf %22, %25 : vector<32x16xf32>
    %c5 = arith.constant 5 : index
    %c0_22 = arith.constant 0 : index
    %c0_23 = arith.constant 0 : index
    %27 = vector.load %arg4[%c5, %c0_22, %c0_23] : memref<9x32x128xf32, #tpu.memory_space<vmem>>, vector<1x32x128xf32>
    %28 = vector.shape_cast %27 : vector<1x32x128xf32> to vector<32x128xf32>
    %cst_24 = arith.constant dense<0.000000e+00> : vector<32x16xf32>
    %29 = tpu.matmul %28, %7, %cst_24 {dimension_numbers = #tpu.dot_dimension_numbers<[1], [0], [0], [1], [0, 0, 1, 1], [], []>} : vector<32x128xf32>, vector<128x16xf32>, vector<32x16xf32> -> vector<32x16xf32>
    %30 = arith.maximumf %26, %29 : vector<32x16xf32>
    %c6 = arith.constant 6 : index
    %c0_25 = arith.constant 0 : index
    %c0_26 = arith.constant 0 : index
    %31 = vector.load %arg4[%c6, %c0_25, %c0_26] : memref<9x32x128xf32, #tpu.memory_space<vmem>>, vector<1x32x128xf32>
    %32 = vector.shape_cast %31 : vector<1x32x128xf32> to vector<32x128xf32>
    %cst_27 = arith.constant dense<0.000000e+00> : vector<32x16xf32>
    %33 = tpu.matmul %32, %7, %cst_27 {dimension_numbers = #tpu.dot_dimension_numbers<[1], [0], [0], [1], [0, 0, 1, 1], [], []>} : vector<32x128xf32>, vector<128x16xf32>, vector<32x16xf32> -> vector<32x16xf32>
    %34 = arith.maximumf %30, %33 : vector<32x16xf32>
    %c7 = arith.constant 7 : index
    %c0_28 = arith.constant 0 : index
    %c0_29 = arith.constant 0 : index
    %35 = vector.load %arg4[%c7, %c0_28, %c0_29] : memref<9x32x128xf32, #tpu.memory_space<vmem>>, vector<1x32x128xf32>
    %36 = vector.shape_cast %35 : vector<1x32x128xf32> to vector<32x128xf32>
    %cst_30 = arith.constant dense<0.000000e+00> : vector<32x16xf32>
    %37 = tpu.matmul %36, %7, %cst_30 {dimension_numbers = #tpu.dot_dimension_numbers<[1], [0], [0], [1], [0, 0, 1, 1], [], []>} : vector<32x128xf32>, vector<128x16xf32>, vector<32x16xf32> -> vector<32x16xf32>
    %38 = arith.maximumf %34, %37 : vector<32x16xf32>
    %c8 = arith.constant 8 : index
    %c0_31 = arith.constant 0 : index
    %c0_32 = arith.constant 0 : index
    %39 = vector.load %arg4[%c8, %c0_31, %c0_32] : memref<9x32x128xf32, #tpu.memory_space<vmem>>, vector<1x32x128xf32>
    %40 = vector.shape_cast %39 : vector<1x32x128xf32> to vector<32x128xf32>
    %cst_33 = arith.constant dense<0.000000e+00> : vector<32x16xf32>
    %41 = tpu.matmul %40, %7, %cst_33 {dimension_numbers = #tpu.dot_dimension_numbers<[1], [0], [0], [1], [0, 0, 1, 1], [], []>} : vector<32x128xf32>, vector<128x16xf32>, vector<32x16xf32> -> vector<32x16xf32>
    %42 = arith.maximumf %38, %41 : vector<32x16xf32>
    %c0_34 = arith.constant 0 : index
    %c0_35 = arith.constant 0 : index
    %43 = vector.load %arg5[%c0_34, %c0_35] : memref<16x16xf32, #tpu.memory_space<vmem>>, vector<16x16xf32>
    %cst_36 = arith.constant dense<0.000000e+00> : vector<32x16xf32>
    %44 = tpu.matmul %42, %43, %cst_36 {dimension_numbers = #tpu.dot_dimension_numbers<[1], [0], [0], [1], [0, 0, 1, 1], [], []>} : vector<32x16xf32>, vector<16x16xf32>, vector<32x16xf32> -> vector<32x16xf32>
    %c0_37 = arith.constant 0 : index
    %c0_38 = arith.constant 0 : index
    %45 = vector.load %arg6[%c0_37, %c0_38] : memref<1x16xf32, #tpu.memory_space<vmem>>, vector<1x16xf32>
    %46 = vector.broadcast %45 : vector<1x16xf32> to vector<32x16xf32>
    %47 = arith.addf %44, %46 : vector<32x16xf32>
    %cst_39 = arith.constant 0.000000e+00 : f32
    %48 = vector.broadcast %cst_39 : f32 to vector<32x16xf32>
    %49 = arith.maximumf %47, %48 : vector<32x16xf32>
    %c0_40 = arith.constant 0 : index
    %c0_41 = arith.constant 0 : index
    %c0_42 = arith.constant 0 : index
    %50 = vector.load %arg7[%c0_40, %c0_41, %c0_42] : memref<9x32x32xf32, #tpu.memory_space<vmem>>, vector<1x32x32xf32>
    %51 = vector.shape_cast %50 : vector<1x32x32xf32> to vector<32x32xf32>
    %cst_43 = arith.constant dense<0.000000e+00> : vector<32x16xf32>
    %52 = tpu.matmul %51, %49, %cst_43 {dimension_numbers = #tpu.dot_dimension_numbers<[1], [0], [0], [1], [0, 0, 1, 1], [], []>} : vector<32x32xf32>, vector<32x16xf32>, vector<32x16xf32> -> vector<32x16xf32>
    %c0_44 = arith.constant 0 : index
    %c0_45 = arith.constant 0 : index
    %c0_46 = arith.constant 0 : index
    %53 = vector.load %arg8[%c0_44, %c0_45, %c0_46] : memref<9x16x16xf32, #tpu.memory_space<vmem>>, vector<1x16x16xf32>
    %54 = vector.shape_cast %53 : vector<1x16x16xf32> to vector<16x16xf32>
    %cst_47 = arith.constant dense<0.000000e+00> : vector<32x16xf32>
    %55 = tpu.matmul %52, %54, %cst_47 {dimension_numbers = #tpu.dot_dimension_numbers<[1], [0], [0], [1], [0, 0, 1, 1], [], []>} : vector<32x16xf32>, vector<16x16xf32>, vector<32x16xf32> -> vector<32x16xf32>
    %c1_48 = arith.constant 1 : index
    %c0_49 = arith.constant 0 : index
    %c0_50 = arith.constant 0 : index
    %56 = vector.load %arg7[%c1_48, %c0_49, %c0_50] : memref<9x32x32xf32, #tpu.memory_space<vmem>>, vector<1x32x32xf32>
    %57 = vector.shape_cast %56 : vector<1x32x32xf32> to vector<32x32xf32>
    %cst_51 = arith.constant dense<0.000000e+00> : vector<32x16xf32>
    %58 = tpu.matmul %57, %49, %cst_51 {dimension_numbers = #tpu.dot_dimension_numbers<[1], [0], [0], [1], [0, 0, 1, 1], [], []>} : vector<32x32xf32>, vector<32x16xf32>, vector<32x16xf32> -> vector<32x16xf32>
    %c1_52 = arith.constant 1 : index
    %c0_53 = arith.constant 0 : index
    %c0_54 = arith.constant 0 : index
    %59 = vector.load %arg8[%c1_52, %c0_53, %c0_54] : memref<9x16x16xf32, #tpu.memory_space<vmem>>, vector<1x16x16xf32>
    %60 = vector.shape_cast %59 : vector<1x16x16xf32> to vector<16x16xf32>
    %cst_55 = arith.constant dense<0.000000e+00> : vector<32x16xf32>
    %61 = tpu.matmul %58, %60, %cst_55 {dimension_numbers = #tpu.dot_dimension_numbers<[1], [0], [0], [1], [0, 0, 1, 1], [], []>} : vector<32x16xf32>, vector<16x16xf32>, vector<32x16xf32> -> vector<32x16xf32>
    %62 = arith.addf %55, %61 : vector<32x16xf32>
    %c2_56 = arith.constant 2 : index
    %c0_57 = arith.constant 0 : index
    %c0_58 = arith.constant 0 : index
    %63 = vector.load %arg7[%c2_56, %c0_57, %c0_58] : memref<9x32x32xf32, #tpu.memory_space<vmem>>, vector<1x32x32xf32>
    %64 = vector.shape_cast %63 : vector<1x32x32xf32> to vector<32x32xf32>
    %cst_59 = arith.constant dense<0.000000e+00> : vector<32x16xf32>
    %65 = tpu.matmul %64, %49, %cst_59 {dimension_numbers = #tpu.dot_dimension_numbers<[1], [0], [0], [1], [0, 0, 1, 1], [], []>} : vector<32x32xf32>, vector<32x16xf32>, vector<32x16xf32> -> vector<32x16xf32>
    %c2_60 = arith.constant 2 : index
    %c0_61 = arith.constant 0 : index
    %c0_62 = arith.constant 0 : index
    %66 = vector.load %arg8[%c2_60, %c0_61, %c0_62] : memref<9x16x16xf32, #tpu.memory_space<vmem>>, vector<1x16x16xf32>
    %67 = vector.shape_cast %66 : vector<1x16x16xf32> to vector<16x16xf32>
    %cst_63 = arith.constant dense<0.000000e+00> : vector<32x16xf32>
    %68 = tpu.matmul %65, %67, %cst_63 {dimension_numbers = #tpu.dot_dimension_numbers<[1], [0], [0], [1], [0, 0, 1, 1], [], []>} : vector<32x16xf32>, vector<16x16xf32>, vector<32x16xf32> -> vector<32x16xf32>
    %69 = arith.addf %62, %68 : vector<32x16xf32>
    %c3_64 = arith.constant 3 : index
    %c0_65 = arith.constant 0 : index
    %c0_66 = arith.constant 0 : index
    %70 = vector.load %arg7[%c3_64, %c0_65, %c0_66] : memref<9x32x32xf32, #tpu.memory_space<vmem>>, vector<1x32x32xf32>
    %71 = vector.shape_cast %70 : vector<1x32x32xf32> to vector<32x32xf32>
    %cst_67 = arith.constant dense<0.000000e+00> : vector<32x16xf32>
    %72 = tpu.matmul %71, %49, %cst_67 {dimension_numbers = #tpu.dot_dimension_numbers<[1], [0], [0], [1], [0, 0, 1, 1], [], []>} : vector<32x32xf32>, vector<32x16xf32>, vector<32x16xf32> -> vector<32x16xf32>
    %c3_68 = arith.constant 3 : index
    %c0_69 = arith.constant 0 : index
    %c0_70 = arith.constant 0 : index
    %73 = vector.load %arg8[%c3_68, %c0_69, %c0_70] : memref<9x16x16xf32, #tpu.memory_space<vmem>>, vector<1x16x16xf32>
    %74 = vector.shape_cast %73 : vector<1x16x16xf32> to vector<16x16xf32>
    %cst_71 = arith.constant dense<0.000000e+00> : vector<32x16xf32>
    %75 = tpu.matmul %72, %74, %cst_71 {dimension_numbers = #tpu.dot_dimension_numbers<[1], [0], [0], [1], [0, 0, 1, 1], [], []>} : vector<32x16xf32>, vector<16x16xf32>, vector<32x16xf32> -> vector<32x16xf32>
    %76 = arith.addf %69, %75 : vector<32x16xf32>
    %c4_72 = arith.constant 4 : index
    %c0_73 = arith.constant 0 : index
    %c0_74 = arith.constant 0 : index
    %77 = vector.load %arg7[%c4_72, %c0_73, %c0_74] : memref<9x32x32xf32, #tpu.memory_space<vmem>>, vector<1x32x32xf32>
    %78 = vector.shape_cast %77 : vector<1x32x32xf32> to vector<32x32xf32>
    %cst_75 = arith.constant dense<0.000000e+00> : vector<32x16xf32>
    %79 = tpu.matmul %78, %49, %cst_75 {dimension_numbers = #tpu.dot_dimension_numbers<[1], [0], [0], [1], [0, 0, 1, 1], [], []>} : vector<32x32xf32>, vector<32x16xf32>, vector<32x16xf32> -> vector<32x16xf32>
    %c4_76 = arith.constant 4 : index
    %c0_77 = arith.constant 0 : index
    %c0_78 = arith.constant 0 : index
    %80 = vector.load %arg8[%c4_76, %c0_77, %c0_78] : memref<9x16x16xf32, #tpu.memory_space<vmem>>, vector<1x16x16xf32>
    %81 = vector.shape_cast %80 : vector<1x16x16xf32> to vector<16x16xf32>
    %cst_79 = arith.constant dense<0.000000e+00> : vector<32x16xf32>
    %82 = tpu.matmul %79, %81, %cst_79 {dimension_numbers = #tpu.dot_dimension_numbers<[1], [0], [0], [1], [0, 0, 1, 1], [], []>} : vector<32x16xf32>, vector<16x16xf32>, vector<32x16xf32> -> vector<32x16xf32>
    %83 = arith.addf %76, %82 : vector<32x16xf32>
    %c5_80 = arith.constant 5 : index
    %c0_81 = arith.constant 0 : index
    %c0_82 = arith.constant 0 : index
    %84 = vector.load %arg7[%c5_80, %c0_81, %c0_82] : memref<9x32x32xf32, #tpu.memory_space<vmem>>, vector<1x32x32xf32>
    %85 = vector.shape_cast %84 : vector<1x32x32xf32> to vector<32x32xf32>
    %cst_83 = arith.constant dense<0.000000e+00> : vector<32x16xf32>
    %86 = tpu.matmul %85, %49, %cst_83 {dimension_numbers = #tpu.dot_dimension_numbers<[1], [0], [0], [1], [0, 0, 1, 1], [], []>} : vector<32x32xf32>, vector<32x16xf32>, vector<32x16xf32> -> vector<32x16xf32>
    %c5_84 = arith.constant 5 : index
    %c0_85 = arith.constant 0 : index
    %c0_86 = arith.constant 0 : index
    %87 = vector.load %arg8[%c5_84, %c0_85, %c0_86] : memref<9x16x16xf32, #tpu.memory_space<vmem>>, vector<1x16x16xf32>
    %88 = vector.shape_cast %87 : vector<1x16x16xf32> to vector<16x16xf32>
    %cst_87 = arith.constant dense<0.000000e+00> : vector<32x16xf32>
    %89 = tpu.matmul %86, %88, %cst_87 {dimension_numbers = #tpu.dot_dimension_numbers<[1], [0], [0], [1], [0, 0, 1, 1], [], []>} : vector<32x16xf32>, vector<16x16xf32>, vector<32x16xf32> -> vector<32x16xf32>
    %90 = arith.addf %83, %89 : vector<32x16xf32>
    %c6_88 = arith.constant 6 : index
    %c0_89 = arith.constant 0 : index
    %c0_90 = arith.constant 0 : index
    %91 = vector.load %arg7[%c6_88, %c0_89, %c0_90] : memref<9x32x32xf32, #tpu.memory_space<vmem>>, vector<1x32x32xf32>
    %92 = vector.shape_cast %91 : vector<1x32x32xf32> to vector<32x32xf32>
    %cst_91 = arith.constant dense<0.000000e+00> : vector<32x16xf32>
    %93 = tpu.matmul %92, %49, %cst_91 {dimension_numbers = #tpu.dot_dimension_numbers<[1], [0], [0], [1], [0, 0, 1, 1], [], []>} : vector<32x32xf32>, vector<32x16xf32>, vector<32x16xf32> -> vector<32x16xf32>
    %c6_92 = arith.constant 6 : index
    %c0_93 = arith.constant 0 : index
    %c0_94 = arith.constant 0 : index
    %94 = vector.load %arg8[%c6_92, %c0_93, %c0_94] : memref<9x16x16xf32, #tpu.memory_space<vmem>>, vector<1x16x16xf32>
    %95 = vector.shape_cast %94 : vector<1x16x16xf32> to vector<16x16xf32>
    %cst_95 = arith.constant dense<0.000000e+00> : vector<32x16xf32>
    %96 = tpu.matmul %93, %95, %cst_95 {dimension_numbers = #tpu.dot_dimension_numbers<[1], [0], [0], [1], [0, 0, 1, 1], [], []>} : vector<32x16xf32>, vector<16x16xf32>, vector<32x16xf32> -> vector<32x16xf32>
    %97 = arith.addf %90, %96 : vector<32x16xf32>
    %c7_96 = arith.constant 7 : index
    %c0_97 = arith.constant 0 : index
    %c0_98 = arith.constant 0 : index
    %98 = vector.load %arg7[%c7_96, %c0_97, %c0_98] : memref<9x32x32xf32, #tpu.memory_space<vmem>>, vector<1x32x32xf32>
    %99 = vector.shape_cast %98 : vector<1x32x32xf32> to vector<32x32xf32>
    %cst_99 = arith.constant dense<0.000000e+00> : vector<32x16xf32>
    %100 = tpu.matmul %99, %49, %cst_99 {dimension_numbers = #tpu.dot_dimension_numbers<[1], [0], [0], [1], [0, 0, 1, 1], [], []>} : vector<32x32xf32>, vector<32x16xf32>, vector<32x16xf32> -> vector<32x16xf32>
    %c7_100 = arith.constant 7 : index
    %c0_101 = arith.constant 0 : index
    %c0_102 = arith.constant 0 : index
    %101 = vector.load %arg8[%c7_100, %c0_101, %c0_102] : memref<9x16x16xf32, #tpu.memory_space<vmem>>, vector<1x16x16xf32>
    %102 = vector.shape_cast %101 : vector<1x16x16xf32> to vector<16x16xf32>
    %cst_103 = arith.constant dense<0.000000e+00> : vector<32x16xf32>
    %103 = tpu.matmul %100, %102, %cst_103 {dimension_numbers = #tpu.dot_dimension_numbers<[1], [0], [0], [1], [0, 0, 1, 1], [], []>} : vector<32x16xf32>, vector<16x16xf32>, vector<32x16xf32> -> vector<32x16xf32>
    %104 = arith.addf %97, %103 : vector<32x16xf32>
    %c8_104 = arith.constant 8 : index
    %c0_105 = arith.constant 0 : index
    %c0_106 = arith.constant 0 : index
    %105 = vector.load %arg7[%c8_104, %c0_105, %c0_106] : memref<9x32x32xf32, #tpu.memory_space<vmem>>, vector<1x32x32xf32>
    %106 = vector.shape_cast %105 : vector<1x32x32xf32> to vector<32x32xf32>
    %cst_107 = arith.constant dense<0.000000e+00> : vector<32x16xf32>
    %107 = tpu.matmul %106, %49, %cst_107 {dimension_numbers = #tpu.dot_dimension_numbers<[1], [0], [0], [1], [0, 0, 1, 1], [], []>} : vector<32x32xf32>, vector<32x16xf32>, vector<32x16xf32> -> vector<32x16xf32>
    %c8_108 = arith.constant 8 : index
    %c0_109 = arith.constant 0 : index
    %c0_110 = arith.constant 0 : index
    %108 = vector.load %arg8[%c8_108, %c0_109, %c0_110] : memref<9x16x16xf32, #tpu.memory_space<vmem>>, vector<1x16x16xf32>
    %109 = vector.shape_cast %108 : vector<1x16x16xf32> to vector<16x16xf32>
    %cst_111 = arith.constant dense<0.000000e+00> : vector<32x16xf32>
    %110 = tpu.matmul %107, %109, %cst_111 {dimension_numbers = #tpu.dot_dimension_numbers<[1], [0], [0], [1], [0, 0, 1, 1], [], []>} : vector<32x16xf32>, vector<16x16xf32>, vector<32x16xf32> -> vector<32x16xf32>
    %111 = arith.addf %104, %110 : vector<32x16xf32>
    %c0_112 = arith.constant 0 : index
    %c0_113 = arith.constant 0 : index
    %112 = vector.load %arg9[%c0_112, %c0_113] : memref<1x16xf32, #tpu.memory_space<vmem>>, vector<1x16xf32>
    %113 = vector.broadcast %112 : vector<1x16xf32> to vector<32x16xf32>
    %114 = arith.addf %111, %113 : vector<32x16xf32>
    %cst_114 = arith.constant 0.000000e+00 : f32
    %115 = vector.broadcast %cst_114 : f32 to vector<32x16xf32>
    %116 = arith.maximumf %114, %115 : vector<32x16xf32>
    %c0_115 = arith.constant 0 : index
    %c0_116 = arith.constant 0 : index
    %117 = vector.load %arg10[%c0_115, %c0_116] : memref<16x64xf32, #tpu.memory_space<vmem>>, vector<16x64xf32>
    %cst_117 = arith.constant dense<0.000000e+00> : vector<32x64xf32>
    %118 = tpu.matmul %116, %117, %cst_117 {dimension_numbers = #tpu.dot_dimension_numbers<[1], [0], [0], [1], [0, 0, 1, 1], [], []>} : vector<32x16xf32>, vector<16x64xf32>, vector<32x64xf32> -> vector<32x64xf32>
    %c0_118 = arith.constant 0 : index
    %c0_119 = arith.constant 0 : index
    %119 = vector.load %arg11[%c0_118, %c0_119] : memref<1x64xf32, #tpu.memory_space<vmem>>, vector<1x64xf32>
    %120 = vector.broadcast %119 : vector<1x64xf32> to vector<32x64xf32>
    %121 = arith.addf %118, %120 : vector<32x64xf32>
    %c0_120 = arith.constant 0 : index
    %c0_121 = arith.constant 0 : index
    %122 = vector.load %arg12[%c0_120, %c0_121] : memref<16x64xf32, #tpu.memory_space<vmem>>, vector<16x64xf32>
    %cst_122 = arith.constant dense<0.000000e+00> : vector<32x64xf32>
    %123 = tpu.matmul %42, %122, %cst_122 {dimension_numbers = #tpu.dot_dimension_numbers<[1], [0], [0], [1], [0, 0, 1, 1], [], []>} : vector<32x16xf32>, vector<16x64xf32>, vector<32x64xf32> -> vector<32x64xf32>
    %c0_123 = arith.constant 0 : index
    %c0_124 = arith.constant 0 : index
    %124 = vector.load %arg13[%c0_123, %c0_124] : memref<1x64xf32, #tpu.memory_space<vmem>>, vector<1x64xf32>
    %125 = vector.broadcast %124 : vector<1x64xf32> to vector<32x64xf32>
    %126 = arith.addf %123, %125 : vector<32x64xf32>
    %127 = arith.addf %121, %126 : vector<32x64xf32>
    %cst_125 = arith.constant 0.000000e+00 : f32
    %128 = vector.broadcast %cst_125 : f32 to vector<32x64xf32>
    %129 = arith.maximumf %127, %128 : vector<32x64xf32>
    %c0_126 = arith.constant 0 : index
    %c0_127 = arith.constant 0 : index
    %130 = vector.load %arg14[%c0_126, %c0_127] : memref<64x32xf32, #tpu.memory_space<vmem>>, vector<64x32xf32>
    %cst_128 = arith.constant dense<0.000000e+00> : vector<32x32xf32>
    %131 = tpu.matmul %129, %130, %cst_128 {dimension_numbers = #tpu.dot_dimension_numbers<[1], [0], [0], [1], [0, 0, 1, 1], [], []>} : vector<32x64xf32>, vector<64x32xf32>, vector<32x32xf32> -> vector<32x32xf32>
    %c0_129 = arith.constant 0 : index
    %c0_130 = arith.constant 0 : index
    %132 = vector.load %arg15[%c0_129, %c0_130] : memref<1x32xf32, #tpu.memory_space<vmem>>, vector<1x32xf32>
    %133 = vector.broadcast %132 : vector<1x32xf32> to vector<32x32xf32>
    %134 = arith.addf %131, %133 : vector<32x32xf32>
    %cst_131 = arith.constant 0.000000e+00 : f32
    %135 = vector.broadcast %cst_131 : f32 to vector<32x32xf32>
    %136 = arith.maximumf %134, %135 : vector<32x32xf32>
    %c0_132 = arith.constant 0 : index
    %c0_133 = arith.constant 0 : index
    %c0_134 = arith.constant 0 : index
    %137 = vector.load %arg16[%c0_132, %c0_133, %c0_134] : memref<9x8x32xf32, #tpu.memory_space<vmem>>, vector<1x8x32xf32>
    %138 = vector.shape_cast %137 : vector<1x8x32xf32> to vector<8x32xf32>
    %cst_135 = arith.constant dense<0.000000e+00> : vector<8x32xf32>
    %139 = tpu.matmul %138, %136, %cst_135 {dimension_numbers = #tpu.dot_dimension_numbers<[1], [0], [0], [1], [0, 0, 1, 1], [], []>} : vector<8x32xf32>, vector<32x32xf32>, vector<8x32xf32> -> vector<8x32xf32>
    %c0_136 = arith.constant 0 : index
    %c0_137 = arith.constant 0 : index
    %c0_138 = arith.constant 0 : index
    %140 = vector.load %arg17[%c0_136, %c0_137, %c0_138] : memref<9x32x32xf32, #tpu.memory_space<vmem>>, vector<1x32x32xf32>
    %141 = vector.shape_cast %140 : vector<1x32x32xf32> to vector<32x32xf32>
    %cst_139 = arith.constant dense<0.000000e+00> : vector<8x32xf32>
    %142 = tpu.matmul %139, %141, %cst_139 {dimension_numbers = #tpu.dot_dimension_numbers<[1], [0], [0], [1], [0, 0, 1, 1], [], []>} : vector<8x32xf32>, vector<32x32xf32>, vector<8x32xf32> -> vector<8x32xf32>
    %c1_140 = arith.constant 1 : index
    %c0_141 = arith.constant 0 : index
    %c0_142 = arith.constant 0 : index
    %143 = vector.load %arg16[%c1_140, %c0_141, %c0_142] : memref<9x8x32xf32, #tpu.memory_space<vmem>>, vector<1x8x32xf32>
    %144 = vector.shape_cast %143 : vector<1x8x32xf32> to vector<8x32xf32>
    %cst_143 = arith.constant dense<0.000000e+00> : vector<8x32xf32>
    %145 = tpu.matmul %144, %136, %cst_143 {dimension_numbers = #tpu.dot_dimension_numbers<[1], [0], [0], [1], [0, 0, 1, 1], [], []>} : vector<8x32xf32>, vector<32x32xf32>, vector<8x32xf32> -> vector<8x32xf32>
    %c1_144 = arith.constant 1 : index
    %c0_145 = arith.constant 0 : index
    %c0_146 = arith.constant 0 : index
    %146 = vector.load %arg17[%c1_144, %c0_145, %c0_146] : memref<9x32x32xf32, #tpu.memory_space<vmem>>, vector<1x32x32xf32>
    %147 = vector.shape_cast %146 : vector<1x32x32xf32> to vector<32x32xf32>
    %cst_147 = arith.constant dense<0.000000e+00> : vector<8x32xf32>
    %148 = tpu.matmul %145, %147, %cst_147 {dimension_numbers = #tpu.dot_dimension_numbers<[1], [0], [0], [1], [0, 0, 1, 1], [], []>} : vector<8x32xf32>, vector<32x32xf32>, vector<8x32xf32> -> vector<8x32xf32>
    %149 = arith.addf %142, %148 : vector<8x32xf32>
    %c2_148 = arith.constant 2 : index
    %c0_149 = arith.constant 0 : index
    %c0_150 = arith.constant 0 : index
    %150 = vector.load %arg16[%c2_148, %c0_149, %c0_150] : memref<9x8x32xf32, #tpu.memory_space<vmem>>, vector<1x8x32xf32>
    %151 = vector.shape_cast %150 : vector<1x8x32xf32> to vector<8x32xf32>
    %cst_151 = arith.constant dense<0.000000e+00> : vector<8x32xf32>
    %152 = tpu.matmul %151, %136, %cst_151 {dimension_numbers = #tpu.dot_dimension_numbers<[1], [0], [0], [1], [0, 0, 1, 1], [], []>} : vector<8x32xf32>, vector<32x32xf32>, vector<8x32xf32> -> vector<8x32xf32>
    %c2_152 = arith.constant 2 : index
    %c0_153 = arith.constant 0 : index
    %c0_154 = arith.constant 0 : index
    %153 = vector.load %arg17[%c2_152, %c0_153, %c0_154] : memref<9x32x32xf32, #tpu.memory_space<vmem>>, vector<1x32x32xf32>
    %154 = vector.shape_cast %153 : vector<1x32x32xf32> to vector<32x32xf32>
    %cst_155 = arith.constant dense<0.000000e+00> : vector<8x32xf32>
    %155 = tpu.matmul %152, %154, %cst_155 {dimension_numbers = #tpu.dot_dimension_numbers<[1], [0], [0], [1], [0, 0, 1, 1], [], []>} : vector<8x32xf32>, vector<32x32xf32>, vector<8x32xf32> -> vector<8x32xf32>
    %156 = arith.addf %149, %155 : vector<8x32xf32>
    %c3_156 = arith.constant 3 : index
    %c0_157 = arith.constant 0 : index
    %c0_158 = arith.constant 0 : index
    %157 = vector.load %arg16[%c3_156, %c0_157, %c0_158] : memref<9x8x32xf32, #tpu.memory_space<vmem>>, vector<1x8x32xf32>
    %158 = vector.shape_cast %157 : vector<1x8x32xf32> to vector<8x32xf32>
    %cst_159 = arith.constant dense<0.000000e+00> : vector<8x32xf32>
    %159 = tpu.matmul %158, %136, %cst_159 {dimension_numbers = #tpu.dot_dimension_numbers<[1], [0], [0], [1], [0, 0, 1, 1], [], []>} : vector<8x32xf32>, vector<32x32xf32>, vector<8x32xf32> -> vector<8x32xf32>
    %c3_160 = arith.constant 3 : index
    %c0_161 = arith.constant 0 : index
    %c0_162 = arith.constant 0 : index
    %160 = vector.load %arg17[%c3_160, %c0_161, %c0_162] : memref<9x32x32xf32, #tpu.memory_space<vmem>>, vector<1x32x32xf32>
    %161 = vector.shape_cast %160 : vector<1x32x32xf32> to vector<32x32xf32>
    %cst_163 = arith.constant dense<0.000000e+00> : vector<8x32xf32>
    %162 = tpu.matmul %159, %161, %cst_163 {dimension_numbers = #tpu.dot_dimension_numbers<[1], [0], [0], [1], [0, 0, 1, 1], [], []>} : vector<8x32xf32>, vector<32x32xf32>, vector<8x32xf32> -> vector<8x32xf32>
    %163 = arith.addf %156, %162 : vector<8x32xf32>
    %c4_164 = arith.constant 4 : index
    %c0_165 = arith.constant 0 : index
    %c0_166 = arith.constant 0 : index
    %164 = vector.load %arg16[%c4_164, %c0_165, %c0_166] : memref<9x8x32xf32, #tpu.memory_space<vmem>>, vector<1x8x32xf32>
    %165 = vector.shape_cast %164 : vector<1x8x32xf32> to vector<8x32xf32>
    %cst_167 = arith.constant dense<0.000000e+00> : vector<8x32xf32>
    %166 = tpu.matmul %165, %136, %cst_167 {dimension_numbers = #tpu.dot_dimension_numbers<[1], [0], [0], [1], [0, 0, 1, 1], [], []>} : vector<8x32xf32>, vector<32x32xf32>, vector<8x32xf32> -> vector<8x32xf32>
    %c4_168 = arith.constant 4 : index
    %c0_169 = arith.constant 0 : index
    %c0_170 = arith.constant 0 : index
    %167 = vector.load %arg17[%c4_168, %c0_169, %c0_170] : memref<9x32x32xf32, #tpu.memory_space<vmem>>, vector<1x32x32xf32>
    %168 = vector.shape_cast %167 : vector<1x32x32xf32> to vector<32x32xf32>
    %cst_171 = arith.constant dense<0.000000e+00> : vector<8x32xf32>
    %169 = tpu.matmul %166, %168, %cst_171 {dimension_numbers = #tpu.dot_dimension_numbers<[1], [0], [0], [1], [0, 0, 1, 1], [], []>} : vector<8x32xf32>, vector<32x32xf32>, vector<8x32xf32> -> vector<8x32xf32>
    %170 = arith.addf %163, %169 : vector<8x32xf32>
    %c5_172 = arith.constant 5 : index
    %c0_173 = arith.constant 0 : index
    %c0_174 = arith.constant 0 : index
    %171 = vector.load %arg16[%c5_172, %c0_173, %c0_174] : memref<9x8x32xf32, #tpu.memory_space<vmem>>, vector<1x8x32xf32>
    %172 = vector.shape_cast %171 : vector<1x8x32xf32> to vector<8x32xf32>
    %cst_175 = arith.constant dense<0.000000e+00> : vector<8x32xf32>
    %173 = tpu.matmul %172, %136, %cst_175 {dimension_numbers = #tpu.dot_dimension_numbers<[1], [0], [0], [1], [0, 0, 1, 1], [], []>} : vector<8x32xf32>, vector<32x32xf32>, vector<8x32xf32> -> vector<8x32xf32>
    %c5_176 = arith.constant 5 : index
    %c0_177 = arith.constant 0 : index
    %c0_178 = arith.constant 0 : index
    %174 = vector.load %arg17[%c5_176, %c0_177, %c0_178] : memref<9x32x32xf32, #tpu.memory_space<vmem>>, vector<1x32x32xf32>
    %175 = vector.shape_cast %174 : vector<1x32x32xf32> to vector<32x32xf32>
    %cst_179 = arith.constant dense<0.000000e+00> : vector<8x32xf32>
    %176 = tpu.matmul %173, %175, %cst_179 {dimension_numbers = #tpu.dot_dimension_numbers<[1], [0], [0], [1], [0, 0, 1, 1], [], []>} : vector<8x32xf32>, vector<32x32xf32>, vector<8x32xf32> -> vector<8x32xf32>
    %177 = arith.addf %170, %176 : vector<8x32xf32>
    %c6_180 = arith.constant 6 : index
    %c0_181 = arith.constant 0 : index
    %c0_182 = arith.constant 0 : index
    %178 = vector.load %arg16[%c6_180, %c0_181, %c0_182] : memref<9x8x32xf32, #tpu.memory_space<vmem>>, vector<1x8x32xf32>
    %179 = vector.shape_cast %178 : vector<1x8x32xf32> to vector<8x32xf32>
    %cst_183 = arith.constant dense<0.000000e+00> : vector<8x32xf32>
    %180 = tpu.matmul %179, %136, %cst_183 {dimension_numbers = #tpu.dot_dimension_numbers<[1], [0], [0], [1], [0, 0, 1, 1], [], []>} : vector<8x32xf32>, vector<32x32xf32>, vector<8x32xf32> -> vector<8x32xf32>
    %c6_184 = arith.constant 6 : index
    %c0_185 = arith.constant 0 : index
    %c0_186 = arith.constant 0 : index
    %181 = vector.load %arg17[%c6_184, %c0_185, %c0_186] : memref<9x32x32xf32, #tpu.memory_space<vmem>>, vector<1x32x32xf32>
    %182 = vector.shape_cast %181 : vector<1x32x32xf32> to vector<32x32xf32>
    %cst_187 = arith.constant dense<0.000000e+00> : vector<8x32xf32>
    %183 = tpu.matmul %180, %182, %cst_187 {dimension_numbers = #tpu.dot_dimension_numbers<[1], [0], [0], [1], [0, 0, 1, 1], [], []>} : vector<8x32xf32>, vector<32x32xf32>, vector<8x32xf32> -> vector<8x32xf32>
    %184 = arith.addf %177, %183 : vector<8x32xf32>
    %c7_188 = arith.constant 7 : index
    %c0_189 = arith.constant 0 : index
    %c0_190 = arith.constant 0 : index
    %185 = vector.load %arg16[%c7_188, %c0_189, %c0_190] : memref<9x8x32xf32, #tpu.memory_space<vmem>>, vector<1x8x32xf32>
    %186 = vector.shape_cast %185 : vector<1x8x32xf32> to vector<8x32xf32>
    %cst_191 = arith.constant dense<0.000000e+00> : vector<8x32xf32>
    %187 = tpu.matmul %186, %136, %cst_191 {dimension_numbers = #tpu.dot_dimension_numbers<[1], [0], [0], [1], [0, 0, 1, 1], [], []>} : vector<8x32xf32>, vector<32x32xf32>, vector<8x32xf32> -> vector<8x32xf32>
    %c7_192 = arith.constant 7 : index
    %c0_193 = arith.constant 0 : index
    %c0_194 = arith.constant 0 : index
    %188 = vector.load %arg17[%c7_192, %c0_193, %c0_194] : memref<9x32x32xf32, #tpu.memory_space<vmem>>, vector<1x32x32xf32>
    %189 = vector.shape_cast %188 : vector<1x32x32xf32> to vector<32x32xf32>
    %cst_195 = arith.constant dense<0.000000e+00> : vector<8x32xf32>
    %190 = tpu.matmul %187, %189, %cst_195 {dimension_numbers = #tpu.dot_dimension_numbers<[1], [0], [0], [1], [0, 0, 1, 1], [], []>} : vector<8x32xf32>, vector<32x32xf32>, vector<8x32xf32> -> vector<8x32xf32>
    %191 = arith.addf %184, %190 : vector<8x32xf32>
    %c8_196 = arith.constant 8 : index
    %c0_197 = arith.constant 0 : index
    %c0_198 = arith.constant 0 : index
    %192 = vector.load %arg16[%c8_196, %c0_197, %c0_198] : memref<9x8x32xf32, #tpu.memory_space<vmem>>, vector<1x8x32xf32>
    %193 = vector.shape_cast %192 : vector<1x8x32xf32> to vector<8x32xf32>
    %cst_199 = arith.constant dense<0.000000e+00> : vector<8x32xf32>
    %194 = tpu.matmul %193, %136, %cst_199 {dimension_numbers = #tpu.dot_dimension_numbers<[1], [0], [0], [1], [0, 0, 1, 1], [], []>} : vector<8x32xf32>, vector<32x32xf32>, vector<8x32xf32> -> vector<8x32xf32>
    %c8_200 = arith.constant 8 : index
    %c0_201 = arith.constant 0 : index
    %c0_202 = arith.constant 0 : index
    %195 = vector.load %arg17[%c8_200, %c0_201, %c0_202] : memref<9x32x32xf32, #tpu.memory_space<vmem>>, vector<1x32x32xf32>
    %196 = vector.shape_cast %195 : vector<1x32x32xf32> to vector<32x32xf32>
    %cst_203 = arith.constant dense<0.000000e+00> : vector<8x32xf32>
    %197 = tpu.matmul %194, %196, %cst_203 {dimension_numbers = #tpu.dot_dimension_numbers<[1], [0], [0], [1], [0, 0, 1, 1], [], []>} : vector<8x32xf32>, vector<32x32xf32>, vector<8x32xf32> -> vector<8x32xf32>
    %198 = arith.addf %191, %197 : vector<8x32xf32>
    %c0_204 = arith.constant 0 : index
    %c0_205 = arith.constant 0 : index
    %199 = vector.load %arg18[%c0_204, %c0_205] : memref<1x32xf32, #tpu.memory_space<vmem>>, vector<1x32xf32>
    %200 = vector.broadcast %199 : vector<1x32xf32> to vector<8x32xf32>
    %201 = arith.addf %198, %200 : vector<8x32xf32>
    %cst_206 = arith.constant 0.000000e+00 : f32
    %202 = vector.broadcast %cst_206 : f32 to vector<8x32xf32>
    %203 = arith.maximumf %201, %202 : vector<8x32xf32>
    %c0_207 = arith.constant 0 : index
    %c0_208 = arith.constant 0 : index
    %204 = vector.load %arg19[%c0_207, %c0_208] : memref<32x128xf32, #tpu.memory_space<vmem>>, vector<32x128xf32>
    %cst_209 = arith.constant dense<0.000000e+00> : vector<8x128xf32>
    %205 = tpu.matmul %203, %204, %cst_209 {dimension_numbers = #tpu.dot_dimension_numbers<[1], [0], [0], [1], [0, 0, 1, 1], [], []>} : vector<8x32xf32>, vector<32x128xf32>, vector<8x128xf32> -> vector<8x128xf32>
    %c0_210 = arith.constant 0 : index
    %c0_211 = arith.constant 0 : index
    %206 = vector.load %arg20[%c0_210, %c0_211] : memref<1x128xf32, #tpu.memory_space<vmem>>, vector<1x128xf32>
    %207 = vector.broadcast %206 : vector<1x128xf32> to vector<8x128xf32>
    %208 = arith.addf %205, %207 : vector<8x128xf32>
    %c0_212 = arith.constant 0 : index
    %c0_213 = arith.constant 0 : index
    %209 = vector.load %arg21[%c0_212, %c0_213] : memref<8x32xf32, #tpu.memory_space<vmem>>, vector<8x32xf32>
    %cst_214 = arith.constant dense<0.000000e+00> : vector<8x64xf32>
    %210 = tpu.matmul %209, %129, %cst_214 {dimension_numbers = #tpu.dot_dimension_numbers<[1], [0], [0], [1], [0, 0, 1, 1], [], []>} : vector<8x32xf32>, vector<32x64xf32>, vector<8x64xf32> -> vector<8x64xf32>
    %c0_215 = arith.constant 0 : index
    %c0_216 = arith.constant 0 : index
    %211 = vector.load %arg22[%c0_215, %c0_216] : memref<64x128xf32, #tpu.memory_space<vmem>>, vector<64x128xf32>
    %cst_217 = arith.constant dense<0.000000e+00> : vector<8x128xf32>
    %212 = tpu.matmul %210, %211, %cst_217 {dimension_numbers = #tpu.dot_dimension_numbers<[1], [0], [0], [1], [0, 0, 1, 1], [], []>} : vector<8x64xf32>, vector<64x128xf32>, vector<8x128xf32> -> vector<8x128xf32>
    %c0_218 = arith.constant 0 : index
    %c0_219 = arith.constant 0 : index
    %213 = vector.load %arg23[%c0_218, %c0_219] : memref<1x128xf32, #tpu.memory_space<vmem>>, vector<1x128xf32>
    %214 = vector.broadcast %213 : vector<1x128xf32> to vector<8x128xf32>
    %215 = arith.addf %212, %214 : vector<8x128xf32>
    %216 = arith.addf %208, %215 : vector<8x128xf32>
    %cst_220 = arith.constant 0.000000e+00 : f32
    %217 = vector.broadcast %cst_220 : f32 to vector<8x128xf32>
    %218 = arith.maximumf %216, %217 : vector<8x128xf32>
    %c0_221 = arith.constant 0 : index
    %c0_222 = arith.constant 0 : index
    %219 = vector.load %arg24[%c0_221, %c0_222] : memref<2x8xf32, #tpu.memory_space<vmem>>, vector<2x8xf32>
    %cst_223 = arith.constant dense<0.000000e+00> : vector<2x128xf32>
    %220 = tpu.matmul %219, %218, %cst_223 {dimension_numbers = #tpu.dot_dimension_numbers<[1], [0], [0], [1], [0, 0, 1, 1], [], []>} : vector<2x8xf32>, vector<8x128xf32>, vector<2x128xf32> -> vector<2x128xf32>
    %c0_224 = arith.constant 0 : index
    %c0_225 = arith.constant 0 : index
    %221 = vector.load %arg25[%c0_224, %c0_225] : memref<2x128xf32, #tpu.memory_space<vmem>>, vector<2x128xf32>
    tpu.vector_store %arg25[%c0_224, %c0_225], %220 {strides = array<i32>} : memref<2x128xf32, #tpu.memory_space<vmem>>, vector<2x128xf32>,
    return
  }
  func.func @transform_0(%arg0: i32) -> (i32, i32) {
    %c0_i32 = arith.constant 0 : i32
    %c0_i32_0 = arith.constant 0 : i32
    %c0_i32_1 = arith.constant 0 : i32
    return %c0_i32, %c0_i32_0 : i32, i32
  }
  func.func @transform_1(%arg0: i32) -> (i32, i32) {
    %c0_i32 = arith.constant 0 : i32
    %c0_i32_0 = arith.constant 0 : i32
    %c0_i32_1 = arith.constant 0 : i32
    return %c0_i32, %c0_i32_0 : i32, i32
  }
  func.func @transform_2(%arg0: i32) -> (i32, i32) {
    %c0_i32 = arith.constant 0 : i32
    %c0_i32_0 = arith.constant 0 : i32
    %c0_i32_1 = arith.constant 0 : i32
    return %c0_i32, %c0_i32_0 : i32, i32
  }
  func.func @transform_3(%arg0: i32) -> (i32, i32, i32) {
    %c0_i32 = arith.constant 0 : i32
    %c0_i32_0 = arith.constant 0 : i32
    %c0_i32_1 = arith.constant 0 : i32
    %c0_i32_2 = arith.constant 0 : i32
    return %c0_i32, %c0_i32_0, %c0_i32_1 : i32, i32, i32
  }
  func.func @transform_4(%arg0: i32) -> (i32, i32) {
    %c0_i32 = arith.constant 0 : i32
    %c0_i32_0 = arith.constant 0 : i32
    %c0_i32_1 = arith.constant 0 : i32
    return %c0_i32, %c0_i32_0 : i32, i32
  }
  func.func @transform_5(%arg0: i32) -> (i32, i32) {
    %c0_i32 = arith.constant 0 : i32
    %c0_i32_0 = arith.constant 0 : i32
    %c0_i32_1 = arith.constant 0 : i32
    return %c0_i32, %c0_i32_0 : i32, i32
  }
  func.func @transform_6(%arg0: i32) -> (i32, i32, i32) {
    %c0_i32 = arith.constant 0 : i32
    %c0_i32_0 = arith.constant 0 : i32
    %c0_i32_1 = arith.constant 0 : i32
    %c0_i32_2 = arith.constant 0 : i32
    return %c0_i32, %c0_i32_0, %c0_i32_1 : i32, i32, i32
  }
  func.func @transform_7(%arg0: i32) -> (i32, i32, i32) {
    %c0_i32 = arith.constant 0 : i32
    %c0_i32_0 = arith.constant 0 : i32
    %c0_i32_1 = arith.constant 0 : i32
    %c0_i32_2 = arith.constant 0 : i32
    return %c0_i32, %c0_i32_0, %c0_i32_1 : i32, i32, i32
  }
  func.func @transform_8(%arg0: i32) -> (i32, i32) {
    %c0_i32 = arith.constant 0 : i32
    %c0_i32_0 = arith.constant 0 : i32
    %c0_i32_1 = arith.constant 0 : i32
    return %c0_i32, %c0_i32_0 : i32, i32
  }
  func.func @transform_9(%arg0: i32) -> (i32, i32) {
    %c0_i32 = arith.constant 0 : i32
    %c0_i32_0 = arith.constant 0 : i32
    %c0_i32_1 = arith.constant 0 : i32
    return %c0_i32, %c0_i32_0 : i32, i32
  }
  func.func @transform_10(%arg0: i32) -> (i32, i32) {
    %c0_i32 = arith.constant 0 : i32
    %c0_i32_0 = arith.constant 0 : i32
    %c0_i32_1 = arith.constant 0 : i32
    return %c0_i32, %c0_i32_0 : i32, i32
  }
  func.func @transform_11(%arg0: i32) -> (i32, i32) {
    %c0_i32 = arith.constant 0 : i32
    %c0_i32_0 = arith.constant 0 : i32
    %c0_i32_1 = arith.constant 0 : i32
    return %c0_i32, %c0_i32_0 : i32, i32
  }
  func.func @transform_12(%arg0: i32) -> (i32, i32) {
    %c0_i32 = arith.constant 0 : i32
    %c0_i32_0 = arith.constant 0 : i32
    %c0_i32_1 = arith.constant 0 : i32
    return %c0_i32, %c0_i32_0 : i32, i32
  }
  func.func @transform_13(%arg0: i32) -> (i32, i32) {
    %c0_i32 = arith.constant 0 : i32
    %c0_i32_0 = arith.constant 0 : i32
    %c0_i32_1 = arith.constant 0 : i32
    return %c0_i32, %c0_i32_0 : i32, i32
  }
  func.func @transform_14(%arg0: i32) -> (i32, i32) {
    %c0_i32 = arith.constant 0 : i32
    %c0_i32_0 = arith.constant 0 : i32
    %c0_i32_1 = arith.constant 0 : i32
    return %c0_i32, %c0_i32_0 : i32, i32
  }
  func.func @transform_15(%arg0: i32) -> (i32, i32, i32) {
    %c0_i32 = arith.constant 0 : i32
    %c0_i32_0 = arith.constant 0 : i32
    %c0_i32_1 = arith.constant 0 : i32
    %c0_i32_2 = arith.constant 0 : i32
    return %c0_i32, %c0_i32_0, %c0_i32_1 : i32, i32, i32
  }
  func.func @transform_16(%arg0: i32) -> (i32, i32, i32) {
    %c0_i32 = arith.constant 0 : i32
    %c0_i32_0 = arith.constant 0 : i32
    %c0_i32_1 = arith.constant 0 : i32
    %c0_i32_2 = arith.constant 0 : i32
    return %c0_i32, %c0_i32_0, %c0_i32_1 : i32, i32, i32
  }
  func.func @transform_17(%arg0: i32) -> (i32, i32) {
    %c0_i32 = arith.constant 0 : i32
    %c0_i32_0 = arith.constant 0 : i32
    %c0_i32_1 = arith.constant 0 : i32
    return %c0_i32, %c0_i32_0 : i32, i32
  }
  func.func @transform_18(%arg0: i32) -> (i32, i32) {
    %c0_i32 = arith.constant 0 : i32
    %c0_i32_0 = arith.constant 0 : i32
    %c0_i32_1 = arith.constant 0 : i32
    return %c0_i32, %c0_i32_0 : i32, i32
  }
  func.func @transform_19(%arg0: i32) -> (i32, i32) {
    %c0_i32 = arith.constant 0 : i32
    %c0_i32_0 = arith.constant 0 : i32
    %c0_i32_1 = arith.constant 0 : i32
    return %c0_i32, %c0_i32_0 : i32, i32
  }
  func.func @transform_20(%arg0: i32) -> (i32, i32) {
    %c0_i32 = arith.constant 0 : i32
    %c0_i32_0 = arith.constant 0 : i32
    %c0_i32_1 = arith.constant 0 : i32
    return %c0_i32, %c0_i32_0 : i32, i32
  }
  func.func @transform_21(%arg0: i32) -> (i32, i32) {
    %c0_i32 = arith.constant 0 : i32
    %c0_i32_0 = arith.constant 0 : i32
    %c0_i32_1 = arith.constant 0 : i32
    return %c0_i32, %c0_i32_0 : i32, i32
  }
  func.func @transform_22(%arg0: i32) -> (i32, i32) {
    %c0_i32 = arith.constant 0 : i32
    %c0_i32_0 = arith.constant 0 : i32
    %c0_i32_1 = arith.constant 0 : i32
    return %c0_i32, %c0_i32_0 : i32, i32
  }
  func.func @transform_23(%arg0: i32) -> (i32, i32) {
    %c0_i32 = arith.constant 0 : i32
    %c0_i32_0 = arith.constant 0 : i32
    %c0_i32_1 = arith.constant 0 : i32
    return %c0_i32, %c0_i32_0 : i32, i32
  }
  func.func @transform_24(%arg0: i32) -> (i32, i32) {
    %c0_i32 = arith.constant 0 : i32
    %c0_i32_0 = arith.constant 0 : i32
    %c0_i32_1 = arith.constant 0 : i32
    return %c0_i32, %c0_i32_0 : i32, i32
  }
}

</mosaic_0001>

<bundles_post_ra>
// kernel: tpu_custom_call.1
= control target key start
LH: loop header
LB: loop body
LE: loop exit
PB: predicated region body
PF: predicated region fallthrough
CT: control target
= control target key end

     0   :  { %s8733_s0 = inlined_call_operand.vmem [shape: f32[128,196], index: 0, kind: input, shape index: {}]   ;;  %s8734_s1 = inlined_call_operand.vmem [shape: f32[196,16], index: 1, kind: input, shape index: {}]   ;;  %s8735_s2 = inlined_call_operand.vmem [shape: f32[1,16], index: 2, kind: input, shape index: {}]   ;;  %s8736_s3 = inlined_call_operand.vmem [shape: f32[9,32,128], index: 3, kind: input, shape index: {}]   ;;  %s8737_s4 = inlined_call_operand.hbm [shape: f32[16,16], index: 4, kind: input, shape index: {}]   ;;  %s8738_s5 = inlined_call_operand.hbm [shape: f32[1,16], index: 5, kind: input, shape index: {}]   ;;  %s8739_s6 = inlined_call_operand.vmem [shape: f32[9,32,32], index: 6, kind: input, shape index: {}]   ;;  %s8740_s7 = inlined_call_operand.hbm [shape: f32[9,16,16], index: 7, kind: input, shape index: {}]   ;;  %s8741_s8 = inlined_call_operand.hbm [shape: f32[1,16], index: 8, kind: input, shape index: {}]   ;;  %s8742_s9 = inlined_call_operand.hbm [shape: f32[16,64], index: 9, kind: input, shape index: {}]   ;;  %s8743_s10 = inlined_call_operand.hbm [shape: f32[1,64], index: 10, kind: input, shape index: {}]   ;;  %s8744_s11 = inlined_call_operand.hbm [shape: f32[16,64], index: 11, kind: input, shape index: {}]   ;;  %s8745_s12 = inlined_call_operand.hbm [shape: f32[1,64], index: 12, kind: input, shape index: {}]   ;;  %s8746_s13 = inlined_call_operand.vmem [shape: f32[64,32], index: 13, kind: input, shape index: {}]   ;;  %s8747_s14 = inlined_call_operand.hbm [shape: f32[1,32], index: 14, kind: input, shape index: {}]   ;;  %s8748_s15 = inlined_call_operand.hbm [shape: f32[9,8,32], index: 15, kind: input, shape index: {}]   ;;  %s8749_s16 = inlined_call_operand.hbm [shape: f32[9,32,32], index: 16, kind: input, shape index: {}]   ;;  %s8750_s17 = inlined_call_operand.hbm [shape: f32[1,32], index: 17, kind: input, shape index: {}]   ;;  %s8751_s18 = inlined_call_operand.vmem [shape: f32[32,128], index: 18, kind: input, shape index: {}]   ;;  %s8752_s19 = inlined_call_operand.hbm [shape: f32[1,128], index: 19, kind: input, shape index: {}]   ;;  %s8753_s20 = inlined_call_operand.vmem [shape: f32[8,32], index: 20, kind: input, shape index: {}]   ;;  %s8754_s21 = inlined_call_operand.hbm [shape: f32[64,128], index: 21, kind: input, shape index: {}]   ;;  %s8755_s22 = inlined_call_operand.vmem [shape: f32[1,128], index: 22, kind: input, shape index: {}]   ;;  %s8756_s23 = inlined_call_operand.vmem [shape: f32[2,8], index: 23, kind: input, shape index: {}]   ;;  %s8757_s24 = inlined_call_operand.hbm [shape: f32[2,128], index: 24, kind: output, shape index: {}]  }
   0x1   :  { %8762 = sst [smem:[#allocation35_spill]] %s8733_s0 }
   0x2   :  { %8763 = sst [smem:[#allocation36_spill]] %s8734_s1 }
   0x3   :  { %8764 = sst [smem:[#allocation37_spill]] %s8735_s2 }
   0x4   :  { %8765 = sst [smem:[#allocation38_spill]] %s8736_s3 }
   0x5   :  { %8766 = sst [smem:[#allocation39_spill]] %s8737_s4 }
   0x6   :  { %8767 = sst [smem:[#allocation40_spill]] %s8738_s5 }
   0x7   :  { %8768 = sst [smem:[#allocation41_spill]] %s8739_s6 }
   0x8   :  { %8769 = sst [smem:[#allocation42_spill]] %s8740_s7 }
   0x9   :  { %8770 = sst [smem:[#allocation43_spill]] %s8741_s8 }
   0xa   :  { %29 = vsyncpa [#allocation3], 0 }
   0xb   :  { %30 = vsyncpa [#allocation6], 0 }
   0xc   :  { %31 = vsyncpa [#allocation9], 0 }
   0xd   :  { %32 = vsyncpa [#allocation12], 0 }
   0xe   :  { %33 = vsyncpa [#allocation15], 0 }
   0xf   :  { %34 = vsyncpa [#allocation18], 0 }
  0x10   :  { %35 = vsyncpa [#allocation21], 0 }
  0x11   :  { %36 = vsyncpa [#allocation24], 0 }
  0x12   :  { %37 = vsyncpa [#allocation4], 0  ;;  %s7252_s5 = smov [#allocation5]   ;;  %s7253_s27 = smov [#allocation8]  }
  0x13   :  { %s64_s26 = sshll.u32 %s7252_s5, 4  ;;  %s88_s28 = sshll.u32 %s7253_s27, 4  ;;  %s65_s26 = int_to_ptr.vmem [resolvable:$true] %s64_s26  ;;  %s89_s28 = int_to_ptr.vmem [resolvable:$true] %s88_s28 }
  0x14   :  { %s6942_s6 = scalar_lea.vmem %s65_s26, 16  ;;  %s6946_s2 = scalar_lea.vmem %s65_s26, 32 }
  0x15   :  { %p6943_p0 = scmp.ne.s32.totalorder %s65_s26, %s6942_s6  ;;  %p6947_p1 = scmp.lt.s32.totalorder %s65_s26, %s65_s26 }
  0x16   :  { %p6948_p2 = scmp.lt.s32.totalorder %s6946_s2, %s6942_s6 }
  0x18   :  { %p6949_p3 = por %p6948_p2, %p6947_p1 }
  0x1a   :  { %p6950_p4 = pnand %p6949_p3, %p6943_p0 }
  0x1c   :  { %6953 = shalt.err (!%p6950_p4)
}
  0x1d   :  { %s8771_s7 = sld [smem:[#allocation40_spill]]  ;;  %s6962_s30 = scalar_lea.vmem %s89_s28, 16 }
  0x1e   :  { %p6963_p5 = scmp.ne.s32.totalorder %s89_s28, %s6962_s30  ;;  %s6966_s3 = scalar_lea.vmem %s89_s28, 32 }
  0x1f   :  { %p6967_p6 = scmp.lt.s32.totalorder %s89_s28, %s89_s28  ;;  %p6968_p7 = scmp.lt.s32.totalorder %s6966_s3, %s6962_s30 }
  0x21   :  { %p6969_p8 = por %p6968_p7, %p6967_p6 }
  0x23   :  { %67 = dma.hbm_to_vmem [thread:$0]  %s8771_s7, 16, %s65_s26, [#allocation6]  }
  0x24   :  { %p6970_p9 = pnand %p6969_p8, %p6963_p5 }
  0x26   :  { %6973 = shalt.err (!%p6970_p9)
}
  0x27   :  { %s8772_s4 = sld [smem:[#allocation43_spill]]  ;;  %s7254_s1 = smov [#allocation11]  }
  0x28   :  { %s110_s5 = sshll.u32 %s7254_s1, 4  ;;  %s7255_s27 = smov [#allocation14]   ;;  %s111_s5 = int_to_ptr.vmem [resolvable:$true] %s110_s5 }
  0x29   :  { %s132_s6 = sshll.u32 %s7255_s27, 4  ;;  %s6982_s2 = scalar_lea.vmem %s111_s5, 16  ;;  %s133_s6 = int_to_ptr.vmem [resolvable:$true] %s132_s6 }
  0x2a   :  { %p6983_p10 = scmp.ne.s32.totalorder %s111_s5, %s6982_s2  ;;  %s6986_s26 = scalar_lea.vmem %s111_s5, 32 }
  0x2b   :  { %p6987_p11 = scmp.lt.s32.totalorder %s111_s5, %s111_s5  ;;  %p6988_p12 = scmp.lt.s32.totalorder %s6986_s26, %s6982_s2 }
  0x2d   :  { %91 = dma.hbm_to_vmem [thread:$0]  %s8772_s4, 16, %s89_s28, [#allocation9]  }
  0x2e   :  { %p6989_p13 = por %p6988_p12, %p6987_p11 }
  0x30   :  { %p6990_p0 = pnand %p6989_p13, %p6983_p10 }
  0x32   :  { %6993 = shalt.err (!%p6990_p0)
}
  0x33   :  { %113 = dma.hbm_to_vmem [thread:$0]  %s8743_s10, 16, %s111_s5, [#allocation12]  }
  0x34   :  { %s7002_s7 = scalar_lea.vmem %s133_s6, 16  ;;  %s7006_s28 = scalar_lea.vmem %s133_s6, 32 }
  0x35   :  { %p7003_p1 = scmp.ne.s32.totalorder %s133_s6, %s7002_s7  ;;  %p7007_p2 = scmp.lt.s32.totalorder %s133_s6, %s133_s6 }
  0x36   :  { %p7008_p3 = scmp.lt.s32.totalorder %s7006_s28, %s7002_s7 }
  0x38   :  { %p7009_p4 = por %p7008_p3, %p7007_p2 }
  0x3a   :  { %p7010_p5 = pnand %p7009_p4, %p7003_p1 }
  0x3c   :  { %7013 = shalt.err (!%p7010_p5)
}
  0x3d   :  { %135 = dma.hbm_to_vmem [thread:$0]  %s8745_s12, 16, %s133_s6, [#allocation15]  }
  0x3e   :  { %s7256_s25 = smov [#allocation17]   ;;  %s7257_s4 = smov [#allocation20]  }
  0x3f   :  { %s153_s8 = sshll.u32 %s7256_s25, 4  ;;  %s178_s1 = sshll.u32 %s7257_s4, 4  ;;  %s154_s8 = int_to_ptr.vmem [resolvable:$true] %s153_s8  ;;  %s179_s1 = int_to_ptr.vmem [resolvable:$true] %s178_s1 }
  0x40   :  { %s7022_s27 = scalar_lea.vmem %s154_s8, 1152  ;;  %p7027_p7 = scmp.lt.s32.totalorder %s154_s8, %s154_s8 }
  0x41   :  { %p7023_p6 = scmp.ne.s32.totalorder %s154_s8, %s7022_s27  ;;  %p7028_p8 = scmp.lt.s32.totalorder %s7022_s27, %s7022_s27 }
  0x43   :  { %p7029_p9 = por %p7028_p8, %p7027_p7 }
  0x45   :  { %p7030_p10 = pnand %p7029_p9, %p7023_p6 }
  0x47   :  { %7033 = shalt.err (!%p7030_p10)
}
  0x48   :  { %s7258_s10 = smov 128   ;;  %s7259_s5 = smov 8  }
  0x49   :  { %159 = dma.hbm_to_vmem [thread:$0]  %s8748_s15, 1152, %s154_s8, [#allocation18], %s7258_s10, %s7258_s10, %s7259_s5  }
  0x4a   :  { %s7042_s6 = scalar_lea.vmem %s179_s1, 16  ;;  %s7046_s26 = scalar_lea.vmem %s179_s1, 32 }
  0x4b   :  { %p7043_p11 = scmp.ne.s32.totalorder %s179_s1, %s7042_s6  ;;  %p7047_p12 = scmp.lt.s32.totalorder %s179_s1, %s179_s1 }
  0x4c   :  { %p7048_p13 = scmp.lt.s32.totalorder %s7046_s26, %s7042_s6 }
  0x4e   :  { %p7049_p0 = por %p7048_p13, %p7047_p12 }
  0x50   :  { %p7050_p1 = pnand %p7049_p0, %p7043_p11 }
  0x52   :  { %7053 = shalt.err (!%p7050_p1)
}
  0x53   :  { %181 = dma.hbm_to_vmem [thread:$0]  %s8750_s17, 16, %s179_s1, [#allocation21]  }
  0x54   :  { %s7260_s7 = smov [#allocation2]   ;;  %s7261_s30 = smov [#allocation7]  }
  0x55   :  { %s51_s28 = sshll.u32 %s7260_s7, 4  ;;  %s75_s3 = sshll.u32 %s7261_s30, 4  ;;  %s52_s28 = int_to_ptr.vmem [resolvable:$true] %s51_s28  ;;  %s76_s3 = int_to_ptr.vmem [resolvable:$true] %s75_s3 }
  0x56   :  { %s7062_s25 = scalar_lea.vmem %s52_s28, 256  ;;  %p7067_p3 = scmp.lt.s32.totalorder %s52_s28, %s52_s28 }
  0x57   :  { %p7063_p2 = scmp.ne.s32.totalorder %s52_s28, %s7062_s25  ;;  %p7068_p4 = scmp.lt.s32.totalorder %s7062_s25, %s7062_s25 }
  0x59   :  { %p7069_p5 = por %p7068_p4, %p7067_p3 }
  0x5b   :  { %p7070_p6 = pnand %p7069_p5, %p7063_p2 }
  0x5d   :  { %7073 = shalt.err (!%p7070_p6)
}
  0x5e   :  { %s8773_s4 = sld [smem:[#allocation39_spill]]  ;;  %s7082_s17 = scalar_lea.vmem %s76_s3, 2304 }
  0x5f   :  { %p7083_p7 = scmp.ne.s32.totalorder %s76_s3, %s7082_s17  ;;  %p7087_p8 = scmp.lt.s32.totalorder %s76_s3, %s76_s3 }
  0x60   :  { %p7088_p9 = scmp.lt.s32.totalorder %s7082_s17, %s7082_s17 }
  0x62   :  { %p7089_p10 = por %p7088_p9, %p7087_p8 }
  0x64   :  { %57 = dma.hbm_to_vmem [thread:$0]  %s8773_s4, 256, %s52_s28, [#allocation3], %s7258_s10, %s7258_s10, %s7259_s5  }
  0x65   :  { %p7090_p11 = pnand %p7089_p10, %p7083_p7 }
  0x67   :  { %7093 = shalt.err (!%p7090_p11)
}
  0x68   :  { %s8774_s2 = sld [smem:[#allocation42_spill]]  ;;  %s7262_s12 = smov [#allocation10]  }
  0x69   :  { %s97_s6 = sshll.u32 %s7262_s12, 4  ;;  %s7263_s26 = smov [#allocation13]   ;;  %s98_s6 = int_to_ptr.vmem [resolvable:$true] %s97_s6 }
  0x6a   :  { %s119_s29 = sshll.u32 %s7263_s26, 4  ;;  %s7102_s0 = scalar_lea.vmem %s98_s6, 256  ;;  %s120_s29 = int_to_ptr.vmem [resolvable:$true] %s119_s29 }
  0x6b   :  { %p7103_p12 = scmp.ne.s32.totalorder %s98_s6, %s7102_s0  ;;  %p7107_p13 = scmp.lt.s32.totalorder %s98_s6, %s98_s6 }
  0x6c   :  { %p7108_p0 = scmp.lt.s32.totalorder %s7102_s0, %s7102_s0 }
  0x6e   :  { %81 = dma.hbm_to_vmem [thread:$0]  %s8774_s2, 2304, %s76_s3, [#allocation6], %s7258_s10, %s7258_s10, %s7259_s5  }
  0x6f   :  { %p7109_p1 = por %p7108_p0, %p7107_p13 }
  0x71   :  { %p7110_p2 = pnand %p7109_p1, %p7103_p12 }
  0x73   :  { %7113 = shalt.err (!%p7110_p2)
}
  0x74   :  { %103 = dma.hbm_to_vmem [thread:$0]  %s8742_s9, 256, %s98_s6, [#allocation9], %s7258_s10, %s7258_s10, %s7259_s5  }
  0x75   :  { %s7122_s30 = scalar_lea.vmem %s120_s29, 256  ;;  %p7127_p4 = scmp.lt.s32.totalorder %s120_s29, %s120_s29 }
  0x76   :  { %p7123_p3 = scmp.ne.s32.totalorder %s120_s29, %s7122_s30  ;;  %p7128_p5 = scmp.lt.s32.totalorder %s7122_s30, %s7122_s30 }
  0x78   :  { %p7129_p6 = por %p7128_p5, %p7127_p4 }
  0x7a   :  { %p7130_p7 = pnand %p7129_p6, %p7123_p3 }
  0x7c   :  { %7133 = shalt.err (!%p7130_p7)
}
  0x7d   :  { %125 = dma.hbm_to_vmem [thread:$0]  %s8744_s11, 256, %s120_s29, [#allocation12], %s7258_s10, %s7258_s10, %s7259_s5  }
  0x7e   :  { %s7264_s15 = smov [#allocation16]   ;;  %s7265_s4 = smov [#allocation19]  }
  0x7f   :  { %s144_s8 = sshll.u32 %s7264_s15, 4  ;;  %s165_s17 = sshll.u32 %s7265_s4, 4  ;;  %s145_s8 = int_to_ptr.vmem [resolvable:$true] %s144_s8  ;;  %s166_s17 = int_to_ptr.vmem [resolvable:$true] %s165_s17 }
  0x80   :  { %s7142_s9 = scalar_lea.vmem %s145_s8, 16  ;;  %s7146_s1 = scalar_lea.vmem %s145_s8, 32 }
  0x81   :  { %p7143_p8 = scmp.ne.s32.totalorder %s145_s8, %s7142_s9  ;;  %p7147_p9 = scmp.lt.s32.totalorder %s145_s8, %s145_s8 }
  0x82   :  { %p7148_p10 = scmp.lt.s32.totalorder %s7146_s1, %s7142_s9 }
  0x84   :  { %p7149_p11 = por %p7148_p10, %p7147_p9 }
  0x86   :  { %p7150_p12 = pnand %p7149_p11, %p7143_p8 }
  0x88   :  { %7153 = shalt.err (!%p7150_p12)
}
  0x89   :  { %147 = dma.hbm_to_vmem [thread:$0]  %s8747_s14, 16, %s145_s8, [#allocation15]  }
  0x8a   :  { %s7162_s12 = scalar_lea.vmem %s166_s17, 4608  ;;  %p7167_p0 = scmp.lt.s32.totalorder %s166_s17, %s166_s17 }
  0x8b   :  { %p7163_p13 = scmp.ne.s32.totalorder %s166_s17, %s7162_s12  ;;  %p7168_p1 = scmp.lt.s32.totalorder %s7162_s12, %s7162_s12 }
  0x8d   :  { %p7169_p2 = por %p7168_p1, %p7167_p0 }
  0x8f   :  { %p7170_p3 = pnand %p7169_p2, %p7163_p13 }
  0x91   :  { %7173 = shalt.err (!%p7170_p3)
}
  0x92   :  { %171 = dma.hbm_to_vmem [thread:$0]  %s8749_s16, 4608, %s166_s17, [#allocation18], %s7258_s10, %s7258_s10, %s7259_s5  }
  0x93   :  { %s7266_s26 = smov [#allocation22]   ;;  %s7267_s0 = smov [#allocation23]  }
  0x94   :  { %s190_s29 = sshll.u32 %s7266_s26, 4  ;;  %s201_s7 = sshll.u32 %s7267_s0, 4  ;;  %s191_s29 = int_to_ptr.vmem [resolvable:$true] %s190_s29  ;;  %s202_s7 = int_to_ptr.vmem [resolvable:$true] %s201_s7 }
  0x95   :  { %s7182_s14 = scalar_lea.vmem %s191_s29, 16  ;;  %s7186_s28 = scalar_lea.vmem %s191_s29, 32 }
  0x96   :  { %p7183_p4 = scmp.ne.s32.totalorder %s191_s29, %s7182_s14  ;;  %p7187_p5 = scmp.lt.s32.totalorder %s191_s29, %s191_s29 }
  0x97   :  { %p7188_p6 = scmp.lt.s32.totalorder %s7186_s28, %s7182_s14 }
  0x99   :  { %p7189_p7 = por %p7188_p6, %p7187_p5 }
  0x9b   :  { %p7190_p8 = pnand %p7189_p7, %p7183_p4 }
  0x9d   :  { %7193 = shalt.err (!%p7190_p8)
}
  0x9e   :  { %193 = dma.hbm_to_vmem [thread:$0]  %s8752_s19, 16, %s191_s29, [#allocation21]  }
  0x9f   :  { %s7202_s25 = scalar_lea.vmem %s202_s7, 1024  ;;  %p7207_p10 = scmp.lt.s32.totalorder %s202_s7, %s202_s7 }
  0xa0   :  { %p7203_p9 = scmp.ne.s32.totalorder %s202_s7, %s7202_s25  ;;  %p7208_p11 = scmp.lt.s32.totalorder %s7202_s25, %s7202_s25 }
  0xa2   :  { %p7209_p12 = por %p7208_p11, %p7207_p10 }
  0xa4   :  { %p7210_p13 = pnand %p7209_p12, %p7203_p9 }
  0xa6   :  { %7213 = shalt.err (!%p7210_p13)
}
  0xa7   :  { %207 = dma.hbm_to_vmem [thread:$0]  %s8754_s21, 1024, %s202_s7, [#allocation24], %s7258_s10, %s7258_s10, %s7259_s5  }
  0xa8   :  { %7234 = dma.done.wait [#allocation3], 256  }
  0xa9   :  { %7235 = vsyncadd [#allocation3], 4294967040 }
  0xaa   :  { %7236 = dma.done.wait [#allocation6], 2320  }
  0xab   :  { %7237 = vsyncadd [#allocation6], 4294964976 }
  0xac   :  { %7238 = dma.done.wait [#allocation9], 272  }
  0xad   :  { %7239 = vsyncadd [#allocation9], 4294967024 }
  0xae   :  { %7240 = dma.done.wait [#allocation12], 272  }
  0xaf   :  { %7241 = vsyncadd [#allocation12], 4294967024 }
  0xb0   :  { %7242 = dma.done.wait [#allocation15], 32  }
  0xb1   :  { %7243 = vsyncadd [#allocation15], 4294967264 }
  0xb2   :  { %7244 = dma.done.wait [#allocation18], 5760  }
  0xb3   :  { %7245 = vsyncadd [#allocation18], 4294961536 }
  0xb4   :  { %7246 = dma.done.wait [#allocation21], 32  }
  0xb5   :  { %7247 = vsyncadd [#allocation21], 4294967264 }
  0xb6   :  { %7248 = dma.done.wait [#allocation24], 1024  }
  0xb7   :  { %7249 = vsyncadd [#allocation24], 4294966272  ;;  %v7268_v0 = vmov 0.0   ;;  %s8775_s10 = sld [smem:[#allocation36_spill]]  ;;  %vm318_vm0 = vcmask 556032   ;;  %vm367_vm1 = vcmask 1043456  }
  0xb8   :  { %371 = vmatprep.subr.mxu0 %v7268_v0  ;;  %s8776_s29 = sld [smem:[#allocation35_spill]]  ;;  %vm1382_vm2 = vcmask 130048   ;;  %vm1488_vm3 = vcmask 261120   ;;  %vm3567_vm4 = vcmask 523264   ;;  %vm7269_vm5 = vmmov 0   ;;  %s7270_s19 = smov [#allocation25]  }
  0xb9   :  { %s8777_s16 = sld [smem:[#allocation38_spill]]  ;;  %vm5309_vm6 = vcmask 64512   ;;  %s5390_s21 = sshll.u32 %s7270_s19, 4  ;;  %s5391_s21 = int_to_ptr.vmem [resolvable:$true] %s5390_s21 }
  0xba   :  { %s8778_s5 = sld [smem:[#allocation37_spill]]  ;;  %p7219_p1 = scmp.lt.s32.totalorder %s5391_s21, %s5391_s21 }
  0xbd   :  { %v301_v1 = vld [vmem:[%s8775_s10 + $0x78] sm:$0xff]  ;;  %v300_v2 = vld [vmem:[%s8775_s10 + $0x70] sm:$0xff]  ;;  %v299_v3 = vld [vmem:[%s8775_s10 + $0x68] sm:$0xff] }
  0xbe   :  { %372 = vmatpush1.msra.mxu0 %v301_v1  ;;  %v298_v4 = vld [vmem:[%s8775_s10 + $0x60] sm:$0xff]  ;;  %v297_v5 = vld [vmem:[%s8775_s10 + $0x58] sm:$0xff]  ;;  %v296_v6 = vld [vmem:[%s8775_s10 + $0x50] sm:$0xff] }
  0xbf   :  { %373 = vmatprep.subr.mxu0 %v7268_v0  ;;  %v255_v7 = vld [vmem:[%s8776_s29 + $0x8] sm:$0xff]  ;;  %v294_v9 = vld [vmem:[%s8775_s10 + $0x40] sm:$0xff]  ;;  %v293_v10 = vld [vmem:[%s8775_s10 + $0x38] sm:$0xff] }
  0xc0   :  { %374 = vmatpush1.msra.mxu0 %v300_v2  ;;  %5408 = vmatprep.mubr.msk.f32.mxu0 %vm318_vm0, %v255_v7  ;;  %v295_v8 = vld [vmem:[%s8775_s10 + $0x48] sm:$0xff]  ;;  %v292_v11 = vld [vmem:[%s8775_s10 + $0x30] sm:$0xff]  ;;  %v290_v13 = vld [vmem:[%s8775_s10 + $0x20] sm:$0xff] }
  0xc1   :  { %375 = vmatprep.subr.mxu0 %v7268_v0  ;;  %v291_v12 = vld [vmem:[%s8775_s10 + $0x28] sm:$0xff]  ;;  %v289_v14 = vld [vmem:[%s8775_s10 + $0x18] sm:$0xff]  ;;  %v288_v15 = vld [vmem:[%s8775_s10 + $0x10] sm:$0xff] }
  0xc2   :  { %376 = vmatpush1.msra.mxu0 %v299_v3  ;;  %v287_v16 = vld [vmem:[%s8775_s10 + $0x8] sm:$0xff]  ;;  %v286_v17 = vld [vmem:[%s8775_s10] sm:$0xff]  ;;  %v309_v19 = vld [vmem:[%s8775_s10 + $0xb8] sm:$0xff] }
  0xc3   :  { %377 = vmatprep.subr.mxu0 %v7268_v0  ;;  %v310_v18 = vld [vmem:[%s8775_s10 + $0xc0] sm:$0xf]  ;;  %v308_v20 = vld [vmem:[%s8775_s10 + $0xb0] sm:$0xff]  ;;  %v307_v21 = vld [vmem:[%s8775_s10 + $0xa8] sm:$0xff] }
  0xc4   :  { %378 = vmatpush1.msra.mxu0 %v298_v4  ;;  %v306_v22 = vld [vmem:[%s8775_s10 + $0xa0] sm:$0xff]  ;;  %v305_v23 = vld [vmem:[%s8775_s10 + $0x98] sm:$0xff]  ;;  %v304_v24 = vld [vmem:[%s8775_s10 + $0x90] sm:$0xff] }
  0xc5   :  { %379 = vmatprep.subr.mxu0 %v7268_v0  ;;  %v303_v25 = vld [vmem:[%s8775_s10 + $0x88] sm:$0xff]  ;;  %v302_v26 = vld [vmem:[%s8775_s10 + $0x80] sm:$0xff]  ;;  %v257_v28 = vld [vmem:[%s8776_s29 + $0x18] sm:$0xff] }
  0xc6   :  { %380 = vmatpush1.msra.mxu0 %v297_v5  ;;  %v254_v27 = vld [vmem:[%s8776_s29] sm:$0xff]  ;;  %v256_v29 = vld [vmem:[%s8776_s29 + $0x10] sm:$0xff]  ;;  %v259_v30 = vld [vmem:[%s8776_s29 + $0x28] sm:$0xff] }
  0xc7   :  { %381 = vmatprep.subr.mxu0 %v7268_v0  ;;  %v258_v31 = vld [vmem:[%s8776_s29 + $0x20] sm:$0xff]  ;;  %v261_v32 = vld [vmem:[%s8776_s29 + $0x38] sm:$0xff]  ;;  %v260_v33 = vld [vmem:[%s8776_s29 + $0x30] sm:$0xff] }
  0xc8   :  { %382 = vmatpush1.msra.mxu0 %v296_v6  ;;  %v263_v34 = vld [vmem:[%s8776_s29 + $0x48] sm:$0xff]  ;;  %v262_v35 = vld [vmem:[%s8776_s29 + $0x40] sm:$0xff]  ;;  %v265_v36 = vld [vmem:[%s8776_s29 + $0x58] sm:$0xff] }
  0xc9   :  { %383 = vmatprep.subr.mxu0 %v7268_v0  ;;  %v264_v37 = vld [vmem:[%s8776_s29 + $0x50] sm:$0xff]  ;;  %v267_v38 = vld [vmem:[%s8776_s29 + $0x68] sm:$0xff]  ;;  %v266_v39 = vld [vmem:[%s8776_s29 + $0x60] sm:$0xff] }
  0xca   :  { %384 = vmatpush1.msra.mxu0 %v295_v8  ;;  %v269_v40 = vld [vmem:[%s8776_s29 + $0x78] sm:$0xff]  ;;  %v268_v41 = vld [vmem:[%s8776_s29 + $0x70] sm:$0xff]  ;;  %v271_v42 = vld [vmem:[%s8776_s29 + $0x88] sm:$0xff] }
  0xcb   :  { %385 = vmatprep.subr.mxu0 %v7268_v0  ;;  %v270_v43 = vld [vmem:[%s8776_s29 + $0x80] sm:$0xff]  ;;  %v273_v44 = vld [vmem:[%s8776_s29 + $0x98] sm:$0xff]  ;;  %v272_v45 = vld [vmem:[%s8776_s29 + $0x90] sm:$0xff] }
  0xcc   :  { %386 = vmatpush1.msra.mxu0 %v294_v9  ;;  %v275_v46 = vld [vmem:[%s8776_s29 + $0xa8] sm:$0xff]  ;;  %v274_v47 = vld [vmem:[%s8776_s29 + $0xa0] sm:$0xff]  ;;  %v277_v48 = vld [vmem:[%s8776_s29 + $0xb8] sm:$0xff] }
  0xcd   :  { %387 = vmatprep.subr.mxu0 %v7268_v0  ;;  %v276_v49 = vld [vmem:[%s8776_s29 + $0xb0] sm:$0xff]  ;;  %v279_v50 = vld [vmem:[%s8776_s29 + $0xc8] sm:$0xff]  ;;  %v278_v51 = vld [vmem:[%s8776_s29 + $0xc0] sm:$0xff] }
  0xce   :  { %388 = vmatpush1.msra.mxu0 %v293_v10  ;;  %v281_v52 = vld [vmem:[%s8776_s29 + $0xd8] sm:$0xff]  ;;  %v280_v53 = vld [vmem:[%s8776_s29 + $0xd0] sm:$0xff]  ;;  %v283_v54 = vld [vmem:[%s8776_s29 + $0xe8] sm:$0xff] }
  0xcf   :  { %389 = vmatprep.subr.mxu0 %v7268_v0  ;;  %v282_v55 = vld [vmem:[%s8776_s29 + $0xe0] sm:$0xff]  ;;  %v285_v56 = vld [vmem:[%s8776_s29 + $0xf8] sm:$0xff]  ;;  %v284_v57 = vld [vmem:[%s8776_s29 + $0xf0] sm:$0xff]  ;;  %s8779_s29 = sld [smem:[#allocation41_spill]] }
  0xd0   :  { %390 = vmatpush1.msra.mxu0 %v292_v11  ;;  %v532_v58 = vld [vmem:[%s8777_s16] sm:$0xff] }
  0xd1   :  { %391 = vmatprep.subr.mxu0 %v7268_v0  ;;  %6085 = vmatprep.mubr.f32.mxu1 %v532_v58  ;;  %v5432_v59 = vld [vmem:[%s8777_s16 + $0x60] sm:$0xff] }
  0xd2   :  { %392 = vmatpush1.msra.mxu0 %v291_v12 }
  0xd3   :  { %393 = vmatprep.subr.mxu0 %v7268_v0 }
  0xd4   :  { %394 = vmatpush1.msra.mxu0 %v290_v13 }
  0xd5   :  { %395 = vmatprep.subr.mxu0 %v7268_v0 }
  0xd6   :  { %396 = vmatpush1.msra.mxu0 %v289_v14 }
  0xd7   :  { %397 = vmatprep.subr.mxu0 %v7268_v0 }
  0xd8   :  { %398 = vmatpush1.msra.mxu0 %v288_v15 }
  0xd9   :  { %399 = vmatprep.subr.mxu0 %v7268_v0 }
  0xda   :  { %400 = vmatpush1.msra.mxu0 %v287_v16 }
  0xdb   :  { %401 = vmatprep.subr.mxu0 %v7268_v0 }
  0xdc   :  { %402 = vmatpush1.msra.mxu0 %v286_v17 }
  0xdd   :  { %417 = vmatprep.subr.mxu0 %v7268_v0 }
  0xde   :  { %5407 = vmatpush2.msk.msra.mxu0 %vm367_vm1, %v310_v18 }
  0xdf   :  { %419 = vmatprep.subr.mxu0 %v7268_v0 }
  0xe0   :  { %420 = vmatpush2.msra.mxu0 %v309_v19 }
  0xe1   :  { %421 = vmatprep.subr.mxu0 %v7268_v0 }
  0xe2   :  { %422 = vmatpush2.msra.mxu0 %v308_v20 }
  0xe3   :  { %423 = vmatprep.subr.mxu0 %v7268_v0 }
  0xe4   :  { %424 = vmatpush2.msra.mxu0 %v307_v21 }
  0xe5   :  { %425 = vmatprep.subr.mxu0 %v7268_v0 }
  0xe6   :  { %426 = vmatpush2.msra.mxu0 %v306_v22 }
  0xe7   :  { %427 = vmatprep.subr.mxu0 %v7268_v0 }
  0xe8   :  { %428 = vmatpush2.msra.mxu0 %v305_v23 }
  0xe9   :  { %429 = vmatprep.subr.mxu0 %v7268_v0 }
  0xea   :  { %430 = vmatpush2.msra.mxu0 %v304_v24 }
  0xeb   :  { %431 = vmatprep.subr.mxu0 %v7268_v0 }
  0xec   :  { %432 = vmatpush2.msra.mxu0 %v303_v25 }
  0xed   :  { %433 = vmatprep.subr.mxu0 %v7268_v0 }
  0xee   :  { %434 = vmatpush2.msra.mxu0 %v302_v26 }
  0xef   :  { %436 = vmatmul.mubr.f32.vlgmr.msra.gmra.mxu0 %v254_v27  ;;  %v7692_v27 = vld [vmem:[%s8778_s5] ss:$0 sm:$0xff] }
  0xf0   :  { %5409 = vmatprep.mubr.msk.f32.mxu0 %vm318_vm0, %v257_v28 }
  0xf3   :  { %441 = vmatmul.mubr.f32.gmra.mxu0 %v256_v29 }
  0xf4   :  { %5410 = vmatprep.mubr.msk.f32.mxu0 %vm318_vm0, %v259_v30 }
  0xf7   :  { %446 = vmatmul.mubr.f32.gmra.mxu0 %v258_v31 }
  0xf8   :  { %5411 = vmatprep.mubr.msk.f32.mxu0 %vm318_vm0, %v261_v32 }
  0xfb   :  { %451 = vmatmul.mubr.f32.gmra.mxu0 %v260_v33 }
  0xfc   :  { %5412 = vmatprep.mubr.msk.f32.mxu0 %vm318_vm0, %v263_v34 }
  0xff   :  { %456 = vmatmul.mubr.f32.gmra.mxu0 %v262_v35 }
 0x100   :  { %5413 = vmatprep.mubr.msk.f32.mxu0 %vm318_vm0, %v265_v36 }
 0x103   :  { %461 = vmatmul.mubr.f32.gmra.mxu0 %v264_v37 }
 0x104   :  { %5414 = vmatprep.mubr.msk.f32.mxu0 %vm318_vm0, %v267_v38 }
 0x107   :  { %466 = vmatmul.mubr.f32.gmra.mxu0 %v266_v39 }
 0x108   :  { %5415 = vmatprep.mubr.msk.f32.mxu0 %vm318_vm0, %v269_v40 }
 0x10b   :  { %471 = vmatmul.mubr.f32.gmra.mxu0 %v268_v41 }
 0x10c   :  { %5416 = vmatprep.mubr.msk.f32.mxu0 %vm318_vm0, %v271_v42 }
 0x10f   :  { %476 = vmatmul.mubr.f32.gmra.mxu0 %v270_v43 }
 0x110   :  { %5417 = vmatprep.mubr.msk.f32.mxu0 %vm318_vm0, %v273_v44 }
 0x113   :  { %481 = vmatmul.mubr.f32.gmra.mxu0 %v272_v45 }
 0x114   :  { %5418 = vmatprep.mubr.msk.f32.mxu0 %vm318_vm0, %v275_v46 }
 0x117   :  { %486 = vmatmul.mubr.f32.gmra.mxu0 %v274_v47 }
 0x118   :  { %5419 = vmatprep.mubr.msk.f32.mxu0 %vm318_vm0, %v277_v48 }
 0x11b   :  { %491 = vmatmul.mubr.f32.gmra.mxu0 %v276_v49 }
 0x11c   :  { %5420 = vmatprep.mubr.msk.f32.mxu0 %vm318_vm0, %v279_v50 }
 0x11f   :  { %496 = vmatmul.mubr.f32.gmra.mxu0 %v278_v51 }
 0x120   :  { %5421 = vmatprep.mubr.msk.f32.mxu0 %vm318_vm0, %v281_v52 }
 0x123   :  { %501 = vmatmul.mubr.f32.gmra.mxu0 %v280_v53 }
 0x124   :  { %5422 = vmatprep.mubr.msk.f32.mxu0 %vm318_vm0, %v283_v54 }
 0x127   :  { %506 = vmatmul.mubr.f32.gmra.mxu0 %v282_v55 }
 0x128   :  { %5423 = vmatprep.mubr.msk.f32.mxu0 %vm318_vm0, %v285_v56 }
 0x12b   :  { %511 = vmatmul.mubr.f32.gmra.mxu0 %v284_v57 }
 0x12c   :  { %6199 = vmatprep.mubr.f32.mxu0 %v5432_v59 }
 0x1af   :  { %v7677_v60 = vpop.f32.mrf.mxu0 }
 0x1b0   :  { %v438_v58 = vadd.f32 %v7692_v27, %v7677_v60 }
 0x1b1   :  { %v439_v61 = vpop.f32.mrf.mxu0 }
 0x1b2   :  { %v7802_v60 = vmax.f32 %v438_v58, 0.0 }
 0x1b3   :  { %v7679_v62 = vpop.f32.mrf.mxu0 }
 0x1b4   :  { %v443_v56 = vadd.f32 %v7692_v27, %v7679_v62  ;;  %v533_v62 = vld [vmem:[%s8777_s16 + $0x8] sm:$0xff] }
 0x1b5   :  { %v444_v63 = vpop.f32.mrf.mxu0 }
 0x1b6   :  { %v7796_v61 = vmax.f32 %v443_v56, 0.0  ;;  %v5433_v63 = vld [vmem:[%s8777_s16 + $0x68] sm:$0xff] }
 0x1b7   :  { %v7681_v1 = vpop.f32.mrf.mxu0 }
 0x1b8   :  { %v448_v54 = vadd.f32 %v7692_v27, %v7681_v1  ;;  %v534_v1 = vld [vmem:[%s8777_s16 + $0x10] sm:$0xff] }
 0x1b9   :  { %v449_v2 = vpop.f32.mrf.mxu0 }
 0x1ba   :  { %v7790_v59 = vmax.f32 %v448_v54, 0.0  ;;  %v535_v2 = vld [vmem:[%s8777_s16 + $0x18] sm:$0xff] }
 0x1bb   :  { %v7683_v3 = vpop.f32.mrf.mxu0 }
 0x1bc   :  { %v453_v52 = vadd.f32 %v7692_v27, %v7683_v3  ;;  %v5434_v3 = vld [vmem:[%s8777_s16 + $0x70] sm:$0xff] }
 0x1bd   :  { %v454_v4 = vpop.f32.mrf.mxu0 }
 0x1be   :  { %v7782_v57 = vmax.f32 %v453_v52, 0.0  ;;  %v5435_v4 = vld [vmem:[%s8777_s16 + $0x78] sm:$0xff] }
 0x1bf   :  { %v7685_v5 = vpop.f32.mrf.mxu0 }
 0x1c0   :  { %v458_v50 = vadd.f32 %v7692_v27, %v7685_v5  ;;  %v5424_v5 = vld [vmem:[%s8777_s16 + $0x20] sm:$0xff] }
 0x1c1   :  { %v459_v6 = vpop.f32.mrf.mxu0 }
 0x1c2   :  { %v7774_v55 = vmax.f32 %v458_v50, 0.0  ;;  %v5425_v6 = vld [vmem:[%s8777_s16 + $0x28] sm:$0xff] }
 0x1c3   :  { %v7687_v7 = vpop.f32.mrf.mxu0 }
 0x1c4   :  { %v463_v48 = vadd.f32 %v7692_v27, %v7687_v7  ;;  %v5440_v7 = vld [vmem:[%s8777_s16 + $0xa0] sm:$0xff] }
 0x1c5   :  { %v464_v8 = vpop.f32.mrf.mxu0 }
 0x1c6   :  { %v7766_v53 = vmax.f32 %v463_v48, 0.0  ;;  %v5441_v8 = vld [vmem:[%s8777_s16 + $0xa8] sm:$0xff] }
 0x1c7   :  { %v467_v9 = vpop.f32.mrf.mxu0 }
 0x1c8   :  { %v468_v46 = vadd.f32 %v7692_v27, %v467_v9  ;;  %v5426_v9 = vld [vmem:[%s8777_s16 + $0x30] sm:$0xff] }
 0x1c9   :  { %v469_v10 = vpop.f32.mrf.mxu0 }
 0x1ca   :  { %v7758_v51 = vmax.f32 %v468_v46, 0.0  ;;  %v5427_v10 = vld [vmem:[%s8777_s16 + $0x38] sm:$0xff] }
 0x1cb   :  { %v472_v11 = vpop.f32.mrf.mxu0 }
 0x1cc   :  { %v473_v44 = vadd.f32 %v7692_v27, %v472_v11  ;;  %v5428_v11 = vld [vmem:[%s8777_s16 + $0x40] sm:$0xff] }
 0x1cd   :  { %v474_v12 = vpop.f32.mrf.mxu0 }
 0x1ce   :  { %v7750_v49 = vmax.f32 %v473_v44, 0.0  ;;  %v5429_v12 = vld [vmem:[%s8777_s16 + $0x48] sm:$0xff] }
 0x1cf   :  { %v477_v13 = vpop.f32.mrf.mxu0 }
 0x1d0   :  { %v478_v42 = vadd.f32 %v7692_v27, %v477_v13  ;;  %v5430_v13 = vld [vmem:[%s8777_s16 + $0x50] sm:$0xff] }
 0x1d1   :  { %v479_v14 = vpop.f32.mrf.mxu0 }
 0x1d2   :  { %v7742_v47 = vmax.f32 %v478_v42, 0.0  ;;  %v5442_v14 = vld [vmem:[%s8777_s16 + $0xb0] sm:$0xff] }
 0x1d3   :  { %v482_v15 = vpop.f32.mrf.mxu0 }
 0x1d4   :  { %v483_v40 = vadd.f32 %v7692_v27, %v482_v15  ;;  %v5443_v15 = vld [vmem:[%s8777_s16 + $0xb8] sm:$0xff] }
 0x1d5   :  { %v484_v16 = vpop.f32.mrf.mxu0 }
 0x1d6   :  { %v7735_v45 = vmax.f32 %v483_v40, 0.0  ;;  %v5448_v16 = vld [vmem:[%s8777_s16 + $0xe0] sm:$0xff] }
 0x1d7   :  { %v487_v17 = vpop.f32.mrf.mxu0 }
 0x1d8   :  { %v488_v38 = vadd.f32 %v7692_v27, %v487_v17  ;;  %v5431_v17 = vld [vmem:[%s8777_s16 + $0x58] sm:$0xff] }
 0x1d9   :  { %v489_v18 = vpop.f32.mrf.mxu0 }
 0x1da   :  { %v7728_v43 = vmax.f32 %v488_v38, 0.0  ;;  %v5436_v18 = vld [vmem:[%s8777_s16 + $0x80] sm:$0xff] }
 0x1db   :  { %v492_v19 = vpop.f32.mrf.mxu0 }
 0x1dc   :  { %v493_v36 = vadd.f32 %v7692_v27, %v492_v19  ;;  %v5449_v19 = vld [vmem:[%s8777_s16 + $0xe8] sm:$0xff] }
 0x1dd   :  { %v494_v20 = vpop.f32.mrf.mxu0 }
 0x1de   :  { %v7721_v41 = vmax.f32 %v493_v36, 0.0  ;;  %v5450_v20 = vld [vmem:[%s8777_s16 + $0xf0] sm:$0xff] }
 0x1df   :  { %v497_v21 = vpop.f32.mrf.mxu0 }
 0x1e0   :  { %v498_v34 = vadd.f32 %v7692_v27, %v497_v21  ;;  %v5451_v21 = vld [vmem:[%s8777_s16 + $0xf8] sm:$0xff] }
 0x1e1   :  { %v499_v22 = vpop.f32.mrf.mxu0 }
 0x1e2   :  { %v7714_v39 = vmax.f32 %v498_v34, 0.0  ;;  %v5437_v22 = vld [vmem:[%s8777_s16 + $0x88] sm:$0xff]  ;;  %v1373_v34 = vld [vmem:[#allocation2] sm:$0xff] }
 0x1e3   :  { %v502_v23 = vpop.f32.mrf.mxu0 }
 0x1e4   :  { %v503_v32 = vadd.f32 %v7692_v27, %v502_v23  ;;  %v5438_v23 = vld [vmem:[%s8777_s16 + $0x90] sm:$0xff] }
 0x1e5   :  { %v504_v24 = vpop.f32.mrf.mxu0 }
 0x1e6   :  { %v7707_v37 = vmax.f32 %v503_v32, 0.0  ;;  %v5439_v24 = vld [vmem:[%s8777_s16 + $0x98] sm:$0xff] }
 0x1e7   :  { %v507_v25 = vpop.f32.mrf.mxu0  ;;  %v5455_v32 = vld [vmem:[%s8777_s16 + $0x118] sm:$0xff] }
 0x1e8   :  { %v508_v29 = vadd.f32 %v7692_v27, %v507_v25  ;;  %v5444_v25 = vld [vmem:[%s8777_s16 + $0xc0] sm:$0xff] }
 0x1e9   :  { %v509_v26 = vpop.f32.mrf.mxu0 }
 0x1ea   :  { %v7700_v35 = vmax.f32 %v508_v29, 0.0  ;;  %v5445_v26 = vld [vmem:[%s8777_s16 + $0xc8] sm:$0xff]  ;;  %v5452_v29 = vld [vmem:[%s8777_s16 + $0x100] sm:$0xff] }
 0x1eb   :  { %v512_v28 = vpop.f32.mrf.mxu0 }
 0x1ec   :  { %v513_v30 = vadd.f32 %v7692_v27, %v512_v28  ;;  %v5446_v27 = vld [vmem:[%s8777_s16 + $0xd0] sm:$0xff]  ;;  %v5447_v28 = vld [vmem:[%s8777_s16 + $0xd8] sm:$0xff] }
 0x1ed   :  { %v514_v31 = vpop.f32.mrf.mxu0 }
 0x1ee   :  { %v7697_v33 = vmax.f32 %v513_v30, 0.0  ;;  %v5453_v30 = vld [vmem:[%s8777_s16 + $0x108] sm:$0xff]  ;;  %v5454_v31 = vld [vmem:[%s8777_s16 + $0x110] sm:$0xff] }
 0x1f0   :  { %6053 = vmatprep.subr.mxu1 %v7697_v33  ;;  %6167 = vmatprep.subr.mxu0 %v7697_v33 }
 0x1f1   :  { %6054 = vmatpush3.msra.mxu1 %v7697_v33  ;;  %6168 = vmatpush3.msra.mxu0 %v7697_v33 }
 0x1f2   :  { %6055 = vmatprep.subr.mxu1 %v7700_v35  ;;  %6169 = vmatprep.subr.mxu0 %v7700_v35 }
 0x1f3   :  { %6056 = vmatpush3.msra.mxu1 %v7700_v35  ;;  %6170 = vmatpush3.msra.mxu0 %v7700_v35 }
 0x1f4   :  { %6057 = vmatprep.subr.mxu1 %v7707_v37  ;;  %6171 = vmatprep.subr.mxu0 %v7707_v37 }
 0x1f5   :  { %6058 = vmatpush3.msra.mxu1 %v7707_v37  ;;  %6172 = vmatpush3.msra.mxu0 %v7707_v37 }
 0x1f6   :  { %6059 = vmatprep.subr.mxu1 %v7714_v39  ;;  %6173 = vmatprep.subr.mxu0 %v7714_v39 }
 0x1f7   :  { %6060 = vmatpush3.msra.mxu1 %v7714_v39  ;;  %6174 = vmatpush3.msra.mxu0 %v7714_v39 }
 0x1f8   :  { %6061 = vmatprep.subr.mxu1 %v7721_v41  ;;  %6175 = vmatprep.subr.mxu0 %v7721_v41 }
 0x1f9   :  { %6062 = vmatpush3.msra.mxu1 %v7721_v41  ;;  %6176 = vmatpush3.msra.mxu0 %v7721_v41 }
 0x1fa   :  { %6063 = vmatprep.subr.mxu1 %v7728_v43  ;;  %6177 = vmatprep.subr.mxu0 %v7728_v43 }
 0x1fb   :  { %6064 = vmatpush3.msra.mxu1 %v7728_v43  ;;  %6178 = vmatpush3.msra.mxu0 %v7728_v43 }
 0x1fc   :  { %6065 = vmatprep.subr.mxu1 %v7735_v45  ;;  %6179 = vmatprep.subr.mxu0 %v7735_v45 }
 0x1fd   :  { %6066 = vmatpush3.msra.mxu1 %v7735_v45  ;;  %6180 = vmatpush3.msra.mxu0 %v7735_v45 }
 0x1fe   :  { %6067 = vmatprep.subr.mxu1 %v7742_v47  ;;  %6181 = vmatprep.subr.mxu0 %v7742_v47 }
 0x1ff   :  { %6068 = vmatpush3.msra.mxu1 %v7742_v47  ;;  %6182 = vmatpush3.msra.mxu0 %v7742_v47 }
 0x200   :  { %6069 = vmatprep.subr.mxu1 %v7750_v49  ;;  %6183 = vmatprep.subr.mxu0 %v7750_v49 }
 0x201   :  { %6070 = vmatpush3.msra.mxu1 %v7750_v49  ;;  %6184 = vmatpush3.msra.mxu0 %v7750_v49 }
 0x202   :  { %6071 = vmatprep.subr.mxu1 %v7758_v51  ;;  %6185 = vmatprep.subr.mxu0 %v7758_v51 }
 0x203   :  { %6072 = vmatpush3.msra.mxu1 %v7758_v51  ;;  %6186 = vmatpush3.msra.mxu0 %v7758_v51 }
 0x204   :  { %6073 = vmatprep.subr.mxu1 %v7766_v53  ;;  %6187 = vmatprep.subr.mxu0 %v7766_v53 }
 0x205   :  { %6074 = vmatpush3.msra.mxu1 %v7766_v53  ;;  %6188 = vmatpush3.msra.mxu0 %v7766_v53 }
 0x206   :  { %6075 = vmatprep.subr.mxu1 %v7774_v55  ;;  %6189 = vmatprep.subr.mxu0 %v7774_v55 }
 0x207   :  { %6076 = vmatpush3.msra.mxu1 %v7774_v55  ;;  %6190 = vmatpush3.msra.mxu0 %v7774_v55 }
 0x208   :  { %6077 = vmatprep.subr.mxu1 %v7782_v57  ;;  %6191 = vmatprep.subr.mxu0 %v7782_v57 }
 0x209   :  { %6078 = vmatpush3.msra.mxu1 %v7782_v57  ;;  %6192 = vmatpush3.msra.mxu0 %v7782_v57 }
 0x20a   :  { %6079 = vmatprep.subr.mxu1 %v7790_v59  ;;  %6193 = vmatprep.subr.mxu0 %v7790_v59 }
 0x20b   :  { %6080 = vmatpush3.msra.mxu1 %v7790_v59  ;;  %6194 = vmatpush3.msra.mxu0 %v7790_v59 }
 0x20c   :  { %6081 = vmatprep.subr.mxu1 %v7796_v61  ;;  %6195 = vmatprep.subr.mxu0 %v7796_v61 }
 0x20d   :  { %6082 = vmatpush3.msra.mxu1 %v7796_v61  ;;  %6196 = vmatpush3.msra.mxu0 %v7796_v61 }
 0x20e   :  { %6083 = vmatprep.subr.mxu1 %v7802_v60  ;;  %6197 = vmatprep.subr.mxu0 %v7802_v60 }
 0x20f   :  { %6084 = vmatpush3.msra.mxu1 %v7802_v60  ;;  %6198 = vmatpush3.msra.mxu0 %v7802_v60 }
 0x210   :  { %6086 = vmatmul.mubr.f32.vlgmr.msra.gmra.mxu1 %v533_v62  ;;  %6091 = vmatprep.subr.mxu1 %v7697_v33 }
 0x211   :  { %6243 = vmatprep.subr.mxu0 %v7697_v33  ;;  %6092 = vmatpush3.msra.mxu1 %v7697_v33 }
 0x212   :  { %6200 = vmatmul.mubr.f32.vlgmr.msra.gmra.mxu0 %v5433_v63  ;;  %6093 = vmatprep.subr.mxu1 %v7700_v35 }
 0x213   :  { %6244 = vmatpush3.msra.mxu0 %v7697_v33  ;;  %6094 = vmatpush3.msra.mxu1 %v7700_v35 }
 0x214   :  { %6245 = vmatprep.subr.mxu0 %v7700_v35  ;;  %6095 = vmatprep.subr.mxu1 %v7707_v37 }
 0x215   :  { %6246 = vmatpush3.msra.mxu0 %v7700_v35  ;;  %6096 = vmatpush3.msra.mxu1 %v7707_v37 }
 0x216   :  { %6247 = vmatprep.subr.mxu0 %v7707_v37  ;;  %6097 = vmatprep.subr.mxu1 %v7714_v39 }
 0x217   :  { %6248 = vmatpush3.msra.mxu0 %v7707_v37  ;;  %6098 = vmatpush3.msra.mxu1 %v7714_v39 }
 0x218   :  { %6249 = vmatprep.subr.mxu0 %v7714_v39  ;;  %6099 = vmatprep.subr.mxu1 %v7721_v41 }
 0x219   :  { %6250 = vmatpush3.msra.mxu0 %v7714_v39  ;;  %6100 = vmatpush3.msra.mxu1 %v7721_v41 }
 0x21a   :  { %6251 = vmatprep.subr.mxu0 %v7721_v41  ;;  %6101 = vmatprep.subr.mxu1 %v7728_v43 }
 0x21b   :  { %6252 = vmatpush3.msra.mxu0 %v7721_v41  ;;  %6102 = vmatpush3.msra.mxu1 %v7728_v43 }
 0x21c   :  { %6253 = vmatprep.subr.mxu0 %v7728_v43  ;;  %6103 = vmatprep.subr.mxu1 %v7735_v45 }
 0x21d   :  { %6254 = vmatpush3.msra.mxu0 %v7728_v43  ;;  %6104 = vmatpush3.msra.mxu1 %v7735_v45 }
 0x21e   :  { %6255 = vmatprep.subr.mxu0 %v7735_v45  ;;  %6105 = vmatprep.subr.mxu1 %v7742_v47 }
 0x21f   :  { %6256 = vmatpush3.msra.mxu0 %v7735_v45  ;;  %6106 = vmatpush3.msra.mxu1 %v7742_v47 }
 0x220   :  { %6257 = vmatprep.subr.mxu0 %v7742_v47  ;;  %6107 = vmatprep.subr.mxu1 %v7750_v49 }
 0x221   :  { %6258 = vmatpush3.msra.mxu0 %v7742_v47  ;;  %6108 = vmatpush3.msra.mxu1 %v7750_v49 }
 0x222   :  { %6259 = vmatprep.subr.mxu0 %v7750_v49  ;;  %6109 = vmatprep.subr.mxu1 %v7758_v51 }
 0x223   :  { %6260 = vmatpush3.msra.mxu0 %v7750_v49  ;;  %6110 = vmatpush3.msra.mxu1 %v7758_v51 }
 0x224   :  { %6261 = vmatprep.subr.mxu0 %v7758_v51  ;;  %6111 = vmatprep.subr.mxu1 %v7766_v53 }
 0x225   :  { %6262 = vmatpush3.msra.mxu0 %v7758_v51  ;;  %6112 = vmatpush3.msra.mxu1 %v7766_v53 }
 0x226   :  { %6263 = vmatprep.subr.mxu0 %v7766_v53  ;;  %6113 = vmatprep.subr.mxu1 %v7774_v55 }
 0x227   :  { %6264 = vmatpush3.msra.mxu0 %v7766_v53  ;;  %6114 = vmatpush3.msra.mxu1 %v7774_v55 }
 0x228   :  { %6265 = vmatprep.subr.mxu0 %v7774_v55  ;;  %6115 = vmatprep.subr.mxu1 %v7782_v57 }
 0x229   :  { %6266 = vmatpush3.msra.mxu0 %v7774_v55  ;;  %6116 = vmatpush3.msra.mxu1 %v7782_v57 }
 0x22a   :  { %6267 = vmatprep.subr.mxu0 %v7782_v57  ;;  %6088 = vmatprep.mubr.f32.mxu1 %v534_v1 }
 0x22b   :  { %6268 = vmatpush3.msra.mxu0 %v7782_v57  ;;  %6117 = vmatprep.subr.mxu1 %v7790_v59 }
 0x22c   :  { %6269 = vmatprep.subr.mxu0 %v7790_v59  ;;  %6089 = vmatmul.mubr.f32.gmra.mxu1 %v535_v2 }
 0x22d   :  { %6118 = vmatpush3.msra.mxu1 %v7790_v59  ;;  %6270 = vmatpush3.msra.mxu0 %v7790_v59 }
 0x22e   :  { %6119 = vmatprep.subr.mxu1 %v7796_v61  ;;  %6202 = vmatprep.mubr.f32.mxu0 %v5434_v3 }
 0x22f   :  { %6271 = vmatprep.subr.mxu0 %v7796_v61  ;;  %6120 = vmatpush3.msra.mxu1 %v7796_v61 }
 0x230   :  { %6203 = vmatmul.mubr.f32.gmra.mxu0 %v5435_v4  ;;  %6121 = vmatprep.subr.mxu1 %v7802_v60 }
 0x231   :  { %6272 = vmatpush3.msra.mxu0 %v7796_v61  ;;  %6122 = vmatpush3.msra.mxu1 %v7802_v60 }
 0x232   :  { %6273 = vmatprep.subr.mxu0 %v7802_v60  ;;  %6123 = vmatprep.mubr.f32.mxu1 %v5424_v5 }
 0x233   :  { %6274 = vmatpush3.msra.mxu0 %v7802_v60  ;;  %6124 = vmatmul.mubr.f32.vlgmr.msra.gmra.mxu1 %v5425_v6 }
 0x234   :  { %6129 = vmatprep.subr.mxu1 %v7697_v33  ;;  %6275 = vmatprep.mubr.f32.mxu0 %v5440_v7 }
 0x235   :  { %6319 = vmatprep.subr.mxu0 %v7697_v33  ;;  %6130 = vmatpush3.msra.mxu1 %v7697_v33 }
 0x236   :  { %6276 = vmatmul.mubr.f32.vlgmr.msra.gmra.mxu0 %v5441_v8  ;;  %6131 = vmatprep.subr.mxu1 %v7700_v35 }
 0x237   :  { %6320 = vmatpush3.msra.mxu0 %v7697_v33  ;;  %6126 = vmatprep.mubr.f32.mxu1 %v5426_v9 }
 0x238   :  { %6321 = vmatprep.subr.mxu0 %v7700_v35  ;;  %6132 = vmatpush3.msra.mxu1 %v7700_v35 }
 0x239   :  { %6322 = vmatpush3.msra.mxu0 %v7700_v35  ;;  %6127 = vmatmul.mubr.f32.gmra.mxu1 %v5427_v10 }
 0x23a   :  { %6133 = vmatprep.subr.mxu1 %v7707_v37  ;;  %6323 = vmatprep.subr.mxu0 %v7707_v37 }
 0x23b   :  { %6134 = vmatpush3.msra.mxu1 %v7707_v37  ;;  %6324 = vmatpush3.msra.mxu0 %v7707_v37 }
 0x23c   :  { %6135 = vmatprep.subr.mxu1 %v7714_v39  ;;  %6325 = vmatprep.subr.mxu0 %v7714_v39 }
 0x23d   :  { %6136 = vmatpush3.msra.mxu1 %v7714_v39  ;;  %6326 = vmatpush3.msra.mxu0 %v7714_v39 }
 0x23e   :  { %6137 = vmatprep.subr.mxu1 %v7721_v41  ;;  %6327 = vmatprep.subr.mxu0 %v7721_v41 }
 0x23f   :  { %6138 = vmatpush3.msra.mxu1 %v7721_v41  ;;  %6328 = vmatpush3.msra.mxu0 %v7721_v41 }
 0x240   :  { %6139 = vmatprep.subr.mxu1 %v7728_v43  ;;  %6329 = vmatprep.subr.mxu0 %v7728_v43 }
 0x241   :  { %6140 = vmatpush3.msra.mxu1 %v7728_v43  ;;  %6330 = vmatpush3.msra.mxu0 %v7728_v43 }
 0x242   :  { %6141 = vmatprep.subr.mxu1 %v7735_v45  ;;  %6331 = vmatprep.subr.mxu0 %v7735_v45 }
 0x243   :  { %6142 = vmatpush3.msra.mxu1 %v7735_v45  ;;  %6332 = vmatpush3.msra.mxu0 %v7735_v45 }
 0x244   :  { %6143 = vmatprep.subr.mxu1 %v7742_v47  ;;  %6333 = vmatprep.subr.mxu0 %v7742_v47 }
 0x245   :  { %6144 = vmatpush3.msra.mxu1 %v7742_v47  ;;  %6334 = vmatpush3.msra.mxu0 %v7742_v47 }
 0x246   :  { %6145 = vmatprep.subr.mxu1 %v7750_v49  ;;  %6335 = vmatprep.subr.mxu0 %v7750_v49 }
 0x247   :  { %6146 = vmatpush3.msra.mxu1 %v7750_v49  ;;  %6336 = vmatpush3.msra.mxu0 %v7750_v49 }
 0x248   :  { %6147 = vmatprep.subr.mxu1 %v7758_v51  ;;  %6337 = vmatprep.subr.mxu0 %v7758_v51 }
 0x249   :  { %6148 = vmatpush3.msra.mxu1 %v7758_v51  ;;  %6338 = vmatpush3.msra.mxu0 %v7758_v51 }
 0x24a   :  { %6149 = vmatprep.subr.mxu1 %v7766_v53  ;;  %6339 = vmatprep.subr.mxu0 %v7766_v53 }
 0x24b   :  { %6150 = vmatpush3.msra.mxu1 %v7766_v53  ;;  %6340 = vmatpush3.msra.mxu0 %v7766_v53 }
 0x24c   :  { %6151 = vmatprep.subr.mxu1 %v7774_v55  ;;  %6341 = vmatprep.subr.mxu0 %v7774_v55 }
 0x24d   :  { %6152 = vmatpush3.msra.mxu1 %v7774_v55  ;;  %6342 = vmatpush3.msra.mxu0 %v7774_v55 }
 0x24e   :  { %6153 = vmatprep.subr.mxu1 %v7782_v57  ;;  %6343 = vmatprep.subr.mxu0 %v7782_v57 }
 0x24f   :  { %6154 = vmatpush3.msra.mxu1 %v7782_v57  ;;  %6344 = vmatpush3.msra.mxu0 %v7782_v57 }
 0x250   :  { %6155 = vmatprep.subr.mxu1 %v7790_v59  ;;  %6345 = vmatprep.subr.mxu0 %v7790_v59 }
 0x251   :  { %6156 = vmatpush3.msra.mxu1 %v7790_v59  ;;  %6346 = vmatpush3.msra.mxu0 %v7790_v59 }
 0x252   :  { %6157 = vmatprep.subr.mxu1 %v7796_v61  ;;  %6347 = vmatprep.subr.mxu0 %v7796_v61 }
 0x253   :  { %6158 = vmatpush3.msra.mxu1 %v7796_v61  ;;  %6348 = vmatpush3.msra.mxu0 %v7796_v61 }
 0x254   :  { %6159 = vmatprep.subr.mxu1 %v7802_v60  ;;  %6349 = vmatprep.subr.mxu0 %v7802_v60 }
 0x255   :  { %6160 = vmatpush3.msra.mxu1 %v7802_v60  ;;  %6161 = vmatprep.mubr.f32.mxu1 %v5428_v11 }
 0x256   :  { %6350 = vmatpush3.msra.mxu0 %v7802_v60  ;;  %6162 = vmatmul.mubr.f32.vlgmr.msra.gmra.mxu1 %v5429_v12 }
 0x257   :  { %6205 = vmatprep.subr.mxu1 %v7697_v33  ;;  %6164 = vmatprep.mubr.f32.mxu1 %v5430_v13 }
 0x258   :  { %6206 = vmatpush3.msra.mxu1 %v7697_v33  ;;  %6278 = vmatprep.mubr.f32.mxu0 %v5442_v14 }
 0x259   :  { %6207 = vmatprep.subr.mxu1 %v7700_v35  ;;  %6279 = vmatmul.mubr.f32.gmra.mxu0 %v5443_v15 }
 0x25a   :  { %6208 = vmatpush3.msra.mxu1 %v7700_v35  ;;  %6351 = vmatprep.mubr.f32.mxu0 %v5448_v16 }
 0x25b   :  { %6165 = vmatmul.mubr.f32.gmra.mxu1 %v5431_v17  ;;  %6209 = vmatprep.subr.mxu1 %v7707_v37 }
 0x25c   :  { %6210 = vmatpush3.msra.mxu1 %v7707_v37  ;;  %6237 = vmatprep.mubr.f32.mxu1 %v5436_v18 }
 0x25d   :  { %6211 = vmatprep.subr.mxu1 %v7714_v39  ;;  %6352 = vmatmul.mubr.f32.vlgmr.msra.gmra.mxu0 %v5449_v19 }
 0x25e   :  { %6212 = vmatpush3.msra.mxu1 %v7714_v39  ;;  %6354 = vmatprep.mubr.f32.mxu0 %v5450_v20 }
 0x25f   :  { %6213 = vmatprep.subr.mxu1 %v7721_v41 }
 0x260   :  { %6214 = vmatpush3.msra.mxu1 %v7721_v41 }
 0x261   :  { %6215 = vmatprep.subr.mxu1 %v7728_v43  ;;  %6355 = vmatmul.mubr.f32.gmra.mxu0 %v5451_v21 }
 0x262   :  { %6216 = vmatpush3.msra.mxu1 %v7728_v43 }
 0x263   :  { %6217 = vmatprep.subr.mxu1 %v7735_v45 }
 0x264   :  { %6218 = vmatpush3.msra.mxu1 %v7735_v45 }
 0x265   :  { %6219 = vmatprep.subr.mxu1 %v7742_v47 }
 0x266   :  { %6220 = vmatpush3.msra.mxu1 %v7742_v47 }
 0x267   :  { %6221 = vmatprep.subr.mxu1 %v7750_v49 }
 0x268   :  { %6222 = vmatpush3.msra.mxu1 %v7750_v49 }
 0x269   :  { %6223 = vmatprep.subr.mxu1 %v7758_v51 }
 0x26a   :  { %6224 = vmatpush3.msra.mxu1 %v7758_v51 }
 0x26b   :  { %6225 = vmatprep.subr.mxu1 %v7766_v53 }
 0x26c   :  { %6226 = vmatpush3.msra.mxu1 %v7766_v53 }
 0x26d   :  { %6227 = vmatprep.subr.mxu1 %v7774_v55 }
 0x26e   :  { %6228 = vmatpush3.msra.mxu1 %v7774_v55 }
 0x26f   :  { %6229 = vmatprep.subr.mxu1 %v7782_v57 }
 0x270   :  { %6230 = vmatpush3.msra.mxu1 %v7782_v57 }
 0x271   :  { %6231 = vmatprep.subr.mxu1 %v7790_v59 }
 0x272   :  { %6232 = vmatpush3.msra.mxu1 %v7790_v59 }
 0x273   :  { %6233 = vmatprep.subr.mxu1 %v7796_v61 }
 0x274   :  { %6234 = vmatpush3.msra.mxu1 %v7796_v61 }
 0x275   :  { %6235 = vmatprep.subr.mxu1 %v7802_v60 }
 0x276   :  { %6236 = vmatpush3.msra.mxu1 %v7802_v60 }
 0x277   :  { %6238 = vmatmul.mubr.f32.vlgmr.msra.gmra.mxu1 %v5437_v22  ;;  %6281 = vmatprep.subr.mxu1 %v7697_v33 }
 0x278   :  { %6282 = vmatpush3.msra.mxu1 %v7697_v33  ;;  %6240 = vmatprep.mubr.f32.mxu1 %v5438_v23 }
 0x279   :  { %6283 = vmatprep.subr.mxu1 %v7700_v35 }
 0x27a   :  { %6284 = vmatpush3.msra.mxu1 %v7700_v35 }
 0x27b   :  { %6241 = vmatmul.mubr.f32.gmra.mxu1 %v5439_v24  ;;  %6285 = vmatprep.subr.mxu1 %v7707_v37 }
 0x27c   :  { %6286 = vmatpush3.msra.mxu1 %v7707_v37  ;;  %6313 = vmatprep.mubr.f32.mxu1 %v5444_v25 }
 0x27d   :  { %6287 = vmatprep.subr.mxu1 %v7714_v39 }
 0x27e   :  { %6288 = vmatpush3.msra.mxu1 %v7714_v39 }
 0x27f   :  { %6289 = vmatprep.subr.mxu1 %v7721_v41 }
 0x280   :  { %6290 = vmatpush3.msra.mxu1 %v7721_v41 }
 0x281   :  { %6291 = vmatprep.subr.mxu1 %v7728_v43 }
 0x282   :  { %6292 = vmatpush3.msra.mxu1 %v7728_v43 }
 0x283   :  { %6293 = vmatprep.subr.mxu1 %v7735_v45 }
 0x284   :  { %6294 = vmatpush3.msra.mxu1 %v7735_v45 }
 0x285   :  { %6295 = vmatprep.subr.mxu1 %v7742_v47 }
 0x286   :  { %6296 = vmatpush3.msra.mxu1 %v7742_v47 }
 0x287   :  { %6297 = vmatprep.subr.mxu1 %v7750_v49 }
 0x288   :  { %6298 = vmatpush3.msra.mxu1 %v7750_v49 }
 0x289   :  { %6299 = vmatprep.subr.mxu1 %v7758_v51 }
 0x28a   :  { %6300 = vmatpush3.msra.mxu1 %v7758_v51 }
 0x28b   :  { %6301 = vmatprep.subr.mxu1 %v7766_v53 }
 0x28c   :  { %6302 = vmatpush3.msra.mxu1 %v7766_v53 }
 0x28d   :  { %6303 = vmatprep.subr.mxu1 %v7774_v55 }
 0x28e   :  { %6304 = vmatpush3.msra.mxu1 %v7774_v55 }
 0x28f   :  { %6305 = vmatprep.subr.mxu1 %v7782_v57 }
 0x290   :  { %6306 = vmatpush3.msra.mxu1 %v7782_v57 }
 0x291   :  { %6307 = vmatprep.subr.mxu1 %v7790_v59 }
 0x292   :  { %6308 = vmatpush3.msra.mxu1 %v7790_v59 }
 0x293   :  { %6309 = vmatprep.subr.mxu1 %v7796_v61 }
 0x294   :  { %6310 = vmatpush3.msra.mxu1 %v7796_v61 }
 0x295   :  { %6311 = vmatprep.subr.mxu1 %v7802_v60 }
 0x296   :  { %6312 = vmatpush3.msra.mxu1 %v7802_v60 }
 0x297   :  { %6314 = vmatmul.mubr.f32.vlgmr.msra.gmra.mxu1 %v5445_v26  ;;  %6357 = vmatprep.subr.mxu1 %v7697_v33 }
 0x298   :  { %6358 = vmatpush3.msra.mxu1 %v7697_v33  ;;  %6316 = vmatprep.mubr.f32.mxu1 %v5446_v27  ;;  %v1374_v33 = vld [vmem:[#allocation2 + $0x8] sm:$0xff] }
 0x299   :  { %6359 = vmatprep.subr.mxu1 %v7700_v35  ;;  %6395 = vmatprep.subr.mxu0 %v1374_v33 }
 0x29a   :  { %6360 = vmatpush3.msra.mxu1 %v7700_v35  ;;  %6396 = vmatpush3.msra.mxu0 %v1374_v33 }
 0x29b   :  { %6317 = vmatmul.mubr.f32.gmra.mxu1 %v5447_v28  ;;  %6361 = vmatprep.subr.mxu1 %v7707_v37 }
 0x29c   :  { %6362 = vmatpush3.msra.mxu1 %v7707_v37  ;;  %6389 = vmatprep.mubr.f32.mxu1 %v5452_v29 }
 0x29d   :  { %6363 = vmatprep.subr.mxu1 %v7714_v39  ;;  %6397 = vmatprep.subr.mxu0 %v1373_v34 }
 0x29e   :  { %6364 = vmatpush3.msra.mxu1 %v7714_v39  ;;  %6398 = vmatpush3.msra.mxu0 %v1373_v34 }
 0x29f   :  { %6365 = vmatprep.subr.mxu1 %v7721_v41 }
 0x2a0   :  { %6366 = vmatpush3.msra.mxu1 %v7721_v41 }
 0x2a1   :  { %6367 = vmatprep.subr.mxu1 %v7728_v43 }
 0x2a2   :  { %6368 = vmatpush3.msra.mxu1 %v7728_v43 }
 0x2a3   :  { %6369 = vmatprep.subr.mxu1 %v7735_v45 }
 0x2a4   :  { %6370 = vmatpush3.msra.mxu1 %v7735_v45 }
 0x2a5   :  { %6371 = vmatprep.subr.mxu1 %v7742_v47 }
 0x2a6   :  { %6372 = vmatpush3.msra.mxu1 %v7742_v47 }
 0x2a7   :  { %6373 = vmatprep.subr.mxu1 %v7750_v49 }
 0x2a8   :  { %6374 = vmatpush3.msra.mxu1 %v7750_v49 }
 0x2a9   :  { %6375 = vmatprep.subr.mxu1 %v7758_v51 }
 0x2aa   :  { %6376 = vmatpush3.msra.mxu1 %v7758_v51 }
 0x2ab   :  { %6377 = vmatprep.subr.mxu1 %v7766_v53 }
 0x2ac   :  { %6378 = vmatpush3.msra.mxu1 %v7766_v53 }
 0x2ad   :  { %6379 = vmatprep.subr.mxu1 %v7774_v55 }
 0x2ae   :  { %6380 = vmatpush3.msra.mxu1 %v7774_v55 }
 0x2af   :  { %6381 = vmatprep.subr.mxu1 %v7782_v57 }
 0x2b0   :  { %6382 = vmatpush3.msra.mxu1 %v7782_v57 }
 0x2b1   :  { %6383 = vmatprep.subr.mxu1 %v7790_v59 }
 0x2b2   :  { %6384 = vmatpush3.msra.mxu1 %v7790_v59 }
 0x2b3   :  { %6385 = vmatprep.subr.mxu1 %v7796_v61 }
 0x2b4   :  { %6386 = vmatpush3.msra.mxu1 %v7796_v61 }
 0x2b5   :  { %6387 = vmatprep.subr.mxu1 %v7802_v60 }
 0x2b6   :  { %6388 = vmatpush3.msra.mxu1 %v7802_v60 }
 0x2b7   :  { %6390 = vmatmul.mubr.f32.vlgmr.msra.gmra.mxu1 %v5453_v30 }
 0x2b8   :  { %6392 = vmatprep.mubr.f32.mxu1 %v5454_v31 }
 0x2bb   :  { %6393 = vmatmul.mubr.f32.gmra.mxu1 %v5455_v32 }
 0x2d0   :  { %v6087_v35 = vpop.f32.mrf.mxu1 }
 0x2d2   :  { %v602_v36 = vpop.f32.mrf.mxu1  ;;  %v6201_v45 = vpop.f32.mrf.mxu0 }
 0x2d4   :  { %v880_v47 = vpop.f32.mrf.mxu0 }
 0x2ec   :  { %v6090_v37 = vpop.f32.mrf.mxu1 }
 0x2ee   :  { %v612_v38 = vpop.f32.mrf.mxu1 }
 0x2f0   :  { %v6204_v49 = vpop.f32.mrf.mxu0 }
 0x2f2   :  { %v890_v51 = vpop.f32.mrf.mxu0 }
 0x2f3   :  { %v6125_v39 = vpop.f32.mrf.mxu1 }
 0x2f4   :  { %v712_v57 = vmax.f32 %v6087_v35, %v6125_v39 }
 0x2f5   :  { %v692_v40 = vpop.f32.mrf.mxu1 }
 0x2f6   :  { %v6277_v53 = vpop.f32.mrf.mxu0  ;;  %v711_v56 = vmax.f32 %v602_v36, %v692_v40  ;;  %v1484_v40 = vld [vmem:[%s8779_s29] sm:$0xff] }
 0x2f8   :  { %v1068_v55 = vpop.f32.mrf.mxu0 }
 0x2f9   :  { %v6128_v41 = vpop.f32.mrf.mxu1 }
 0x2fa   :  { %v714_v1 = vmax.f32 %v6090_v37, %v6128_v41  ;;  %v5465_v41 = vld [vmem:[%s8779_s29 + $0x20] sm:$0xff] }
 0x2fb   :  { %v702_v42 = vpop.f32.mrf.mxu1  ;;  %6427 = vmatprep.mubr.msk.f32.mxu1 %vm1488_vm3, %v5465_v41  ;;  %v1990_v41 = vld [vmem:[#allocation7 + $0x20] sm:$0xff] }
 0x2fc   :  { %v713_v63 = vmax.f32 %v612_v38, %v702_v42 }
 0x316   :  { %v6163_v43 = vpop.f32.mrf.mxu1 }
 0x317   :  { %v806_v60 = vmax.f32 %v712_v57, %v6163_v43  ;;  %v1692_v57 = vld [vmem:[#allocation7 + $0x18] sm:$0xff] }
 0x318   :  { %v786_v44 = vpop.f32.mrf.mxu1 }
 0x319   :  { %v6280_v59 = vpop.f32.mrf.mxu0  ;;  %v805_v61 = vmax.f32 %v711_v56, %v786_v44  ;;  %v900_v5 = vmax.f32 %v806_v60, %v6201_v45  ;;  %v5456_v44 = vld [vmem:[#allocation5] ss:$0 sm:$0xff]  ;;  %v5466_v56 = vld [vmem:[%s8779_s29 + $0x28] sm:$0xff]  ;;  %v5468_v60 = vld [vmem:[%s8779_s29 + $0x38] sm:$0xff] }
 0x31b   :  { %v6166_v46 = vpop.f32.mrf.mxu1  ;;  %v1078_v2 = vpop.f32.mrf.mxu0  ;;  %v899_v3 = vmax.f32 %v805_v61, %v880_v47  ;;  %v1691_v61 = vld [vmem:[#allocation7 + $0x10] sm:$0xff] }
 0x31c   :  { %v808_v6 = vmax.f32 %v714_v1, %v6166_v46  ;;  %v1586_v1 = vld [vmem:[#allocation7] sm:$0xff] }
 0x31d   :  { %v796_v48 = vpop.f32.mrf.mxu1  ;;  %v6353_v8 = vpop.f32.mrf.mxu0 }
 0x31e   :  { %v807_v4 = vmax.f32 %v713_v63, %v796_v48  ;;  %v902_v12 = vmax.f32 %v808_v6, %v6204_v49  ;;  %v1587_v63 = vld [vmem:[#allocation7 + $0x8] sm:$0xff] }
 0x31f   :  { %v1256_v14 = vpop.f32.mrf.mxu0 }
 0x320   :  { %v901_v11 = vmax.f32 %v807_v4, %v890_v51 }
 0x321   :  { %v6356_v22 = vpop.f32.mrf.mxu0 }
 0x323   :  { %v1266_v30 = vpop.f32.mrf.mxu0 }
 0x337   :  { %v6239_v50 = vpop.f32.mrf.mxu1 }
 0x338   :  { %v994_v10 = vmax.f32 %v900_v5, %v6239_v50 }
 0x339   :  { %v974_v52 = vpop.f32.mrf.mxu1 }
 0x33a   :  { %v993_v9 = vmax.f32 %v899_v3, %v974_v52  ;;  %v1088_v17 = vmax.f32 %v994_v10, %v6277_v53  ;;  %v5481_v10 = vld [vmem:[%s8779_s29 + $0x40] sm:$0xff] }
 0x33b   :  { %v6242_v54 = vpop.f32.mrf.mxu1 }
 0x33c   :  { %v1087_v15 = vmax.f32 %v993_v9, %v1068_v55  ;;  %v996_v18 = vmax.f32 %v902_v12, %v6242_v54  ;;  %v1485_v55 = vld [vmem:[%s8779_s29 + $0x8] sm:$0xff]  ;;  %v5483_v12 = vld [vmem:[%s8779_s29 + $0x50] sm:$0xff] }
 0x33d   :  { %v984_v58 = vpop.f32.mrf.mxu1 }
 0x33e   :  { %v995_v16 = vmax.f32 %v901_v11, %v984_v58  ;;  %v1090_v24 = vmax.f32 %v996_v18, %v6280_v59  ;;  %v1486_v58 = vld [vmem:[%s8779_s29 + $0x10] sm:$0xff]  ;;  %v5482_v11 = vld [vmem:[%s8779_s29 + $0x48] sm:$0xff]  ;;  %v5505_v18 = vld [vmem:[%s8779_s29 + $0x80] sm:$0xff] }
 0x33f   :  { %v5467_v59 = vld [vmem:[%s8779_s29 + $0x30] sm:$0xff] }
 0x340   :  { %v1089_v23 = vmax.f32 %v995_v16, %v1078_v2  ;;  %v5495_v16 = vld [vmem:[%s8779_s29 + $0x70] sm:$0xff] }
 0x357   :  { %v6315_v62 = vpop.f32.mrf.mxu1 }
 0x358   :  { %v1182_v20 = vmax.f32 %v1088_v17, %v6315_v62  ;;  %v1487_v62 = vld [vmem:[%s8779_s29 + $0x18] sm:$0xff] }
 0x359   :  { %v1162_v7 = vpop.f32.mrf.mxu1  ;;  %v5496_v17 = vld [vmem:[%s8779_s29 + $0x78] sm:$0xff] }
 0x35a   :  { %v1181_v19 = vmax.f32 %v1087_v15, %v1162_v7  ;;  %v1276_v28 = vmax.f32 %v1182_v20, %v6353_v8  ;;  %v5494_v15 = vld [vmem:[%s8779_s29 + $0x68] sm:$0xff]  ;;  %v5507_v20 = vld [vmem:[%s8779_s29 + $0x90] sm:$0xff] }
 0x35b   :  { %v6318_v13 = vpop.f32.mrf.mxu1 }
 0x35c   :  { %v1275_v26 = vmax.f32 %v1181_v19, %v1256_v14  ;;  %v1184_v29 = vmax.f32 %v1090_v24, %v6318_v13  ;;  %v5484_v13 = vld [vmem:[%s8779_s29 + $0x58] sm:$0xff]  ;;  %v5493_v14 = vld [vmem:[%s8779_s29 + $0x60] sm:$0xff]  ;;  %v5506_v19 = vld [vmem:[%s8779_s29 + $0x88] sm:$0xff] }
 0x35d   :  { %v1172_v21 = vpop.f32.mrf.mxu1  ;;  %v5519_v24 = vld [vmem:[%s8779_s29 + $0xb0] sm:$0xff] }
 0x35e   :  { %v1183_v27 = vmax.f32 %v1089_v23, %v1172_v21  ;;  %v1278_v36 = vmax.f32 %v1184_v29, %v6356_v22  ;;  %v5508_v21 = vld [vmem:[%s8779_s29 + $0x98] sm:$0xff]  ;;  %v5517_v22 = vld [vmem:[%s8779_s29 + $0xa0] sm:$0xff]  ;;  %v5518_v23 = vld [vmem:[%s8779_s29 + $0xa8] sm:$0xff] }
 0x35f   :  { %v5532_v29 = vld [vmem:[%s8779_s29 + $0xd8] sm:$0xff] }
 0x360   :  { %v1277_v35 = vmax.f32 %v1183_v27, %v1266_v30  ;;  %v5530_v27 = vld [vmem:[%s8779_s29 + $0xc8] sm:$0xff]  ;;  %v5541_v30 = vld [vmem:[%s8779_s29 + $0xe0] sm:$0xff] }
 0x377   :  { %v6391_v25 = vpop.f32.mrf.mxu1 }
 0x378   :  { %v8140_v33 = vmax.f32 %v1276_v28, %v6391_v25  ;;  %v5520_v25 = vld [vmem:[%s8779_s29 + $0xb8] sm:$0xff]  ;;  %v5531_v28 = vld [vmem:[%s8779_s29 + $0xd0] sm:$0xff] }
 0x379   :  { %v1350_v31 = vpop.f32.mrf.mxu1 }
 0x37a   :  { %v8138_v32 = vmax.f32 %v1275_v26, %v1350_v31  ;;  %v5529_v26 = vld [vmem:[%s8779_s29 + $0xc0] sm:$0xff]  ;;  %v5542_v31 = vld [vmem:[%s8779_s29 + $0xe8] sm:$0xff] }
 0x37b   :  { %v6394_v34 = vpop.f32.mrf.mxu1 }
 0x37c   :  { %6399 = vmatprep.mubr.msk.f32.mxu0 %vm1382_vm2, %v8138_v32  ;;  %v8148_v39 = vmax.f32 %v1278_v36, %v6394_v34  ;;  %v5543_v34 = vld [vmem:[%s8779_s29 + $0xf0] sm:$0xff]  ;;  %v5553_v36 = vld [vmem:[%s8779_s29 + $0x100] sm:$0xff] }
 0x37d   :  { %v1360_v37 = vpop.f32.mrf.mxu1  ;;  %6400 = vmatmul.mubr.msk.f32.vlgmr.msra.gmra.mxu0 %vm1382_vm2, %v8140_v33 }
 0x37e   :  { %v8146_v38 = vmax.f32 %v1277_v35, %v1360_v37  ;;  %v5544_v35 = vld [vmem:[%s8779_s29 + $0xf8] sm:$0xff]  ;;  %v5554_v37 = vld [vmem:[%s8779_s29 + $0x108] sm:$0xff] }
 0x380   :  { %6402 = vmatprep.mubr.msk.f32.mxu0 %vm1382_vm2, %v8146_v38 }
 0x381   :  { %6403 = vmatmul.mubr.msk.f32.gmra.mxu0 %vm1382_vm2, %v8148_v39 }
 0x382   :  { %6413 = vmatprep.mubr.msk.f32.mxu0 %vm1488_vm3, %v1484_v40  ;;  %v1991_v40 = vld [vmem:[#allocation7 + $0x28] sm:$0xff] }
 0x43d   :  { %v6401_v42 = vpop.f32.mrf.mxu0 }
 0x43e   :  { %v1467_v48 = vadd.f32 %v6401_v42, %v5456_v44  ;;  %v2197_v42 = vld [vmem:[#allocation7 + $0x38] sm:$0xff] }
 0x43f   :  { %v1461_v43 = vpop.f32.mrf.mxu0 }
 0x440   :  { %v1462_v51 = vadd.f32 %v5456_v44, %v1461_v43  ;;  %v8170_v53 = vmax.f32 %v1467_v48, 0.0 }
 0x441   :  { %v6404_v45 = vpop.f32.mrf.mxu0 }
 0x442   :  { %v1477_v46 = vadd.f32 %v6404_v45, %v5456_v44  ;;  %v8176_v54 = vmax.f32 %v1462_v51, 0.0 }
 0x443   :  { %v1471_v47 = vpop.f32.mrf.mxu0 }
 0x444   :  { %v8162_v49 = vmax.f32 %v1477_v46, 0.0  ;;  %v1472_v50 = vadd.f32 %v5456_v44, %v1471_v47 }
 0x446   :  { %v8164_v52 = vmax.f32 %v1472_v50, 0.0  ;;  %6405 = vmatprep.subr.mxu0 %v8162_v49  ;;  %6419 = vmatprep.subr.mxu1 %v8162_v49 }
 0x447   :  { %6406 = vmatpush3.msra.mxu0 %v8162_v49  ;;  %6420 = vmatpush3.msra.mxu1 %v8162_v49 }
 0x448   :  { %6407 = vmatprep.subr.mxu0 %v8164_v52  ;;  %6421 = vmatprep.subr.mxu1 %v8164_v52 }
 0x449   :  { %6408 = vmatpush3.msra.mxu0 %v8164_v52  ;;  %6422 = vmatpush3.msra.mxu1 %v8164_v52 }
 0x44a   :  { %6409 = vmatprep.subr.mxu0 %v8170_v53  ;;  %6423 = vmatprep.subr.mxu1 %v8170_v53 }
 0x44b   :  { %6410 = vmatpush3.msra.mxu0 %v8170_v53  ;;  %6424 = vmatpush3.msra.mxu1 %v8170_v53 }
 0x44c   :  { %6411 = vmatprep.subr.mxu0 %v8176_v54  ;;  %6425 = vmatprep.subr.mxu1 %v8176_v54 }
 0x44d   :  { %6412 = vmatpush3.msra.mxu0 %v8176_v54  ;;  %6426 = vmatpush3.msra.mxu1 %v8176_v54 }
 0x44e   :  { %6414 = vmatmul.mubr.msk.f32.vlgmr.msra.gmra.mxu0 %vm1488_vm3, %v1485_v55  ;;  %6428 = vmatmul.mubr.msk.f32.vlgmr.msra.gmra.mxu1 %vm1488_vm3, %v5466_v56 }
 0x44f   :  { %6433 = vmatprep.subr.mxu0 %v1692_v57  ;;  %6416 = vmatprep.mubr.msk.f32.mxu0 %vm1488_vm3, %v1486_v58 }
 0x450   :  { %6434 = vmatpush3.msra.mxu0 %v1692_v57  ;;  %6430 = vmatprep.mubr.msk.f32.mxu1 %vm1488_vm3, %v5467_v59  ;;  %v2196_v57 = vld [vmem:[#allocation7 + $0x30] sm:$0xff]  ;;  %v2403_v59 = vld [vmem:[#allocation7 + $0x48] sm:$0xff] }
 0x451   :  { %6435 = vmatprep.subr.mxu0 %v1691_v61  ;;  %6443 = vmatprep.subr.mxu1 %v1587_v63 }
 0x452   :  { %6436 = vmatpush3.msra.mxu0 %v1691_v61  ;;  %6431 = vmatmul.mubr.msk.f32.gmra.mxu1 %vm1488_vm3, %v5468_v60 }
 0x453   :  { %6417 = vmatmul.mubr.msk.f32.gmra.mxu0 %vm1488_vm3, %v1487_v62  ;;  %6453 = vmatprep.subr.mxu0 %v8162_v49 }
 0x454   :  { %6444 = vmatpush3.msra.mxu1 %v1587_v63  ;;  %v2402_v63 = vld [vmem:[#allocation7 + $0x40] sm:$0xff] }
 0x455   :  { %6445 = vmatprep.subr.mxu1 %v1586_v1 }
 0x456   :  { %6446 = vmatpush3.msra.mxu1 %v1586_v1 }
 0x457   :  { %6467 = vmatprep.subr.mxu1 %v1991_v40 }
 0x50e   :  { %v6415_v2 = vpop.f32.mrf.mxu0  ;;  %v6429_v3 = vpop.f32.mrf.mxu1 }
 0x510   :  { %v1567_v4 = vpop.f32.mrf.mxu0  ;;  %v1671_v5 = vpop.f32.mrf.mxu1 }
 0x511   :  { %6437 = vmatprep.mubr.msk.f32.mxu0 %vm1382_vm2, %v1671_v5  ;;  %6447 = vmatprep.mubr.msk.f32.mxu1 %vm1382_vm2, %v1567_v4 }
 0x512   :  { %v6432_v6 = vpop.f32.mrf.mxu1  ;;  %6438 = vmatmul.mubr.msk.f32.vlgmr.msra.gmra.mxu0 %vm1382_vm2, %v6429_v3  ;;  %6448 = vmatmul.mubr.msk.f32.vlgmr.msra.gmra.mxu1 %vm1382_vm2, %v6415_v2  ;;  %v2609_v2 = vld [vmem:[#allocation7 + $0x58] sm:$0xff] }
 0x513   :  { %v6418_v7 = vpop.f32.mrf.mxu0  ;;  %6454 = vmatpush3.msra.mxu0 %v8162_v49  ;;  %6468 = vmatpush3.msra.mxu1 %v1991_v40 }
 0x514   :  { %6455 = vmatprep.subr.mxu0 %v8164_v52  ;;  %v1681_v8 = vpop.f32.mrf.mxu1  ;;  %6469 = vmatprep.subr.mxu1 %v1990_v41 }
 0x515   :  { %v1577_v9 = vpop.f32.mrf.mxu0  ;;  %6456 = vmatpush3.msra.mxu0 %v8164_v52  ;;  %6440 = vmatprep.mubr.msk.f32.mxu0 %vm1382_vm2, %v1681_v8  ;;  %v2815_v8 = vld [vmem:[#allocation7 + $0x68] sm:$0xff] }
 0x516   :  { %6450 = vmatprep.mubr.msk.f32.mxu1 %vm1382_vm2, %v1577_v9  ;;  %6457 = vmatprep.subr.mxu0 %v8170_v53 }
 0x517   :  { %6441 = vmatmul.mubr.msk.f32.gmra.mxu0 %vm1382_vm2, %v6432_v6  ;;  %6451 = vmatmul.mubr.msk.f32.gmra.mxu1 %vm1382_vm2, %v6418_v7  ;;  %v2608_v6 = vld [vmem:[#allocation7 + $0x50] sm:$0xff] }
 0x518   :  { %6458 = vmatpush3.msra.mxu0 %v8170_v53  ;;  %6461 = vmatprep.mubr.msk.f32.mxu0 %vm1488_vm3, %v5481_v10 }
 0x519   :  { %6459 = vmatprep.subr.mxu0 %v8176_v54  ;;  %6470 = vmatpush3.msra.mxu1 %v1990_v41 }
 0x51a   :  { %6460 = vmatpush3.msra.mxu0 %v8176_v54  ;;  %6491 = vmatprep.subr.mxu1 %v2197_v42 }
 0x51b   :  { %6477 = vmatprep.subr.mxu0 %v8162_v49  ;;  %6462 = vmatmul.mubr.msk.f32.vlgmr.msra.gmra.mxu0 %vm1488_vm3, %v5482_v11 }
 0x51c   :  { %6478 = vmatpush3.msra.mxu0 %v8162_v49  ;;  %6464 = vmatprep.mubr.msk.f32.mxu0 %vm1488_vm3, %v5483_v12  ;;  %v2814_v12 = vld [vmem:[#allocation7 + $0x60] sm:$0xff] }
 0x51d   :  { %6479 = vmatprep.subr.mxu0 %v8164_v52 }
 0x51e   :  { %6480 = vmatpush3.msra.mxu0 %v8164_v52 }
 0x51f   :  { %6481 = vmatprep.subr.mxu0 %v8170_v53  ;;  %6465 = vmatmul.mubr.msk.f32.gmra.mxu0 %vm1488_vm3, %v5484_v13 }
 0x520   :  { %6482 = vmatpush3.msra.mxu0 %v8170_v53  ;;  %6485 = vmatprep.mubr.msk.f32.mxu0 %vm1488_vm3, %v5493_v14  ;;  %v3021_v14 = vld [vmem:[#allocation7 + $0x78] sm:$0xff] }
 0x521   :  { %6483 = vmatprep.subr.mxu0 %v8176_v54 }
 0x522   :  { %6484 = vmatpush3.msra.mxu0 %v8176_v54 }
 0x523   :  { %6501 = vmatprep.subr.mxu0 %v8162_v49  ;;  %6486 = vmatmul.mubr.msk.f32.vlgmr.msra.gmra.mxu0 %vm1488_vm3, %v5494_v15 }
 0x524   :  { %6502 = vmatpush3.msra.mxu0 %v8162_v49  ;;  %6488 = vmatprep.mubr.msk.f32.mxu0 %vm1488_vm3, %v5495_v16 }
 0x525   :  { %6503 = vmatprep.subr.mxu0 %v8164_v52 }
 0x526   :  { %6504 = vmatpush3.msra.mxu0 %v8164_v52 }
 0x527   :  { %6505 = vmatprep.subr.mxu0 %v8170_v53  ;;  %6489 = vmatmul.mubr.msk.f32.gmra.mxu0 %vm1488_vm3, %v5496_v17 }
 0x528   :  { %6506 = vmatpush3.msra.mxu0 %v8170_v53  ;;  %6509 = vmatprep.mubr.msk.f32.mxu0 %vm1488_vm3, %v5505_v18  ;;  %v3020_v18 = vld [vmem:[#allocation7 + $0x70] sm:$0xff] }
 0x529   :  { %6507 = vmatprep.subr.mxu0 %v8176_v54 }
 0x52a   :  { %6508 = vmatpush3.msra.mxu0 %v8176_v54 }
 0x52b   :  { %6525 = vmatprep.subr.mxu0 %v8162_v49  ;;  %6510 = vmatmul.mubr.msk.f32.vlgmr.msra.gmra.mxu0 %vm1488_vm3, %v5506_v19 }
 0x52c   :  { %6526 = vmatpush3.msra.mxu0 %v8162_v49  ;;  %6512 = vmatprep.mubr.msk.f32.mxu0 %vm1488_vm3, %v5507_v20 }
 0x52d   :  { %6527 = vmatprep.subr.mxu0 %v8164_v52 }
 0x52e   :  { %6528 = vmatpush3.msra.mxu0 %v8164_v52 }
 0x52f   :  { %6529 = vmatprep.subr.mxu0 %v8170_v53  ;;  %6513 = vmatmul.mubr.msk.f32.gmra.mxu0 %vm1488_vm3, %v5508_v21 }
 0x530   :  { %6530 = vmatpush3.msra.mxu0 %v8170_v53  ;;  %6533 = vmatprep.mubr.msk.f32.mxu0 %vm1488_vm3, %v5517_v22 }
 0x531   :  { %6531 = vmatprep.subr.mxu0 %v8176_v54 }
 0x532   :  { %6532 = vmatpush3.msra.mxu0 %v8176_v54 }
 0x533   :  { %6549 = vmatprep.subr.mxu0 %v8162_v49  ;;  %6534 = vmatmul.mubr.msk.f32.vlgmr.msra.gmra.mxu0 %vm1488_vm3, %v5518_v23 }
 0x534   :  { %6550 = vmatpush3.msra.mxu0 %v8162_v49  ;;  %6536 = vmatprep.mubr.msk.f32.mxu0 %vm1488_vm3, %v5519_v24 }
 0x535   :  { %6551 = vmatprep.subr.mxu0 %v8164_v52 }
 0x536   :  { %6552 = vmatpush3.msra.mxu0 %v8164_v52 }
 0x537   :  { %6553 = vmatprep.subr.mxu0 %v8170_v53  ;;  %6537 = vmatmul.mubr.msk.f32.gmra.mxu0 %vm1488_vm3, %v5520_v25  ;;  %v5555_v25 = vld [vmem:[%s8779_s29 + $0x110] sm:$0xff] }
 0x538   :  { %6554 = vmatpush3.msra.mxu0 %v8170_v53  ;;  %6557 = vmatprep.mubr.msk.f32.mxu0 %vm1488_vm3, %v5529_v26 }
 0x539   :  { %6555 = vmatprep.subr.mxu0 %v8176_v54 }
 0x53a   :  { %6556 = vmatpush3.msra.mxu0 %v8176_v54 }
 0x53b   :  { %6573 = vmatprep.subr.mxu0 %v8162_v49  ;;  %6558 = vmatmul.mubr.msk.f32.vlgmr.msra.gmra.mxu0 %vm1488_vm3, %v5530_v27  ;;  %v3227_v27 = vld [vmem:[#allocation7 + $0x88] sm:$0xff] }
 0x53c   :  { %6574 = vmatpush3.msra.mxu0 %v8162_v49  ;;  %6560 = vmatprep.mubr.msk.f32.mxu0 %vm1488_vm3, %v5531_v28 }
 0x53d   :  { %6575 = vmatprep.subr.mxu0 %v8164_v52 }
 0x53e   :  { %6576 = vmatpush3.msra.mxu0 %v8164_v52 }
 0x53f   :  { %6577 = vmatprep.subr.mxu0 %v8170_v53  ;;  %6561 = vmatmul.mubr.msk.f32.gmra.mxu0 %vm1488_vm3, %v5532_v29  ;;  %v3450_v29 = vld [vmem:[#allocation13] sm:$0xff] }
 0x540   :  { %6578 = vmatpush3.msra.mxu0 %v8170_v53  ;;  %6581 = vmatprep.mubr.msk.f32.mxu0 %vm1488_vm3, %v5541_v30  ;;  %v3344_v30 = vld [vmem:[#allocation10] sm:$0xff] }
 0x541   :  { %6579 = vmatprep.subr.mxu0 %v8176_v54 }
 0x542   :  { %6580 = vmatpush3.msra.mxu0 %v8176_v54 }
 0x543   :  { %6597 = vmatprep.subr.mxu0 %v8162_v49  ;;  %6582 = vmatmul.mubr.msk.f32.vlgmr.msra.gmra.mxu0 %vm1488_vm3, %v5542_v31 }
 0x544   :  { %6598 = vmatpush3.msra.mxu0 %v8162_v49  ;;  %6584 = vmatprep.mubr.msk.f32.mxu0 %vm1488_vm3, %v5543_v34 }
 0x545   :  { %6599 = vmatprep.subr.mxu0 %v8164_v52 }
 0x546   :  { %6600 = vmatpush3.msra.mxu0 %v8164_v52 }
 0x547   :  { %6601 = vmatprep.subr.mxu0 %v8170_v53  ;;  %6585 = vmatmul.mubr.msk.f32.gmra.mxu0 %vm1488_vm3, %v5544_v35 }
 0x548   :  { %6602 = vmatpush3.msra.mxu0 %v8170_v53  ;;  %6605 = vmatprep.mubr.msk.f32.mxu0 %vm1488_vm3, %v5553_v36 }
 0x549   :  { %6603 = vmatprep.subr.mxu0 %v8176_v54 }
 0x54a   :  { %6604 = vmatpush3.msra.mxu0 %v8176_v54 }
 0x54b   :  { %6606 = vmatmul.mubr.msk.f32.vlgmr.msra.gmra.mxu0 %vm1488_vm3, %v5554_v37 }
 0x5d2   :  { %v8378_v43 = vpop.f32.mrf.mxu0  ;;  %v8380_v44 = vpop.f32.mrf.mxu1 }
 0x5d4   :  { %v8382_v45 = vpop.f32.mrf.mxu0  ;;  %v8384_v46 = vpop.f32.mrf.mxu1 }
 0x5d7   :  { %v6442_v47 = vpop.f32.mrf.mxu0  ;;  %v6452_v48 = vpop.f32.mrf.mxu1 }
 0x5d8   :  { %v8386_v50 = vadd.f32 %v6452_v48, %v6442_v47 }
 0x5d9   :  { %v8388_v51 = vpop.f32.mrf.mxu0  ;;  %v1878_v31 = vpop.f32.mrf.mxu1 }
 0x5da   :  { %v1879_v37 = vadd.f32 %v1878_v31, %v8388_v51 }
 0x5db   :  { %v6463_v55 = vpop.f32.mrf.mxu0 }
 0x5dd   :  { %v1970_v56 = vpop.f32.mrf.mxu0 }
 0x5de   :  { %6471 = vmatprep.mubr.msk.f32.mxu1 %vm1382_vm2, %v1970_v56 }
 0x5df   :  { %v6466_v58 = vpop.f32.mrf.mxu0  ;;  %6472 = vmatmul.mubr.msk.f32.vlgmr.msra.gmra.mxu1 %vm1382_vm2, %v6463_v55 }
 0x5e0   :  { %6492 = vmatpush3.msra.mxu1 %v2197_v42 }
 0x5e1   :  { %v1980_v61 = vpop.f32.mrf.mxu0  ;;  %6493 = vmatprep.subr.mxu1 %v2196_v57 }
 0x5e2   :  { %6474 = vmatprep.mubr.msk.f32.mxu1 %vm1382_vm2, %v1980_v61  ;;  %6494 = vmatpush3.msra.mxu1 %v2196_v57 }
 0x5e3   :  { %6475 = vmatmul.mubr.msk.f32.gmra.mxu1 %vm1382_vm2, %v6466_v58  ;;  %v6487_v60 = vpop.f32.mrf.mxu0  ;;  %6515 = vmatprep.subr.mxu1 %v2403_v59 }
 0x5e5   :  { %v2176_v62 = vpop.f32.mrf.mxu0 }
 0x5e6   :  { %6495 = vmatprep.mubr.msk.f32.mxu1 %vm1382_vm2, %v2176_v62 }
 0x5e7   :  { %v6490_v1 = vpop.f32.mrf.mxu0  ;;  %6496 = vmatmul.mubr.msk.f32.vlgmr.msra.gmra.mxu1 %vm1382_vm2, %v6487_v60 }
 0x5e8   :  { %6516 = vmatpush3.msra.mxu1 %v2403_v59 }
 0x5e9   :  { %v2186_v3 = vpop.f32.mrf.mxu0  ;;  %6517 = vmatprep.subr.mxu1 %v2402_v63 }
 0x5ea   :  { %6498 = vmatprep.mubr.msk.f32.mxu1 %vm1382_vm2, %v2186_v3  ;;  %6518 = vmatpush3.msra.mxu1 %v2402_v63 }
 0x5eb   :  { %6499 = vmatmul.mubr.msk.f32.gmra.mxu1 %vm1382_vm2, %v6490_v1  ;;  %v6511_v4 = vpop.f32.mrf.mxu0  ;;  %6539 = vmatprep.subr.mxu1 %v2609_v2 }
 0x5ed   :  { %v2382_v5 = vpop.f32.mrf.mxu0 }
 0x5ee   :  { %6519 = vmatprep.mubr.msk.f32.mxu1 %vm1382_vm2, %v2382_v5 }
 0x5ef   :  { %v6514_v7 = vpop.f32.mrf.mxu0  ;;  %6520 = vmatmul.mubr.msk.f32.vlgmr.msra.gmra.mxu1 %vm1382_vm2, %v6511_v4 }
 0x5f0   :  { %6540 = vmatpush3.msra.mxu1 %v2609_v2 }
 0x5f1   :  { %v2392_v9 = vpop.f32.mrf.mxu0  ;;  %6541 = vmatprep.subr.mxu1 %v2608_v6 }
 0x5f2   :  { %6522 = vmatprep.mubr.msk.f32.mxu1 %vm1382_vm2, %v2392_v9  ;;  %6542 = vmatpush3.msra.mxu1 %v2608_v6 }
 0x5f3   :  { %6523 = vmatmul.mubr.msk.f32.gmra.mxu1 %vm1382_vm2, %v6514_v7  ;;  %v6535_v10 = vpop.f32.mrf.mxu0  ;;  %6563 = vmatprep.subr.mxu1 %v2815_v8 }
 0x5f5   :  { %v2588_v11 = vpop.f32.mrf.mxu0 }
 0x5f6   :  { %6543 = vmatprep.mubr.msk.f32.mxu1 %vm1382_vm2, %v2588_v11  ;;  %v1874_v11 = vadd.f32 %v8380_v44, %v8378_v43 }
 0x5f7   :  { %v6538_v13 = vpop.f32.mrf.mxu0  ;;  %6544 = vmatmul.mubr.msk.f32.vlgmr.msra.gmra.mxu1 %vm1382_vm2, %v6535_v10 }
 0x5f8   :  { %6564 = vmatpush3.msra.mxu1 %v2815_v8 }
 0x5f9   :  { %v2598_v15 = vpop.f32.mrf.mxu0  ;;  %6565 = vmatprep.subr.mxu1 %v2814_v12 }
 0x5fa   :  { %6546 = vmatprep.mubr.msk.f32.mxu1 %vm1382_vm2, %v2598_v15  ;;  %6566 = vmatpush3.msra.mxu1 %v2814_v12 }
 0x5fb   :  { %6547 = vmatmul.mubr.msk.f32.gmra.mxu1 %vm1382_vm2, %v6538_v13  ;;  %v6559_v16 = vpop.f32.mrf.mxu0  ;;  %6587 = vmatprep.subr.mxu1 %v3021_v14 }
 0x5fd   :  { %v2794_v17 = vpop.f32.mrf.mxu0 }
 0x5fe   :  { %6567 = vmatprep.mubr.msk.f32.mxu1 %vm1382_vm2, %v2794_v17 }
 0x5ff   :  { %v6562_v19 = vpop.f32.mrf.mxu0  ;;  %6568 = vmatmul.mubr.msk.f32.vlgmr.msra.gmra.mxu1 %vm1382_vm2, %v6559_v16 }
 0x600   :  { %6588 = vmatpush3.msra.mxu1 %v3021_v14  ;;  %v1869_v14 = vadd.f32 %v8384_v46, %v8382_v45 }
 0x601   :  { %6589 = vmatprep.subr.mxu1 %v3020_v18  ;;  %v2804_v20 = vpop.f32.mrf.mxu0 }
 0x602   :  { %6590 = vmatpush3.msra.mxu1 %v3020_v18  ;;  %6570 = vmatprep.mubr.msk.f32.mxu1 %vm1382_vm2, %v2804_v20 }
 0x603   :  { %6907 = vmatprep.subr.mxu1 %v8162_v49  ;;  %6571 = vmatmul.mubr.msk.f32.gmra.mxu1 %vm1382_vm2, %v6562_v19  ;;  %v6583_v21 = vpop.f32.mrf.mxu0 }
 0x605   :  { %v3000_v22 = vpop.f32.mrf.mxu0 }
 0x606   :  { %6591 = vmatprep.mubr.msk.f32.mxu1 %vm1382_vm2, %v3000_v22 }
 0x607   :  { %v6586_v23 = vpop.f32.mrf.mxu0  ;;  %6592 = vmatmul.mubr.msk.f32.vlgmr.msra.gmra.mxu1 %vm1382_vm2, %v6583_v21 }
 0x608   :  { %6911 = vmatpush3.msra.mxu1 %v8162_v49  ;;  %v5556_v49 = vld [vmem:[%s8779_s29 + $0x118] sm:$0xff] }
 0x609   :  { %6908 = vmatprep.subr.mxu1 %v8164_v52  ;;  %v3010_v24 = vpop.f32.mrf.mxu0 }
 0x60a   :  { %6912 = vmatpush3.msra.mxu1 %v8164_v52  ;;  %6594 = vmatprep.mubr.msk.f32.mxu1 %vm1382_vm2, %v3010_v24  ;;  %v3226_v52 = vld [vmem:[#allocation7 + $0x80] sm:$0xff] }
 0x60b   :  { %6909 = vmatprep.subr.mxu1 %v8170_v53  ;;  %6595 = vmatmul.mubr.msk.f32.gmra.mxu1 %vm1382_vm2, %v6586_v23  ;;  %v6607_v26 = vpop.f32.mrf.mxu0 }
 0x60c   :  { %6913 = vmatpush3.msra.mxu1 %v8170_v53  ;;  %6608 = vmatprep.mubr.msk.f32.mxu1 %vm1488_vm3, %v5555_v25  ;;  %v3451_v53 = vld [vmem:[#allocation13 + $0x8] sm:$0xff] }
 0x60d   :  { %6910 = vmatprep.subr.mxu1 %v8176_v54  ;;  %v3206_v28 = vpop.f32.mrf.mxu0 }
 0x60e   :  { %6914 = vmatpush3.msra.mxu1 %v8176_v54  ;;  %v3345_v54 = vld [vmem:[#allocation10 + $0x8] sm:$0xff] }
 0x60f   :  { %6609 = vmatmul.mubr.msk.f32.vlgmr.msra.gmra.mxu1 %vm1488_vm3, %v5556_v49  ;;  %6611 = vmatprep.subr.mxu1 %v3227_v27 }
 0x610   :  { %6612 = vmatpush3.msra.mxu1 %v3227_v27  ;;  %6615 = vmatprep.mubr.msk.f32.mxu1 %vm1382_vm2, %v3206_v28 }
 0x611   :  { %6613 = vmatprep.subr.mxu1 %v3226_v52  ;;  %6621 = vmatprep.subr.mxu0 %v3345_v54 }
 0x612   :  { %6614 = vmatpush3.msra.mxu1 %v3226_v52  ;;  %6622 = vmatpush3.msra.mxu0 %v3345_v54 }
 0x613   :  { %6616 = vmatmul.mubr.msk.f32.vlgmr.msra.gmra.mxu1 %vm1382_vm2, %v6607_v26  ;;  %6631 = vmatprep.subr.mxu1 %v3451_v53 }
 0x614   :  { %6632 = vmatpush3.msra.mxu1 %v3451_v53  ;;  %6623 = vmatprep.subr.mxu0 %v3344_v30 }
 0x615   :  { %6633 = vmatprep.subr.mxu1 %v3450_v29  ;;  %6624 = vmatpush3.msra.mxu0 %v3344_v30 }
 0x616   :  { %6634 = vmatpush3.msra.mxu1 %v3450_v29  ;;  %v5565_v29 = vld [vmem:[#allocation8] ss:$0 sm:$0xff] }
 0x617   :  { %6663 = vmatprep.subr.mxu1 %v7268_v0 }
 0x69f   :  { %v6473_v34 = vpop.f32.mrf.mxu1 }
 0x6a0   :  { %v2090_v15 = vadd.f32 %v6473_v34, %v1874_v11 }
 0x6a1   :  { %v2070_v35 = vpop.f32.mrf.mxu1 }
 0x6a2   :  { %v2089_v17 = vadd.f32 %v2070_v35, %v1869_v14 }
 0x6a3   :  { %v6476_v36 = vpop.f32.mrf.mxu1 }
 0x6a4   :  { %v2092_v40 = vadd.f32 %v6476_v36, %v8386_v50 }
 0x6a5   :  { %v2080_v41 = vpop.f32.mrf.mxu1 }
 0x6a6   :  { %v2091_v42 = vadd.f32 %v2080_v41, %v1879_v37  ;;  %v3555_v37 = vld [vmem:[%s8746_s13 + $0x18] sm:$0xff]  ;;  %v3553_v41 = vld [vmem:[%s8746_s13 + $0x8] sm:$0xff] }
 0x6a7   :  { %v6497_v47 = vpop.f32.mrf.mxu1 }
 0x6a8   :  { %v2296_v18 = vadd.f32 %v6497_v47, %v2090_v15 }
 0x6a9   :  { %v2276_v48 = vpop.f32.mrf.mxu1 }
 0x6aa   :  { %v2295_v20 = vadd.f32 %v2276_v48, %v2089_v17 }
 0x6ab   :  { %v6500_v55 = vpop.f32.mrf.mxu1 }
 0x6ac   :  { %v2298_v56 = vadd.f32 %v6500_v55, %v2092_v40  ;;  %v3554_v40 = vld [vmem:[%s8746_s13 + $0x10] sm:$0xff] }
 0x6ad   :  { %v2286_v57 = vpop.f32.mrf.mxu1 }
 0x6ae   :  { %v2297_v58 = vadd.f32 %v2286_v57, %v2091_v42  ;;  %v3552_v42 = vld [vmem:[%s8746_s13] sm:$0xff] }
 0x6af   :  { %v6521_v59 = vpop.f32.mrf.mxu1 }
 0x6b0   :  { %v2502_v21 = vadd.f32 %v6521_v59, %v2296_v18 }
 0x6b1   :  { %v2482_v61 = vpop.f32.mrf.mxu1 }
 0x6b2   :  { %v2501_v24 = vadd.f32 %v2482_v61, %v2295_v20 }
 0x6b3   :  { %v6524_v60 = vpop.f32.mrf.mxu1 }
 0x6b4   :  { %v2504_v62 = vadd.f32 %v6524_v60, %v2298_v56 }
 0x6b5   :  { %v2492_v63 = vpop.f32.mrf.mxu1 }
 0x6b6   :  { %v2503_v1 = vadd.f32 %v2492_v63, %v2297_v58  ;;  %v5571_v63 = vld [vmem:[#allocation14] ss:$0 sm:$0xff] }
 0x6b7   :  { %v6545_v2 = vpop.f32.mrf.mxu1 }
 0x6b8   :  { %v2708_v25 = vadd.f32 %v6545_v2, %v2502_v21 }
 0x6b9   :  { %v2688_v3 = vpop.f32.mrf.mxu1 }
 0x6ba   :  { %v2707_v27 = vadd.f32 %v2688_v3, %v2501_v24  ;;  %v5576_v24 = vld [vmem:[#allocation16] ss:$0 sm:$0xff] }
 0x6bb   :  { %v6548_v4 = vpop.f32.mrf.mxu1 }
 0x6bc   :  { %v2710_v51 = vadd.f32 %v6548_v4, %v2504_v62  ;;  %v5566_v62 = vld [vmem:[#allocation11] ss:$0 sm:$0xff] }
 0x6bd   :  { %v2698_v5 = vpop.f32.mrf.mxu1 }
 0x6be   :  { %v2709_v50 = vadd.f32 %v2698_v5, %v2503_v1 }
 0x6bf   :  { %v6569_v6 = vpop.f32.mrf.mxu1 }
 0x6c0   :  { %v2914_v43 = vadd.f32 %v6569_v6, %v2708_v25 }
 0x6c1   :  { %v2894_v7 = vpop.f32.mrf.mxu1 }
 0x6c2   :  { %v2913_v28 = vadd.f32 %v2894_v7, %v2707_v27 }
 0x6c3   :  { %v6572_v8 = vpop.f32.mrf.mxu1 }
 0x6c4   :  { %v2916_v9 = vadd.f32 %v6572_v8, %v2710_v51 }
 0x6c5   :  { %v2904_v10 = vpop.f32.mrf.mxu1 }
 0x6c6   :  { %v2915_v12 = vadd.f32 %v2904_v10, %v2709_v50 }
 0x6c7   :  { %v6593_v13 = vpop.f32.mrf.mxu1 }
 0x6c8   :  { %v3120_v52 = vadd.f32 %v6593_v13, %v2914_v43 }
 0x6c9   :  { %v3100_v16 = vpop.f32.mrf.mxu1 }
 0x6ca   :  { %v3119_v46 = vadd.f32 %v3100_v16, %v2913_v28 }
 0x6cb   :  { %v6596_v19 = vpop.f32.mrf.mxu1 }
 0x6cc   :  { %v3122_v22 = vadd.f32 %v6596_v19, %v2916_v9 }
 0x6cd   :  { %v3110_v23 = vpop.f32.mrf.mxu1 }
 0x6ce   :  { %v3121_v26 = vadd.f32 %v3110_v23, %v2915_v12 }
 0x6cf   :  { %v6610_v49 = vpop.f32.mrf.mxu1 }
 0x6d1   :  { %v3216_v44 = vpop.f32.mrf.mxu1 }
 0x6d2   :  { %6618 = vmatprep.mubr.msk.f32.mxu1 %vm1382_vm2, %v3216_v44 }
 0x6d3   :  { %v6617_v45 = vpop.f32.mrf.mxu1  ;;  %6619 = vmatmul.mubr.msk.f32.gmra.mxu1 %vm1382_vm2, %v6610_v49 }
 0x6d4   :  { %v3326_v53 = vadd.f32 %v6617_v45, %v3120_v52  ;;  %6635 = vmatprep.mubr.msk.f32.mxu1 %vm1382_vm2, %v8138_v32  ;;  %v3559_v32 = vld [vmem:[%s8746_s13 + $0x38] sm:$0xff] }
 0x6d5   :  { %v3306_v54 = vpop.f32.mrf.mxu1  ;;  %6641 = vmatprep.subr.mxu0 %v3559_v32 }
 0x6d6   :  { %v3325_v30 = vadd.f32 %v3306_v54, %v3119_v46  ;;  %v3337_v31 = vadd.f32 %v5565_v29, %v3326_v53  ;;  %v3669_v53 = vld [vmem:[#allocation17] sm:$0xff] }
 0x6d7   :  { %6636 = vmatmul.mubr.msk.f32.vlgmr.msra.gmra.mxu1 %vm1382_vm2, %v8140_v33  ;;  %v3558_v33 = vld [vmem:[%s8746_s13 + $0x30] sm:$0xff] }
 0x6d8   :  { %v3336_v34 = vadd.f32 %v5565_v29, %v3325_v30  ;;  %6638 = vmatprep.mubr.msk.f32.mxu1 %vm1382_vm2, %v8146_v38  ;;  %v3341_v36 = vmax.f32 %v3337_v31, 0.0  ;;  %v3557_v38 = vld [vmem:[%s8746_s13 + $0x28] sm:$0xff]  ;;  %v3744_v31 = vld [vmem:[#allocation19 + $0x8] sm:$0xff] }
 0x6d9   :  { %v3746_v54 = vld [vmem:[#allocation19 + $0x18] sm:$0xff]  ;;  %v3745_v30 = vld [vmem:[#allocation19 + $0x10] sm:$0xff] }
 0x6da   :  { %v3340_v35 = vmax.f32 %v3336_v34, 0.0  ;;  %v3743_v34 = vld [vmem:[#allocation19] sm:$0xff] }
 0x6db   :  { %6639 = vmatmul.mubr.msk.f32.gmra.mxu1 %vm1382_vm2, %v8148_v39  ;;  %v3556_v39 = vld [vmem:[%s8746_s13 + $0x20] sm:$0xff] }
 0x6dc   :  { %6625 = vmatprep.mubr.msk.f32.mxu0 %vm1382_vm2, %v3340_v35  ;;  %6671 = vmatprep.mubr.msk.f32.mxu1 %vm7269_vm5, %v7268_v0  ;;  %v3826_v35 = vld [vmem:[#allocation19 + $0x38] sm:$0xff] }
 0x6dd   :  { %6626 = vmatmul.mubr.msk.f32.vlgmr.msra.gmra.mxu0 %vm1382_vm2, %v3341_v36  ;;  %v3825_v36 = vld [vmem:[#allocation19 + $0x30] sm:$0xff] }
 0x6de   :  { %6642 = vmatpush3.msra.mxu0 %v3559_v32  ;;  %v3824_v32 = vld [vmem:[#allocation19 + $0x28] sm:$0xff] }
 0x6df   :  { %6643 = vmatprep.subr.mxu0 %v3558_v33 }
 0x6e0   :  { %6644 = vmatpush3.msra.mxu0 %v3558_v33  ;;  %v3823_v33 = vld [vmem:[#allocation19 + $0x20] sm:$0xff] }
 0x6e1   :  { %6645 = vmatprep.subr.mxu0 %v3557_v38 }
 0x6e2   :  { %6646 = vmatpush3.msra.mxu0 %v3557_v38 }
 0x6e3   :  { %6647 = vmatprep.subr.mxu0 %v3556_v39 }
 0x6e4   :  { %6648 = vmatpush3.msra.mxu0 %v3556_v39 }
 0x6e5   :  { %6649 = vmatprep.subr.mxu0 %v3555_v37 }
 0x6e6   :  { %6650 = vmatpush3.msra.mxu0 %v3555_v37 }
 0x6e7   :  { %6651 = vmatprep.subr.mxu0 %v3554_v40 }
 0x6e8   :  { %6652 = vmatpush3.msra.mxu0 %v3554_v40 }
 0x6e9   :  { %6653 = vmatprep.subr.mxu0 %v3553_v41 }
 0x6ea   :  { %6654 = vmatpush3.msra.mxu0 %v3553_v41  ;;  %v3974_v41 = vld [vmem:[#allocation17 + $0x10] sm:$0xff] }
 0x6eb   :  { %6655 = vmatprep.subr.mxu0 %v3552_v42 }
 0x6ec   :  { %6656 = vmatpush3.msra.mxu0 %v3552_v42  ;;  %v4128_v42 = vld [vmem:[#allocation17 + $0x18] sm:$0xff] }
 0x6ed   :  { %6685 = vmatprep.subr.mxu0 %v7268_v0 }
 0x793   :  { %v6620_v47 = vpop.f32.mrf.mxu1 }
 0x794   :  { %v3328_v48 = vadd.f32 %v6620_v47, %v3122_v22  ;;  %v4282_v47 = vld [vmem:[#allocation17 + $0x20] sm:$0xff] }
 0x795   :  { %v3316_v55 = vpop.f32.mrf.mxu1 }
 0x796   :  { %v3327_v56 = vadd.f32 %v3316_v55, %v3121_v26  ;;  %v3339_v57 = vadd.f32 %v5565_v29, %v3328_v48  ;;  %v4436_v48 = vld [vmem:[#allocation17 + $0x28] sm:$0xff]  ;;  %v4590_v55 = vld [vmem:[#allocation17 + $0x30] sm:$0xff] }
 0x797   :  { %v6637_v59 = vpop.f32.mrf.mxu1 }
 0x798   :  { %v3338_v58 = vadd.f32 %v5565_v29, %v3327_v56  ;;  %v3343_v60 = vmax.f32 %v3339_v57, 0.0  ;;  %v3531_v4 = vadd.f32 %v6637_v59, %v5571_v63  ;;  %v3748_v29 = vld [vmem:[#allocation17 + $0x8] sm:$0xff]  ;;  %v4744_v56 = vld [vmem:[#allocation17 + $0x38] sm:$0xff]  ;;  %v4898_v57 = vld [vmem:[#allocation17 + $0x40] sm:$0xff] }
 0x799   :  { %v3525_v1 = vpop.f32.mrf.mxu1  ;;  %v4051_v59 = vld [vmem:[#allocation19 + $0x50] sm:$0xff] }
 0x79a   :  { %v3342_v61 = vmax.f32 %v3338_v58, 0.0  ;;  %v3526_v5 = vadd.f32 %v5571_v63, %v3525_v1  ;;  %v4052_v58 = vld [vmem:[#allocation19 + $0x58] sm:$0xff] }
 0x79b   :  { %v6640_v10 = vpop.f32.mrf.mxu1 }
 0x79c   :  { %6628 = vmatprep.mubr.msk.f32.mxu0 %vm1382_vm2, %v3342_v61  ;;  %v3541_v14 = vadd.f32 %v6640_v10, %v5571_v63  ;;  %v4050_v61 = vld [vmem:[#allocation19 + $0x48] sm:$0xff] }
 0x79d   :  { %v6627_v2 = vpop.f32.mrf.mxu0  ;;  %6629 = vmatmul.mubr.msk.f32.gmra.mxu0 %vm1382_vm2, %v3343_v60  ;;  %v3535_v11 = vpop.f32.mrf.mxu1  ;;  %v4049_v60 = vld [vmem:[#allocation19 + $0x40] sm:$0xff]  ;;  %v4204_v10 = vld [vmem:[#allocation19 + $0x68] sm:$0xff] }
 0x79e   :  { %v3437_v3 = vadd.f32 %v6627_v2, %v5566_v62  ;;  %v3536_v16 = vadd.f32 %v5571_v63, %v3535_v11  ;;  %v4203_v11 = vld [vmem:[#allocation19 + $0x60] sm:$0xff] }
 0x79f   :  { %v3431_v51 = vpop.f32.mrf.mxu0 }
 0x7a0   :  { %v3432_v50 = vadd.f32 %v5566_v62, %v3431_v51  ;;  %v8478_v6 = vadd.f32 %v3531_v4, %v3437_v3  ;;  %v4206_v4 = vld [vmem:[#allocation19 + $0x78] sm:$0xff] }
 0x7a2   :  { %v8480_v7 = vadd.f32 %v3526_v5, %v3432_v50  ;;  %v3549_v9 = vmax.f32 %v8478_v6, 0.0  ;;  %v4205_v5 = vld [vmem:[#allocation19 + $0x70] sm:$0xff]  ;;  %v5063_v6 = vld [vmem:[%s8751_s18 + $0x18] sm:$0xff] }
 0x7a4   :  { %v3548_v8 = vmax.f32 %v8480_v7, 0.0  ;;  %v5061_v7 = vld [vmem:[%s8751_s18 + $0x8] sm:$0xff] }
 0x7a6   :  { %6657 = vmatprep.mubr.msk.f32.mxu0 %vm3567_vm4, %v3548_v8 }
 0x7a7   :  { %6658 = vmatmul.mubr.msk.f32.vlgmr.msra.gmra.mxu0 %vm3567_vm4, %v3549_v9 }
 0x7a8   :  { %6686 = vmatpush3.msra.mxu0 %v3826_v35 }
 0x7a9   :  { %6687 = vmatprep.subr.mxu0 %v7268_v0 }
 0x7aa   :  { %6688 = vmatpush3.msra.mxu0 %v3825_v36  ;;  %v4975_v36 = vld [vmem:[#allocation19 + $0x110] sm:$0xff] }
 0x7ab   :  { %6689 = vmatprep.subr.mxu0 %v7268_v0 }
 0x7ac   :  { %6690 = vmatpush3.msra.mxu0 %v3824_v32 }
 0x7ad   :  { %6691 = vmatprep.subr.mxu0 %v7268_v0 }
 0x7ae   :  { %6692 = vmatpush3.msra.mxu0 %v3823_v33  ;;  %v4974_v33 = vld [vmem:[#allocation19 + $0x108] sm:$0xff] }
 0x7af   :  { %6707 = vmatprep.subr.mxu0 %v7268_v0 }
 0x85d   :  { %v6630_v12 = vpop.f32.mrf.mxu0 }
 0x85e   :  { %v3447_v13 = vadd.f32 %v6630_v12, %v5566_v62  ;;  %v4360_v12 = vld [vmem:[#allocation19 + $0x98] sm:$0xff] }
 0x85f   :  { %v3441_v15 = vpop.f32.mrf.mxu0 }
 0x860   :  { %v3442_v17 = vadd.f32 %v5566_v62, %v3441_v15  ;;  %v8490_v18 = vadd.f32 %v3541_v14, %v3447_v13  ;;  %v4359_v14 = vld [vmem:[#allocation19 + $0x90] sm:$0xff] }
 0x862   :  { %v8492_v19 = vadd.f32 %v3536_v16, %v3442_v17  ;;  %v3551_v21 = vmax.f32 %v8490_v18, 0.0  ;;  %v4358_v16 = vld [vmem:[#allocation19 + $0x88] sm:$0xff]  ;;  %v4357_v17 = vld [vmem:[#allocation19 + $0x80] sm:$0xff] }
 0x864   :  { %v3550_v20 = vmax.f32 %v8492_v19, 0.0 }
 0x866   :  { %6660 = vmatprep.mubr.msk.f32.mxu0 %vm3567_vm4, %v3550_v20 }
 0x867   :  { %6661 = vmatmul.mubr.msk.f32.gmra.mxu0 %vm3567_vm4, %v3551_v21  ;;  %v6659_v22 = vpop.f32.mrf.mxu0 }
 0x868   :  { %6693 = vmatprep.mubr.msk.f32.mxu0 %vm7269_vm5, %v7268_v0  ;;  %v3652_v27 = vadd.f32 %v6659_v22, %v5576_v24  ;;  %v4514_v22 = vld [vmem:[#allocation19 + $0xb8] sm:$0xff] }
 0x869   :  { %v3646_v23 = vpop.f32.mrf.mxu0 }
 0x86a   :  { %v3647_v28 = vadd.f32 %v5576_v24, %v3646_v23  ;;  %v8512_v45 = vmax.f32 %v3652_v27, 0.0  ;;  %v4668_v27 = vld [vmem:[#allocation19 + $0xd8] sm:$0xff] }
 0x86c   :  { %v8516_v46 = vmax.f32 %v3647_v28, 0.0 }
 0x927   :  { %v6662_v25 = vpop.f32.mrf.mxu0 }
 0x928   :  { %v3662_v26 = vadd.f32 %v6662_v25, %v5576_v24 }
 0x929   :  { %v3656_v49 = vpop.f32.mrf.mxu0 }
 0x92a   :  { %v8506_v43 = vmax.f32 %v3662_v26, 0.0  ;;  %v3657_v44 = vadd.f32 %v5576_v24, %v3656_v49  ;;  %v4513_v24 = vld [vmem:[#allocation19 + $0xb0] sm:$0xff]  ;;  %v4512_v26 = vld [vmem:[#allocation19 + $0xa8] sm:$0xff]  ;;  %v4511_v49 = vld [vmem:[#allocation19 + $0xa0] sm:$0xff] }
 0x92c   :  { %v8508_v52 = vmax.f32 %v3657_v44, 0.0  ;;  %6664 = vmatpush3.msra.mxu1 %v8506_v43  ;;  %v4667_v44 = vld [vmem:[#allocation19 + $0xd0] sm:$0xff] }
 0x92d   :  { %6665 = vmatprep.subr.mxu1 %v7268_v0 }
 0x92e   :  { %6666 = vmatpush3.msra.mxu1 %v8508_v52 }
 0x92f   :  { %6667 = vmatprep.subr.mxu1 %v7268_v0 }
 0x930   :  { %6668 = vmatpush3.msra.mxu1 %v8512_v45 }
 0x931   :  { %6669 = vmatprep.subr.mxu1 %v7268_v0 }
 0x932   :  { %6670 = vmatpush3.msra.mxu1 %v8516_v46 }
 0x933   :  { %6672 = vmatmul.mubr.msk.f32.vlgmr.msra.gmra.mxu1 %vm1488_vm3, %v3669_v53  ;;  %6674 = vmatprep.subr.mxu1 %v7268_v0 }
 0x934   :  { %6675 = vmatpush3.msra.mxu1 %v8506_v43  ;;  %6682 = vmatprep.mubr.msk.f32.mxu1 %vm7269_vm5, %v7268_v0 }
 0x935   :  { %6676 = vmatprep.subr.mxu1 %v7268_v0 }
 0x936   :  { %6677 = vmatpush3.msra.mxu1 %v8508_v52 }
 0x937   :  { %6678 = vmatprep.subr.mxu1 %v7268_v0 }
 0x938   :  { %6679 = vmatpush3.msra.mxu1 %v8512_v45 }
 0x939   :  { %6680 = vmatprep.subr.mxu1 %v7268_v0 }
 0x93a   :  { %6681 = vmatpush3.msra.mxu1 %v8516_v46 }
 0x93b   :  { %6683 = vmatmul.mubr.msk.f32.vlgmr.msra.gmra.mxu1 %vm1488_vm3, %v3748_v29  ;;  %6696 = vmatprep.subr.mxu1 %v7268_v0  ;;  %v4821_v29 = vld [vmem:[#allocation19 + $0xf0] sm:$0xff] }
 0x93c   :  { %6697 = vmatpush3.msra.mxu1 %v3746_v54  ;;  %6704 = vmatprep.mubr.msk.f32.mxu1 %vm7269_vm5, %v7268_v0 }
 0x93d   :  { %6698 = vmatprep.subr.mxu1 %v7268_v0 }
 0x93e   :  { %6699 = vmatpush3.msra.mxu1 %v3745_v30  ;;  %v4820_v30 = vld [vmem:[#allocation19 + $0xe8] sm:$0xff] }
 0x93f   :  { %6700 = vmatprep.subr.mxu1 %v7268_v0 }
 0x940   :  { %6701 = vmatpush3.msra.mxu1 %v3744_v31  ;;  %v4819_v31 = vld [vmem:[#allocation19 + $0xe0] sm:$0xff] }
 0x941   :  { %6702 = vmatprep.subr.mxu1 %v7268_v0 }
 0x942   :  { %6703 = vmatpush3.msra.mxu1 %v3743_v34  ;;  %v4976_v34 = vld [vmem:[#allocation19 + $0x118] sm:$0xff] }
 0x943   :  { %6718 = vmatprep.subr.mxu1 %v7268_v0 }
 0x9f3   :  { %v3739_v38 = vpop.f32.mrf.mxu1 }
 0x9f4   :  { %6705 = vmatmul.mubr.msk.f32.vlgmr.msra.gmra.mxu1 %vm1488_vm3, %v3739_v38  ;;  %v4973_v38 = vld [vmem:[#allocation19 + $0x100] sm:$0xff] }
 0x9f5   :  { %v6673_v39 = vpop.f32.mrf.mxu1  ;;  %6726 = vmatprep.mubr.msk.f32.mxu1 %vm7269_vm5, %v7268_v0  ;;  %6719 = vmatpush3.msra.mxu1 %v4052_v58 }
 0x9f6   :  { %6720 = vmatprep.subr.mxu1 %v7268_v0 }
 0x9f7   :  { %6721 = vmatpush3.msra.mxu1 %v4051_v59 }
 0x9f8   :  { %6722 = vmatprep.subr.mxu1 %v7268_v0 }
 0x9f9   :  { %6723 = vmatpush3.msra.mxu1 %v4050_v61 }
 0x9fa   :  { %6724 = vmatprep.subr.mxu1 %v7268_v0 }
 0x9fb   :  { %v3818_v37 = vpop.f32.mrf.mxu1  ;;  %6725 = vmatpush3.msra.mxu1 %v4049_v60 }
 0x9fc   :  { %6694 = vmatmul.mubr.msk.f32.vlgmr.msra.gmra.mxu0 %vm1488_vm3, %v3818_v37  ;;  %6740 = vmatprep.subr.mxu1 %v7268_v0 }
 0x9fd   :  { %6708 = vmatpush3.msra.mxu0 %v8506_v43  ;;  %v6684_v40 = vpop.f32.mrf.mxu1  ;;  %6715 = vmatprep.mubr.msk.f32.mxu0 %vm7269_vm5, %v7268_v0 }
 0x9fe   :  { %6709 = vmatprep.subr.mxu0 %v7268_v0  ;;  %v5144_v40 = vld [vmem:[%s8753_s20] sm:$0xff] }
 0x9ff   :  { %6710 = vmatpush3.msra.mxu0 %v8508_v52 }
 0xa00   :  { %6711 = vmatprep.subr.mxu0 %v7268_v0 }
 0xa01   :  { %6712 = vmatpush3.msra.mxu0 %v8512_v45 }
 0xa02   :  { %6713 = vmatprep.subr.mxu0 %v7268_v0 }
 0xa03   :  { %6714 = vmatpush3.msra.mxu0 %v8516_v46 }
 0xa04   :  { %6716 = vmatmul.mubr.msk.f32.vlgmr.msra.gmra.mxu0 %vm1488_vm3, %v3974_v41  ;;  %6729 = vmatprep.subr.mxu0 %v7268_v0 }
 0xa05   :  { %6730 = vmatpush3.msra.mxu0 %v8506_v43  ;;  %6737 = vmatprep.mubr.msk.f32.mxu0 %vm7269_vm5, %v7268_v0 }
 0xa06   :  { %6731 = vmatprep.subr.mxu0 %v7268_v0 }
 0xa07   :  { %6732 = vmatpush3.msra.mxu0 %v8508_v52 }
 0xa08   :  { %6733 = vmatprep.subr.mxu0 %v7268_v0 }
 0xa09   :  { %6734 = vmatpush3.msra.mxu0 %v8512_v45 }
 0xa0a   :  { %6735 = vmatprep.subr.mxu0 %v7268_v0 }
 0xa0b   :  { %6736 = vmatpush3.msra.mxu0 %v8516_v46 }
 0xa0c   :  { %6738 = vmatmul.mubr.msk.f32.vlgmr.msra.gmra.mxu0 %vm1488_vm3, %v4128_v42  ;;  %6751 = vmatprep.subr.mxu0 %v7268_v0 }
 0xa0d   :  { %6752 = vmatpush3.msra.mxu0 %v8506_v43  ;;  %6759 = vmatprep.mubr.msk.f32.mxu0 %vm7269_vm5, %v7268_v0 }
 0xa0e   :  { %6753 = vmatprep.subr.mxu0 %v7268_v0 }
 0xa0f   :  { %6754 = vmatpush3.msra.mxu0 %v8508_v52 }
 0xa10   :  { %6755 = vmatprep.subr.mxu0 %v7268_v0 }
 0xa11   :  { %6756 = vmatpush3.msra.mxu0 %v8512_v45 }
 0xa12   :  { %6757 = vmatprep.subr.mxu0 %v7268_v0 }
 0xa13   :  { %6758 = vmatpush3.msra.mxu0 %v8516_v46 }
 0xa14   :  { %6760 = vmatmul.mubr.msk.f32.vlgmr.msra.gmra.mxu0 %vm1488_vm3, %v4282_v47  ;;  %6773 = vmatprep.subr.mxu0 %v7268_v0 }
 0xa15   :  { %6774 = vmatpush3.msra.mxu0 %v8506_v43  ;;  %6781 = vmatprep.mubr.msk.f32.mxu0 %vm7269_vm5, %v7268_v0 }
 0xa16   :  { %6775 = vmatprep.subr.mxu0 %v7268_v0 }
 0xa17   :  { %6776 = vmatpush3.msra.mxu0 %v8508_v52 }
 0xa18   :  { %6777 = vmatprep.subr.mxu0 %v7268_v0 }
 0xa19   :  { %6778 = vmatpush3.msra.mxu0 %v8512_v45 }
 0xa1a   :  { %6779 = vmatprep.subr.mxu0 %v7268_v0 }
 0xa1b   :  { %6780 = vmatpush3.msra.mxu0 %v8516_v46 }
 0xa1c   :  { %6782 = vmatmul.mubr.msk.f32.vlgmr.msra.gmra.mxu0 %vm1488_vm3, %v4436_v48  ;;  %6795 = vmatprep.subr.mxu0 %v7268_v0 }
 0xa1d   :  { %6796 = vmatpush3.msra.mxu0 %v8506_v43  ;;  %6803 = vmatprep.mubr.msk.f32.mxu0 %vm7269_vm5, %v7268_v0 }
 0xa1e   :  { %6797 = vmatprep.subr.mxu0 %v7268_v0 }
 0xa1f   :  { %6798 = vmatpush3.msra.mxu0 %v8508_v52 }
 0xa20   :  { %6799 = vmatprep.subr.mxu0 %v7268_v0 }
 0xa21   :  { %6800 = vmatpush3.msra.mxu0 %v8512_v45 }
 0xa22   :  { %6801 = vmatprep.subr.mxu0 %v7268_v0 }
 0xa23   :  { %6802 = vmatpush3.msra.mxu0 %v8516_v46 }
 0xa24   :  { %6804 = vmatmul.mubr.msk.f32.vlgmr.msra.gmra.mxu0 %vm1488_vm3, %v4590_v55  ;;  %6817 = vmatprep.subr.mxu0 %v7268_v0 }
 0xa25   :  { %6818 = vmatpush3.msra.mxu0 %v8506_v43  ;;  %6825 = vmatprep.mubr.msk.f32.mxu0 %vm7269_vm5, %v7268_v0 }
 0xa26   :  { %6819 = vmatprep.subr.mxu0 %v7268_v0 }
 0xa27   :  { %6820 = vmatpush3.msra.mxu0 %v8508_v52 }
 0xa28   :  { %6821 = vmatprep.subr.mxu0 %v7268_v0 }
 0xa29   :  { %6822 = vmatpush3.msra.mxu0 %v8512_v45 }
 0xa2a   :  { %6823 = vmatprep.subr.mxu0 %v7268_v0 }
 0xa2b   :  { %6824 = vmatpush3.msra.mxu0 %v8516_v46 }
 0xa2c   :  { %6826 = vmatmul.mubr.msk.f32.vlgmr.msra.gmra.mxu0 %vm1488_vm3, %v4744_v56  ;;  %6839 = vmatprep.subr.mxu0 %v7268_v0 }
 0xa2d   :  { %6840 = vmatpush3.msra.mxu0 %v8506_v43  ;;  %6847 = vmatprep.mubr.msk.f32.mxu0 %vm7269_vm5, %v7268_v0 }
 0xa2e   :  { %6841 = vmatprep.subr.mxu0 %v7268_v0 }
 0xa2f   :  { %6842 = vmatpush3.msra.mxu0 %v8508_v52  ;;  %v4666_v52 = vld [vmem:[#allocation19 + $0xc8] sm:$0xff] }
 0xa30   :  { %6843 = vmatprep.subr.mxu0 %v7268_v0 }
 0xa31   :  { %6844 = vmatpush3.msra.mxu0 %v8512_v45  ;;  %v4665_v45 = vld [vmem:[#allocation19 + $0xc0] sm:$0xff] }
 0xa32   :  { %6845 = vmatprep.subr.mxu0 %v7268_v0 }
 0xa33   :  { %6846 = vmatpush3.msra.mxu0 %v8516_v46  ;;  %v4822_v46 = vld [vmem:[#allocation19 + $0xf8] sm:$0xff] }
 0xa34   :  { %6848 = vmatmul.mubr.msk.f32.vlgmr.msra.gmra.mxu0 %vm1488_vm3, %v4898_v57  ;;  %6861 = vmatprep.subr.mxu0 %v7268_v0 }
 0xa35   :  { %6869 = vmatprep.mubr.msk.f32.mxu0 %vm7269_vm5, %v7268_v0  ;;  %6862 = vmatpush3.msra.mxu0 %v5063_v6 }
 0xa36   :  { %6863 = vmatprep.subr.mxu0 %v7268_v0 }
 0xab4   :  { %v3969_v62 = vpop.f32.mrf.mxu1 }
 0xab6   :  { %v6706_v63 = vpop.f32.mrf.mxu1 }
 0xabc   :  { %v3896_v1 = vpop.f32.mrf.mxu0 }
 0xabd   :  { %v8631_v2 = vadd.f32 %v3969_v62, %v3896_v1 }
 0xabe   :  { %v6695_v3 = vpop.f32.mrf.mxu0 }
 0xac4   :  { %v4044_v51 = vpop.f32.mrf.mxu0 }
 0xac5   :  { %6727 = vmatmul.mubr.msk.f32.vlgmr.msra.gmra.mxu1 %vm1488_vm3, %v4044_v51 }
 0xac6   :  { %6741 = vmatpush3.msra.mxu1 %v4206_v4  ;;  %v6717_v50 = vpop.f32.mrf.mxu0  ;;  %6748 = vmatprep.mubr.msk.f32.mxu1 %vm7269_vm5, %v7268_v0  ;;  %v5599_v4 = vld [vmem:[#allocation20] ss:$0 sm:$0xff] }
 0xac7   :  { %6742 = vmatprep.subr.mxu1 %v7268_v0 }
 0xac8   :  { %6743 = vmatpush3.msra.mxu1 %v4205_v5 }
 0xac9   :  { %6744 = vmatprep.subr.mxu1 %v7268_v0 }
 0xaca   :  { %6745 = vmatpush3.msra.mxu1 %v4204_v10 }
 0xacb   :  { %6746 = vmatprep.subr.mxu1 %v7268_v0 }
 0xacc   :  { %6747 = vmatpush3.msra.mxu1 %v4203_v11  ;;  %v4198_v13 = vpop.f32.mrf.mxu0  ;;  %v5225_v11 = vld [vmem:[#allocation23 + $0x38] sm:$0xff] }
 0xacd   :  { %6762 = vmatprep.subr.mxu1 %v7268_v0  ;;  %6749 = vmatmul.mubr.msk.f32.vlgmr.msra.gmra.mxu1 %vm1488_vm3, %v4198_v13 }
 0xace   :  { %6763 = vmatpush3.msra.mxu1 %v4360_v12  ;;  %v6739_v15 = vpop.f32.mrf.mxu0  ;;  %6770 = vmatprep.mubr.msk.f32.mxu1 %vm7269_vm5, %v7268_v0  ;;  %v5224_v12 = vld [vmem:[#allocation23 + $0x30] sm:$0xff] }
 0xacf   :  { %6764 = vmatprep.subr.mxu1 %v7268_v0  ;;  %v5222_v15 = vld [vmem:[#allocation23 + $0x20] sm:$0xff] }
 0xad0   :  { %6765 = vmatpush3.msra.mxu1 %v4359_v14 }
 0xad1   :  { %6766 = vmatprep.subr.mxu1 %v7268_v0 }
 0xad2   :  { %6767 = vmatpush3.msra.mxu1 %v4358_v16  ;;  %v5221_v16 = vld [vmem:[#allocation23 + $0x18] sm:$0xff] }
 0xad3   :  { %6768 = vmatprep.subr.mxu1 %v7268_v0 }
 0xad4   :  { %6769 = vmatpush3.msra.mxu1 %v4357_v17  ;;  %v4352_v23 = vpop.f32.mrf.mxu0  ;;  %v5220_v17 = vld [vmem:[#allocation23 + $0x10] sm:$0xff] }
 0xad5   :  { %6784 = vmatprep.subr.mxu1 %v7268_v0  ;;  %6771 = vmatmul.mubr.msk.f32.vlgmr.msra.gmra.mxu1 %vm1488_vm3, %v4352_v23  ;;  %v5218_v23 = vld [vmem:[#allocation23] sm:$0xff] }
 0xad6   :  { %6785 = vmatpush3.msra.mxu1 %v4514_v22  ;;  %v6761_v25 = vpop.f32.mrf.mxu0  ;;  %6792 = vmatprep.mubr.msk.f32.mxu1 %vm7269_vm5, %v7268_v0  ;;  %v5219_v22 = vld [vmem:[#allocation23 + $0x8] sm:$0xff] }
 0xad7   :  { %6786 = vmatprep.subr.mxu1 %v7268_v0 }
 0xad8   :  { %6787 = vmatpush3.msra.mxu1 %v4513_v24 }
 0xad9   :  { %6788 = vmatprep.subr.mxu1 %v7268_v0 }
 0xada   :  { %6789 = vmatpush3.msra.mxu1 %v4512_v26  ;;  %v5600_v26 = vld [vmem:[#allocation22] ss:$0 sm:$0xff] }
 0xadb   :  { %6790 = vmatprep.subr.mxu1 %v7268_v0 }
 0xadc   :  { %6791 = vmatpush3.msra.mxu1 %v4511_v49  ;;  %v4506_v43 = vpop.f32.mrf.mxu0  ;;  %v5603_v49 = vld [vmem:[%s8755_s22] ss:$0 sm:$0xff]  ;;  %s7214_s22 = scalar_lea.vmem %s5391_s21, 32 }
 0xadd   :  { %6806 = vmatprep.subr.mxu1 %v7268_v0  ;;  %6793 = vmatmul.mubr.msk.f32.vlgmr.msra.gmra.mxu1 %vm1488_vm3, %v4506_v43  ;;  %p7215_p0 = scmp.ne.s32.totalorder %s5391_s21, %s7214_s22  ;;  %p7220_p2 = scmp.lt.s32.totalorder %s7214_s22, %s7214_s22 }
 0xade   :  { %6807 = vmatpush3.msra.mxu1 %v4668_v27  ;;  %v6783_v28 = vpop.f32.mrf.mxu0  ;;  %6814 = vmatprep.mubr.msk.f32.mxu1 %vm7269_vm5, %v7268_v0 }
 0xadf   :  { %6808 = vmatprep.subr.mxu1 %v7268_v0  ;;  %p7221_p3 = por %p7220_p2, %p7219_p1 }
 0xae0   :  { %6809 = vmatpush3.msra.mxu1 %v4667_v44 }
 0xae1   :  { %6810 = vmatprep.subr.mxu1 %v7268_v0  ;;  %p7222_p4 = pnand %p7221_p3, %p7215_p0 }
 0xae2   :  { %6811 = vmatpush3.msra.mxu1 %v4666_v52 }
 0xae3   :  { %6812 = vmatprep.subr.mxu1 %v7268_v0 }
 0xae4   :  { %6813 = vmatpush3.msra.mxu1 %v4665_v45  ;;  %v4660_v53 = vpop.f32.mrf.mxu0 }
 0xae5   :  { %6828 = vmatprep.subr.mxu1 %v7268_v0  ;;  %6815 = vmatmul.mubr.msk.f32.vlgmr.msra.gmra.mxu1 %vm1488_vm3, %v4660_v53 }
 0xae6   :  { %6829 = vmatpush3.msra.mxu1 %v4822_v46  ;;  %v6805_v54 = vpop.f32.mrf.mxu0  ;;  %6836 = vmatprep.mubr.msk.f32.mxu1 %vm7269_vm5, %v7268_v0 }
 0xae7   :  { %6830 = vmatprep.subr.mxu1 %v7268_v0 }
 0xae8   :  { %6831 = vmatpush3.msra.mxu1 %v4821_v29 }
 0xae9   :  { %6832 = vmatprep.subr.mxu1 %v7268_v0 }
 0xaea   :  { %6833 = vmatpush3.msra.mxu1 %v4820_v30 }
 0xaeb   :  { %6834 = vmatprep.subr.mxu1 %v7268_v0 }
 0xaec   :  { %6835 = vmatpush3.msra.mxu1 %v4819_v31  ;;  %v4814_v35 = vpop.f32.mrf.mxu0 }
 0xaed   :  { %6850 = vmatprep.subr.mxu1 %v7268_v0  ;;  %6837 = vmatmul.mubr.msk.f32.vlgmr.msra.gmra.mxu1 %vm1488_vm3, %v4814_v35 }
 0xaee   :  { %6851 = vmatpush3.msra.mxu1 %v4976_v34  ;;  %v6827_v32 = vpop.f32.mrf.mxu0  ;;  %6858 = vmatprep.mubr.msk.f32.mxu1 %vm7269_vm5, %v7268_v0 }
 0xaef   :  { %6852 = vmatprep.subr.mxu1 %v7268_v0 }
 0xaf0   :  { %6853 = vmatpush3.msra.mxu1 %v4975_v36 }
 0xaf1   :  { %6854 = vmatprep.subr.mxu1 %v7268_v0 }
 0xaf2   :  { %6855 = vmatpush3.msra.mxu1 %v4974_v33 }
 0xaf3   :  { %6856 = vmatprep.subr.mxu1 %v7268_v0 }
 0xaf4   :  { %6857 = vmatpush3.msra.mxu1 %v4973_v38  ;;  %v4968_v39 = vpop.f32.mrf.mxu0 }
 0xaf5   :  { %6872 = vmatprep.subr.mxu1 %v7268_v0  ;;  %6859 = vmatmul.mubr.msk.f32.vlgmr.msra.gmra.mxu1 %vm1488_vm3, %v4968_v39 }
 0xaf6   :  { %6873 = vmatpush3.msra.mxu1 %v3551_v21  ;;  %v6849_v37 = vpop.f32.mrf.mxu0  ;;  %6880 = vmatprep.mubr.msk.f32.mxu1 %vm7269_vm5, %v7268_v0 }
 0xaf7   :  { %6874 = vmatprep.subr.mxu1 %v7268_v0 }
 0xaf8   :  { %6875 = vmatpush3.msra.mxu1 %v3550_v20 }
 0xaf9   :  { %6876 = vmatprep.subr.mxu1 %v7268_v0 }
 0xafa   :  { %6877 = vmatpush3.msra.mxu1 %v3549_v9  ;;  %v5062_v9 = vld [vmem:[%s8751_s18 + $0x10] sm:$0xff] }
 0xafb   :  { %6878 = vmatprep.subr.mxu1 %v7268_v0  ;;  %6864 = vmatpush3.msra.mxu0 %v5062_v9 }
 0xafc   :  { %6879 = vmatpush3.msra.mxu1 %v3548_v8  ;;  %6865 = vmatprep.subr.mxu0 %v7268_v0  ;;  %v5060_v8 = vld [vmem:[%s8751_s18] sm:$0xff] }
 0xafd   :  { %6881 = vmatmul.mubr.msk.f32.vlgmr.msra.gmra.mxu1 %vm1488_vm3, %v5144_v40  ;;  %6902 = vmatprep.subr.mxu1 %v7268_v0 }
 0xafe   :  { %6904 = vmatprep.mubr.msk.f32.mxu1 %vm7269_vm5, %v7268_v0  ;;  %6866 = vmatpush3.msra.mxu0 %v5061_v7 }
 0xaff   :  { %6867 = vmatprep.subr.mxu0 %v7268_v0 }
 0xb00   :  { %6868 = vmatpush3.msra.mxu0 %v5060_v8 }
 0xb01   :  { %6883 = vmatprep.subr.mxu0 %v7268_v0 }
 0xb85   :  { %v4122_v18 = vpop.f32.mrf.mxu1 }
 0xb86   :  { %v4126_v57 = vadd.f32 %v4122_v18, %v8631_v2  ;;  %v5223_v2 = vld [vmem:[#allocation23 + $0x28] sm:$0xff] }
 0xb87   :  { %v6728_v19 = vpop.f32.mrf.mxu1 }
 0xb8d   :  { %v4276_v20 = vpop.f32.mrf.mxu1 }
 0xb8e   :  { %v4280_v58 = vadd.f32 %v4276_v20, %v4126_v57 }
 0xb8f   :  { %v6750_v21 = vpop.f32.mrf.mxu1 }
 0xb95   :  { %v4430_v41 = vpop.f32.mrf.mxu1 }
 0xb96   :  { %v4434_v61 = vadd.f32 %v4430_v41, %v4280_v58 }
 0xb97   :  { %v6772_v42 = vpop.f32.mrf.mxu1 }
 0xb9d   :  { %v4584_v47 = vpop.f32.mrf.mxu1 }
 0xb9e   :  { %v4588_v62 = vadd.f32 %v4584_v47, %v4434_v61 }
 0xb9f   :  { %v6794_v48 = vpop.f32.mrf.mxu1 }
 0xba5   :  { %v4738_v55 = vpop.f32.mrf.mxu1 }
 0xba6   :  { %v4742_v63 = vadd.f32 %v4738_v55, %v4588_v62 }
 0xba7   :  { %v6816_v56 = vpop.f32.mrf.mxu1 }
 0xbad   :  { %v4892_v59 = vpop.f32.mrf.mxu1 }
 0xbae   :  { %v4896_v1 = vadd.f32 %v4892_v59, %v4742_v63 }
 0xbaf   :  { %v6838_v60 = vpop.f32.mrf.mxu1 }
 0xbb5   :  { %v5046_v3 = vpop.f32.mrf.mxu1 }
 0xbb6   :  { %v5050_v51 = vadd.f32 %v5046_v3, %v4896_v1 }
 0xbb7   :  { %v6860_v5 = vpop.f32.mrf.mxu1 }
 0xbb8   :  { %v5058_v50 = vadd.f32 %v5599_v4, %v5050_v51 }
 0xbba   :  { %v5059_v10 = vmax.f32 %v5058_v50, 0.0 }
 0xbbc   :  { %6870 = vmatmul.mubr.msk.f32.vlgmr.msra.gmra.mxu0 %vm1488_vm3, %v5059_v10 }
 0xbbd   :  { %6884 = vmatpush3.msra.mxu0 %v5225_v11  ;;  %v5214_v13 = vpop.f32.mrf.mxu1  ;;  %6899 = vmatprep.mubr.msk.f32.mxu0 %vm7269_vm5, %v7268_v0 }
 0xbbe   :  { %6885 = vmatprep.subr.mxu0 %v7268_v0 }
 0xbbf   :  { %6886 = vmatpush3.msra.mxu0 %v5224_v12  ;;  %v6882_v14 = vpop.f32.mrf.mxu1 }
 0xbc0   :  { %6887 = vmatprep.subr.mxu0 %v7268_v0 }
 0xbc1   :  { %6888 = vmatpush3.msra.mxu0 %v5223_v2 }
 0xbc2   :  { %6889 = vmatprep.subr.mxu0 %v7268_v0 }
 0xbc3   :  { %6890 = vmatpush3.msra.mxu0 %v5222_v15 }
 0xbc4   :  { %6891 = vmatprep.subr.mxu0 %v7268_v0 }
 0xbc5   :  { %6892 = vmatpush3.msra.mxu0 %v5221_v16 }
 0xbc6   :  { %6893 = vmatprep.subr.mxu0 %v7268_v0 }
 0xbc7   :  { %6894 = vmatpush3.msra.mxu0 %v5220_v17 }
 0xbc8   :  { %6895 = vmatprep.subr.mxu0 %v7268_v0 }
 0xbc9   :  { %6896 = vmatpush3.msra.mxu0 %v5219_v22 }
 0xbca   :  { %6897 = vmatprep.subr.mxu0 %v7268_v0  ;;  %v5308_v0 = vld [vmem:[%s8756_s23] sm:$0x3] }
 0xbcb   :  { %6898 = vmatpush3.msra.mxu0 %v5218_v23 }
 0xbcc   :  { %6900 = vmatmul.mubr.msk.f32.vlgmr.msra.gmra.mxu0 %vm3567_vm4, %v5214_v13 }
 0xc7c   :  { %v5140_v24 = vpop.f32.mrf.mxu0 }
 0xc7d   :  { %v5141_v43 = vadd.f32 %v5600_v26, %v5140_v24 }
 0xc7e   :  { %v6871_v25 = vpop.f32.mrf.mxu0 }
 0xc8c   :  { %v5302_v27 = vpop.f32.mrf.mxu0 }
 0xc8d   :  { %v5303_v44 = vadd.f32 %v5603_v49, %v5302_v27 }
 0xc8e   :  { %v6901_v28 = vpop.f32.mrf.mxu0 }
 0xc8f   :  { %v5306_v52 = vadd.f32 %v5303_v44, %v5141_v43 }
 0xc91   :  { %v5307_v45 = vmax.f32 %v5306_v52, 0.0 }
 0xc93   :  { %6903 = vmatpush3.msra.mxu1 %v5307_v45 }
 0xc94   :  { %6905 = vmatmul.mubr.msk.f32.vlgmr.msra.gmra.mxu1 %vm5309_vm6, %v5308_v0 }
 0xd54   :  { %v5379_v46 = vpop.f32.mrf.mxu1 }
 0xd55   :  { %5383 = vst [vmem:[#allocation25] sm:$0x3] %v5379_v46 }
 0xd56   :  { %v6906_v53 = vpop.f32.mrf.mxu1 }
 0xd57   :  { %7225 = shalt.err (!%p7222_p4)
}
 0xd58   :  { %5393 = dma.vmem_to_hbm [thread:$0]  %s5391_s21, 32, %s8757_s24, [#allocation4]  }
 0xd59   :  { %7250 = dma.done.wait [#allocation4], 32  }
 0xd5a   :  { %7251 = vsyncadd [#allocation4], 4294967264 }
 0xd5b   :  { %5397 = vsyncpa [#allocation3], 1 }
 0xd5c   :  { %5398 = vsyncpa [#allocation6], 1 }
 0xd5d   :  { %5399 = vsyncpa [#allocation9], 1 }
 0xd5e   :  { %5400 = vsyncpa [#allocation12], 1 }
 0xd5f   :  { %5401 = vsyncpa [#allocation15], 1 }
 0xd60   :  { %5402 = vsyncpa [#allocation18], 1 }
 0xd61   :  { %5403 = vsyncpa [#allocation21], 1 }
 0xd62   :  { %5404 = vsyncpa [#allocation24], 1 }
 0xd63   :  { %5405 = vsyncpa [#allocation4], 1 }

</bundles_post_ra>
